<compile_context>
chip_gen: v6e
topology: v6e:2x2x1
jax: 0.10.0
libtpu: 0.0.40
codegen_flags: <defaults>
</compile_context>

<pallas_src>
import jax
import jax.numpy as jnp
import numpy as np
from jax.experimental import pallas as pl
from jax.experimental.pallas import tpu as pltpu

HID = 512
A_IN = 128
VS_IN = 2048
VST_IN = 512
POOL = 8  # avg_pool2d kernel (8, 1) along the video_s sequence axis


# ---------------------------------------------------------------------------
# Kernel: one row-tile of the flattened (B*T) axis per grid step.
# Inputs arrive in f32 straight from HBM; bf16 casts happen in-tile.
# ---------------------------------------------------------------------------
def _avv_kernel(a_ref, vs_ref, vst_ref,
                wa_ref, ba_ref, wv_ref, wst_ref, bf_ref,
                fa_ref, fv_ref):
    # ---- f_a = audio @ wa + ba (bf16 MXU operands, f32 accumulation) -------
    a = a_ref[...].astype(jnp.bfloat16)                     # (rm, A_IN)
    fa = jnp.dot(a, wa_ref[...], preferred_element_type=jnp.float32)
    fa_ref[...] = (fa + ba_ref[...]).astype(fa_ref.dtype)

    # ---- avg-pool video_s over its group-of-8 axis ---------------------------
    # video_s tile is (rm, POOL*VS_IN); the 8 pool members are lane-aligned
    # column slices (VS_IN % 128 == 0), read directly from the ref so no
    # full-tile intermediate value is materialized. 1/POOL is folded into
    # wv_ref, so a plain f32 sum suffices here.
    acc = vs_ref[:, 0:VS_IN]                                 # (rm, VS_IN) f32
    for p in range(1, POOL):
        acc = acc + vs_ref[:, p * VS_IN:(p + 1) * VS_IN]
    pooled = acc.astype(jnp.bfloat16)                        # (rm, VS_IN) bf16

    # ---- folded fusion: pooled @ (wv@wf1 / 8) + video_st @ (wst@wf2) + b_eff -
    vst = vst_ref[...].astype(jnp.bfloat16)                  # (rm, VST_IN)
    fv = (jnp.dot(pooled, wv_ref[...], preferred_element_type=jnp.float32)
          + jnp.dot(vst, wst_ref[...], preferred_element_type=jnp.float32)
          + bf_ref[...])
    fv_ref[...] = fv.astype(fv_ref.dtype)


# ---------------------------------------------------------------------------
# One-time parameter fold (hoist out of the per-call path in a serving loop).
#   f_v = concat(vid_s, vid_st) @ wf + bf
#       = (sum_pool(video_s) @ (wv @ wf1) / 8) + video_st @ (wst @ wf2)
#         + bv @ wf1 + bst @ wf2 + bf
# Fold is done in f32; only the final effective weights are cast to bf16.
# ---------------------------------------------------------------------------
def fold_params(params):
    wf1 = params["wf"][:HID]
    wf2 = params["wf"][HID:]
    wv_eff = (params["wv"] @ wf1) / POOL                      # (2048, HID)
    wst_eff = params["wst"] @ wf2                             # (512, HID)
    b_eff = params["bv"] @ wf1 + params["bst"] @ wf2 + params["bf"]  # (1, HID)
    return dict(
        wa=params["wa"].astype(jnp.bfloat16),
        ba=params["ba"].astype(jnp.float32),
        wv_eff=wv_eff.astype(jnp.bfloat16),
        wst_eff=wst_eff.astype(jnp.bfloat16),
        b_eff=b_eff.astype(jnp.float32),
    )


# ---------------------------------------------------------------------------
# Wrapper
# ---------------------------------------------------------------------------
def avv_preprocessor(audio, video_s, video_st, folded, *, row_tile=128,
                     vmem_limit_bytes=48 * 1024 * 1024):
    """audio: (B, T, 128), video_s: (B, 8*T, 2048), video_st: (B, T, 512).

    `folded` comes from fold_params(). Defaults (row_tile=128, 48 MiB limit)
    are sized for v7x; on v5e/v6e raise row_tile to 256-512 and the limit to
    ~96 MiB for deeper DMA overlap on this HBM-bound kernel.
    """
    B, T, _ = audio.shape
    assert audio.shape == (B, T, A_IN)
    assert video_s.shape == (B, POOL * T, VS_IN)
    assert video_st.shape == (B, T, VST_IN)
    BT = B * T

    # Free, contiguous reshapes (no copies, no dtype conversion passes).
    a2 = audio.reshape(BT, A_IN)
    vs2 = video_s.reshape(BT, POOL * VS_IN)    # pool axis folded into lanes
    vst2 = video_st.reshape(BT, VST_IN)

    rm = row_tile if BT > row_tile else BT
    grid = (pl.cdiv(BT, rm),)
    const = lambda r: (0, 0)   # grid-invariant operands (weights/biases)

    fa, fv = pl.pallas_call(
        _avv_kernel,
        out_shape=(jax.ShapeDtypeStruct((BT, HID), jnp.float32),
                   jax.ShapeDtypeStruct((BT, HID), jnp.float32)),
        grid=grid,
        in_specs=[
            pl.BlockSpec((rm, A_IN), lambda r: (r, 0)),
            pl.BlockSpec((rm, POOL * VS_IN), lambda r: (r, 0)),
            pl.BlockSpec((rm, VST_IN), lambda r: (r, 0)),
            pl.BlockSpec((A_IN, HID), const),
            pl.BlockSpec((1, HID), const),
            pl.BlockSpec((VS_IN, HID), const),
            pl.BlockSpec((VST_IN, HID), const),
            pl.BlockSpec((1, HID), const),
        ],
        out_specs=(pl.BlockSpec((rm, HID), lambda r: (r, 0)),
                   pl.BlockSpec((rm, HID), lambda r: (r, 0))),
        compiler_params=pltpu.CompilerParams(
            dimension_semantics=("parallel",),
            vmem_limit_bytes=vmem_limit_bytes,
        ),
    )(a2, vs2, vst2,
      folded["wa"], folded["ba"], folded["wv_eff"], folded["wst_eff"],
      folded["b_eff"])

    return fa.reshape(B, T, HID), fv.reshape(B, T, HID)


# ---------------------------------------------------------------------------
# Reference (pure JAX, f32, matches the PyTorch module op-for-op)
# ---------------------------------------------------------------------------
def reference(audio, video_s, video_st, params):
    B, T, _ = audio.shape
    f_a = audio @ params["wa"] + params["ba"]
    y = video_s @ params["wv"] + params["bv"]                     # (B, 8T, HID)
    vid_s = y.reshape(B, T, POOL, HID).mean(axis=2)               # avg_pool2d((8,1))
    vid_st = video_st @ params["wst"] + params["bst"]
    f_v = jnp.concatenate([vid_s, vid_st], axis=-1) @ params["wf"] + params["bf"]
    return f_a, f_v


def _init_linear(key, fan_in, fan_out):
    kw, kb = jax.random.split(key)
    bound = 1.0 / np.sqrt(fan_in)
    w = jax.random.uniform(kw, (fan_in, fan_out), jnp.float32, -bound, bound)
    b = jax.random.uniform(kb, (1, fan_out), jnp.float32, -bound, bound)
    return w, b


if __name__ == "__main__":
    key = jax.random.PRNGKey(0)
    k_a, k_vs, k_vst, k1, k2, k3, k4 = jax.random.split(key, 7)

    B, T = 4, 8
    audio = jax.random.normal(k_a, (B, T, A_IN), jnp.float32)
    video_s = jax.random.normal(k_vs, (B, POOL * T, VS_IN), jnp.float32)
    video_st = jax.random.normal(k_vst, (B, T, VST_IN), jnp.float32)

    wa, ba = _init_linear(k1, A_IN, HID)
    wv, bv = _init_linear(k2, VS_IN, HID)
    wst, bst = _init_linear(k3, VST_IN, HID)
    wf, bf = _init_linear(k4, 2 * HID, HID)
    params = dict(wa=wa, ba=ba, wv=wv, bv=bv, wst=wst, bst=bst, wf=wf, bf=bf)

    # Weight fold done ONCE (not in the per-call path).
    folded = fold_params(params)

    # row_tile=16 -> 2 grid steps at this small size (exercises the tiling path)
    run = jax.jit(lambda a, vs, vst, fp: avv_preprocessor(a, vs, vst, fp,
                                                          row_tile=16))
    f_a, f_v = run(audio, video_s, video_st, folded)
    jax.block_until_ready((f_a, f_v))

    f_a_ref, f_v_ref = reference(audio, video_s, video_st, params)
    np.testing.assert_allclose(np.asarray(f_a), np.asarray(f_a_ref), rtol=2e-2, atol=2e-2)
    np.testing.assert_allclose(np.asarray(f_v), np.asarray(f_v_ref), rtol=2e-2, atol=2e-2)

    print("KERNEL_OK")
</pallas_src>

<mosaic_0001>
module attributes {stable_mosaic.version = 11 : i64} {
  func.func @_avv_kernel(%arg0: i32, %arg1: memref<16x128xf32, #tpu.memory_space<vmem>>, %arg2: memref<16x16384xf32, #tpu.memory_space<vmem>>, %arg3: memref<16x512xf32, #tpu.memory_space<vmem>>, %arg4: memref<128x512xbf16, #tpu.memory_space<vmem>>, %arg5: memref<1x512xf32, #tpu.memory_space<vmem>>, %arg6: memref<2048x512xbf16, #tpu.memory_space<vmem>>, %arg7: memref<512x512xbf16, #tpu.memory_space<vmem>>, %arg8: memref<1x512xf32, #tpu.memory_space<vmem>>, %arg9: memref<16x512xf32, #tpu.memory_space<vmem>>, %arg10: memref<16x512xf32, #tpu.memory_space<vmem>>) attributes {dimension_semantics = [#tpu.dimension_semantics<parallel>], iteration_bounds = array<i64: 2>, scalar_prefetch = 0 : i64, scratch_operands = 0 : i64, tpu.core_type = #tpu.core_type<tc>, window_params = [{transform_indices = @transform_0, window_bounds = array<i64: 16, 128>}, {transform_indices = @transform_1, window_bounds = array<i64: 16, 16384>}, {transform_indices = @transform_2, window_bounds = array<i64: 16, 512>}, {pipeline_mode = #tpu.pipeline_mode<synchronous>, transform_indices = @transform_3, window_bounds = array<i64: 128, 512>}, {pipeline_mode = #tpu.pipeline_mode<synchronous>, transform_indices = @transform_4, window_bounds = array<i64: 1, 512>}, {pipeline_mode = #tpu.pipeline_mode<synchronous>, transform_indices = @transform_5, window_bounds = array<i64: 2048, 512>}, {pipeline_mode = #tpu.pipeline_mode<synchronous>, transform_indices = @transform_6, window_bounds = array<i64: 512, 512>}, {pipeline_mode = #tpu.pipeline_mode<synchronous>, transform_indices = @transform_7, window_bounds = array<i64: 1, 512>}, {transform_indices = @transform_8, window_bounds = array<i64: 16, 512>}, {transform_indices = @transform_9, window_bounds = array<i64: 16, 512>}]} {
    %c0 = arith.constant 0 : index
    %c0_0 = arith.constant 0 : index
    %0 = vector.load %arg1[%c0, %c0_0] : memref<16x128xf32, #tpu.memory_space<vmem>>, vector<16x128xf32>
    %1 = arith.truncf %0 : vector<16x128xf32> to vector<16x128xbf16>
    %c0_1 = arith.constant 0 : index
    %c0_2 = arith.constant 0 : index
    %2 = vector.load %arg4[%c0_1, %c0_2] : memref<128x512xbf16, #tpu.memory_space<vmem>>, vector<128x512xbf16>
    %cst = arith.constant dense<0.000000e+00> : vector<16x512xf32>
    %3 = tpu.matmul %1, %2, %cst {dimension_numbers = #tpu.dot_dimension_numbers<[1], [0], [0], [1], [0, 0, 1, 1], [], []>} : vector<16x128xbf16>, vector<128x512xbf16>, vector<16x512xf32> -> vector<16x512xf32>
    %c0_3 = arith.constant 0 : index
    %c0_4 = arith.constant 0 : index
    %4 = vector.load %arg5[%c0_3, %c0_4] : memref<1x512xf32, #tpu.memory_space<vmem>>, vector<1x512xf32>
    %5 = vector.broadcast %4 : vector<1x512xf32> to vector<16x512xf32>
    %6 = arith.addf %3, %5 : vector<16x512xf32>
    %c0_5 = arith.constant 0 : index
    %c0_6 = arith.constant 0 : index
    %7 = vector.load %arg9[%c0_5, %c0_6] : memref<16x512xf32, #tpu.memory_space<vmem>>, vector<16x512xf32>
    tpu.vector_store %arg9[%c0_5, %c0_6], %6 {strides = array<i32>} : memref<16x512xf32, #tpu.memory_space<vmem>>, vector<16x512xf32>,
    %c0_7 = arith.constant 0 : index
    %c0_8 = arith.constant 0 : index
    %8 = vector.load %arg2[%c0_7, %c0_8] : memref<16x16384xf32, #tpu.memory_space<vmem>>, vector<16x2048xf32>
    %c0_9 = arith.constant 0 : index
    %c2048 = arith.constant 2048 : index
    %9 = vector.load %arg2[%c0_9, %c2048] : memref<16x16384xf32, #tpu.memory_space<vmem>>, vector<16x2048xf32>
    %10 = arith.addf %8, %9 : vector<16x2048xf32>
    %c0_10 = arith.constant 0 : index
    %c4096 = arith.constant 4096 : index
    %11 = vector.load %arg2[%c0_10, %c4096] : memref<16x16384xf32, #tpu.memory_space<vmem>>, vector<16x2048xf32>
    %12 = arith.addf %10, %11 : vector<16x2048xf32>
    %c0_11 = arith.constant 0 : index
    %c6144 = arith.constant 6144 : index
    %13 = vector.load %arg2[%c0_11, %c6144] : memref<16x16384xf32, #tpu.memory_space<vmem>>, vector<16x2048xf32>
    %14 = arith.addf %12, %13 : vector<16x2048xf32>
    %c0_12 = arith.constant 0 : index
    %c8192 = arith.constant 8192 : index
    %15 = vector.load %arg2[%c0_12, %c8192] : memref<16x16384xf32, #tpu.memory_space<vmem>>, vector<16x2048xf32>
    %16 = arith.addf %14, %15 : vector<16x2048xf32>
    %c0_13 = arith.constant 0 : index
    %c10240 = arith.constant 10240 : index
    %17 = vector.load %arg2[%c0_13, %c10240] : memref<16x16384xf32, #tpu.memory_space<vmem>>, vector<16x2048xf32>
    %18 = arith.addf %16, %17 : vector<16x2048xf32>
    %c0_14 = arith.constant 0 : index
    %c12288 = arith.constant 12288 : index
    %19 = vector.load %arg2[%c0_14, %c12288] : memref<16x16384xf32, #tpu.memory_space<vmem>>, vector<16x2048xf32>
    %20 = arith.addf %18, %19 : vector<16x2048xf32>
    %c0_15 = arith.constant 0 : index
    %c14336 = arith.constant 14336 : index
    %21 = vector.load %arg2[%c0_15, %c14336] : memref<16x16384xf32, #tpu.memory_space<vmem>>, vector<16x2048xf32>
    %22 = arith.addf %20, %21 : vector<16x2048xf32>
    %23 = arith.truncf %22 : vector<16x2048xf32> to vector<16x2048xbf16>
    %c0_16 = arith.constant 0 : index
    %c0_17 = arith.constant 0 : index
    %24 = vector.load %arg3[%c0_16, %c0_17] : memref<16x512xf32, #tpu.memory_space<vmem>>, vector<16x512xf32>
    %25 = arith.truncf %24 : vector<16x512xf32> to vector<16x512xbf16>
    %c0_18 = arith.constant 0 : index
    %c0_19 = arith.constant 0 : index
    %26 = vector.load %arg6[%c0_18, %c0_19] : memref<2048x512xbf16, #tpu.memory_space<vmem>>, vector<2048x512xbf16>
    %cst_20 = arith.constant dense<0.000000e+00> : vector<16x512xf32>
    %27 = tpu.matmul %23, %26, %cst_20 {dimension_numbers = #tpu.dot_dimension_numbers<[1], [0], [0], [1], [0, 0, 1, 1], [], []>} : vector<16x2048xbf16>, vector<2048x512xbf16>, vector<16x512xf32> -> vector<16x512xf32>
    %c0_21 = arith.constant 0 : index
    %c0_22 = arith.constant 0 : index
    %28 = vector.load %arg7[%c0_21, %c0_22] : memref<512x512xbf16, #tpu.memory_space<vmem>>, vector<512x512xbf16>
    %cst_23 = arith.constant dense<0.000000e+00> : vector<16x512xf32>
    %29 = tpu.matmul %25, %28, %cst_23 {dimension_numbers = #tpu.dot_dimension_numbers<[1], [0], [0], [1], [0, 0, 1, 1], [], []>} : vector<16x512xbf16>, vector<512x512xbf16>, vector<16x512xf32> -> vector<16x512xf32>
    %30 = arith.addf %27, %29 : vector<16x512xf32>
    %c0_24 = arith.constant 0 : index
    %c0_25 = arith.constant 0 : index
    %31 = vector.load %arg8[%c0_24, %c0_25] : memref<1x512xf32, #tpu.memory_space<vmem>>, vector<1x512xf32>
    %32 = vector.broadcast %31 : vector<1x512xf32> to vector<16x512xf32>
    %33 = arith.addf %30, %32 : vector<16x512xf32>
    %c0_26 = arith.constant 0 : index
    %c0_27 = arith.constant 0 : index
    %34 = vector.load %arg10[%c0_26, %c0_27] : memref<16x512xf32, #tpu.memory_space<vmem>>, vector<16x512xf32>
    tpu.vector_store %arg10[%c0_26, %c0_27], %33 {strides = array<i32>} : memref<16x512xf32, #tpu.memory_space<vmem>>, vector<16x512xf32>,
    return
  }
  func.func @transform_0(%arg0: i32) -> (i32, i32) {
    %c0_i32 = arith.constant 0 : i32
    %c0_i32_0 = arith.constant 0 : i32
    return %arg0, %c0_i32 : i32, i32
  }
  func.func @transform_1(%arg0: i32) -> (i32, i32) {
    %c0_i32 = arith.constant 0 : i32
    %c0_i32_0 = arith.constant 0 : i32
    return %arg0, %c0_i32 : i32, i32
  }
  func.func @transform_2(%arg0: i32) -> (i32, i32) {
    %c0_i32 = arith.constant 0 : i32
    %c0_i32_0 = arith.constant 0 : i32
    return %arg0, %c0_i32 : i32, i32
  }
  func.func @transform_3(%arg0: i32) -> (i32, i32) {
    %c0_i32 = arith.constant 0 : i32
    %c0_i32_0 = arith.constant 0 : i32
    %c0_i32_1 = arith.constant 0 : i32
    return %c0_i32, %c0_i32_0 : i32, i32
  }
  func.func @transform_4(%arg0: i32) -> (i32, i32) {
    %c0_i32 = arith.constant 0 : i32
    %c0_i32_0 = arith.constant 0 : i32
    %c0_i32_1 = arith.constant 0 : i32
    return %c0_i32, %c0_i32_0 : i32, i32
  }
  func.func @transform_5(%arg0: i32) -> (i32, i32) {
    %c0_i32 = arith.constant 0 : i32
    %c0_i32_0 = arith.constant 0 : i32
    %c0_i32_1 = arith.constant 0 : i32
    return %c0_i32, %c0_i32_0 : i32, i32
  }
  func.func @transform_6(%arg0: i32) -> (i32, i32) {
    %c0_i32 = arith.constant 0 : i32
    %c0_i32_0 = arith.constant 0 : i32
    %c0_i32_1 = arith.constant 0 : i32
    return %c0_i32, %c0_i32_0 : i32, i32
  }
  func.func @transform_7(%arg0: i32) -> (i32, i32) {
    %c0_i32 = arith.constant 0 : i32
    %c0_i32_0 = arith.constant 0 : i32
    %c0_i32_1 = arith.constant 0 : i32
    return %c0_i32, %c0_i32_0 : i32, i32
  }
  func.func @transform_8(%arg0: i32) -> (i32, i32) {
    %c0_i32 = arith.constant 0 : i32
    %c0_i32_0 = arith.constant 0 : i32
    return %arg0, %c0_i32 : i32, i32
  }
  func.func @transform_9(%arg0: i32) -> (i32, i32) {
    %c0_i32 = arith.constant 0 : i32
    %c0_i32_0 = arith.constant 0 : i32
    return %arg0, %c0_i32 : i32, i32
  }
}

</mosaic_0001>

<bundles_post_ra>
// kernel: _lambda_.1
= control target key start
LH: loop header
LB: loop body
LE: loop exit
PB: predicated region body
PF: predicated region fallthrough
CT: control target
= control target key end

     0   :  { %15 = vsyncpa [#allocation3], 0  ;;  %s10669_s0 = inlined_call_operand.vmem [shape: f32[32,128], index: 0, kind: input, shape index: {}]   ;;  %s10670_s1 = inlined_call_operand.vmem [shape: f32[32,16384], index: 1, kind: input, shape index: {}]   ;;  %s10671_s2 = inlined_call_operand.vmem [shape: f32[32,512], index: 2, kind: input, shape index: {}]   ;;  %s10672_s3 = inlined_call_operand.vmem [shape: bf16[128,512], index: 3, kind: input, shape index: {}]   ;;  %s10673_s4 = inlined_call_operand.vmem [shape: f32[1,512], index: 4, kind: input, shape index: {}]   ;;  %s10674_s5 = inlined_call_operand.vmem [shape: bf16[2048,512], index: 5, kind: input, shape index: {}]   ;;  %s10675_s6 = inlined_call_operand.vmem [shape: bf16[512,512], index: 6, kind: input, shape index: {}]   ;;  %s10676_s7 = inlined_call_operand.vmem [shape: f32[1,512], index: 7, kind: input, shape index: {}]   ;;  %s10677_s8 = inlined_call_operand.hbm [shape: f32[32,512], index: 8, kind: output, shape index: {0}]   ;;  %s10678_s9 = inlined_call_operand.hbm [shape: f32[32,512], index: 9, kind: output, shape index: {1}]  }
   0x1   :  { %17 = vsyncpa [#allocation3 + $0x1], 0 }
   0x2   :  { %18 = vsyncpa [#allocation5], 0 }
   0x3   :  { %20 = vsyncpa [#allocation5 + $0x1], 0  ;;  %s8013_s30 = smov 0   ;;  %s8015_s10 = smov 0  }
   0x4   :  { %s8017_s11 = smov 0   ;;  %s8019_s12 = smov 0  }
   0x5 LB: > { %s8034_s13 = sadd.s32 4294967295, %s7956_s12   ;;  %s6109_s14 = sadd.s32 4294967294, %s7956_s12   ;;  %s7956_s12 = sphi %s8019_s12, %s10691_s12   ;;  %s7952_s11 = sphi %s8017_s11, %s10690_s11   ;;  %s7948_s10 = sphi %s8015_s10, %s10689_s10   ;;  %s7944_s30 = sphi %s8013_s30, %s10688_s30  }
   0x6   : > { %s8038_s15 = sadd.s32 1, %s7956_s12   ;;  %s216_s16 = sadd.s32 1, %s7952_s11 }
   0x7   : > { %s213_s17 = ssub.s32 %s7956_s12, %s8038_s15  ;;  %p226_p0 = scmp.ne.s32.totalorder %s7952_s11, %s7948_s10 }
   0x8   : > { %p214_p1 = scmp.eq.s32.totalorder %s213_s17, 0  ;;  %p227_p2 = scmp.eq.s32.totalorder %s8034_s13, 1 }
   0x9   : > { %p232_p3 = scmp.ne.s32.totalorder %s7948_s10, %s7944_s30  ;;  %p233_p4 = scmp.eq.s32.totalorder %s6109_s14, 1 }
   0xa   : > { %s8049_s18 = scalar_select %p214_p1, %s7952_s11, %s216_s16  }
   0xb   : > { %p8051_p5 = por %p227_p2, %p226_p0  ;;  %p8055_p6 = por %p233_p4, %p232_p3 }
   0xc   : > { %10681 = sst [smem:[#allocation8_spill]] %s8049_s18  ;;  %p6112_p7 = scmp.ge.s32.totalorder %s7956_s12, 1 }
   0xd   : > { %p321_p8 = scmp.lt.s32.totalorder %s7956_s12, 3 }
   0xf   : > { %p322_p9 = pnand %p6112_p7, %p321_p8 }
  0x10   : > { %s6115_s27 = sshll.u32 (!%p322_p9), %s8034_s13, 1  ;;  %s8865_s24 = sand.u32 (!%p322_p9), 1, %s7948_s10  }
  0x11   : > { %325 = sbr.rel (%p322_p9) target bundleno = 914 (0x392), region = 52  ;;  %p375_p10 = scmp.lt.s32.totalorder (!%p322_p9), %s6115_s27, 3 }
  0x12   : > { %s10679_s16 = sshll.u32 (!%p322_p9), %s8865_s24, 6  ;;  %s10684_s26 = sshll.u32 (!%p322_p9), %s8865_s24, 6 }
  0x13   : > { %s7959_s23 = smov (!%p322_p9), [#allocation2]  }
  0x16   : > { %v6858_v0 = vld [vmem:[%s10672_s3 + $0xe4] ss:$16 sps:$4 sm:$0xff]   ;;  %v6860_v1 = vld [vmem:[%s10672_s3 + $0xec] ss:$16 sps:$4 sm:$0xff]   ;;  %v7958_v2 = vmov 0   ;;  %s10693_s27 = smov (!%p375_p10, %s6115_s27), 3 }
  0x17   : > { %646 = vmatprep.mubr.bf16.mxu0 %v7958_v2  ;;  %689 = vmatprep.mubr.bf16.mxu1 %v7958_v2  ;;  %v6862_v3 = vld [vmem:[%s10672_s3 + $0xe0] ss:$16 sps:$4 sm:$0xff]   ;;  %v6863_v4 = vld [vmem:[%s10672_s3 + $0xe8] ss:$16 sps:$4 sm:$0xff]   ;;  %v6864_v5 = vld [vmem:[%s10672_s3 + $0xc4] ss:$16 sps:$4 sm:$0xff]  }
  0x18   : > { %614 = vmatprep.subr.bf16.mxu0 %v6858_v0  ;;  %657 = vmatprep.subr.bf16.mxu1 %v6860_v1  ;;  %v6866_v6 = vld [vmem:[%s10672_s3 + $0xcc] ss:$16 sps:$4 sm:$0xff]   ;;  %v6868_v7 = vld [vmem:[%s10672_s3 + $0xc0] ss:$16 sps:$4 sm:$0xff]   ;;  %v6869_v8 = vld [vmem:[%s10672_s3 + $0xc8] ss:$16 sps:$4 sm:$0xff]  }
  0x19   : > { %615 = vmatpush1.bf16.msra.mxu0 %v6862_v3  ;;  %658 = vmatpush1.bf16.msra.mxu1 %v6863_v4  ;;  %v6870_v9 = vld [vmem:[%s10672_s3 + $0xa4] ss:$16 sps:$4 sm:$0xff]   ;;  %v6872_v10 = vld [vmem:[%s10672_s3 + $0xac] ss:$16 sps:$4 sm:$0xff]   ;;  %v6874_v11 = vld [vmem:[%s10672_s3 + $0xa0] ss:$16 sps:$4 sm:$0xff]  }
  0x1a   : > { %616 = vmatprep.subr.bf16.mxu0 %v6864_v5  ;;  %659 = vmatprep.subr.bf16.mxu1 %v6866_v6  ;;  %v6875_v12 = vld [vmem:[%s10672_s3 + $0xa8] ss:$16 sps:$4 sm:$0xff]   ;;  %v6876_v13 = vld [vmem:[%s10672_s3 + $0x84] ss:$16 sps:$4 sm:$0xff]   ;;  %v6878_v14 = vld [vmem:[%s10672_s3 + $0x8c] ss:$16 sps:$4 sm:$0xff]  }
  0x1b   : > { %v6880_v15 = vld [vmem:[%s10672_s3 + $0x80] ss:$16 sps:$4 sm:$0xff]   ;;  %v6881_v16 = vld [vmem:[%s10672_s3 + $0x88] ss:$16 sps:$4 sm:$0xff]   ;;  %v6882_v17 = vld [vmem:[%s10672_s3 + $0x64] ss:$16 sps:$4 sm:$0xff]  }
  0x1c   : > { %v6884_v18 = vld [vmem:[%s10672_s3 + $0x6c] ss:$16 sps:$4 sm:$0xff]   ;;  %v6886_v19 = vld [vmem:[%s10672_s3 + $0x60] ss:$16 sps:$4 sm:$0xff]   ;;  %v6887_v20 = vld [vmem:[%s10672_s3 + $0x68] ss:$16 sps:$4 sm:$0xff]  }
  0x1d   : > { %617 = vmatpush1.bf16.msra.mxu0 %v6868_v7  ;;  %660 = vmatpush1.bf16.msra.mxu1 %v6869_v8  ;;  %v6888_v21 = vld [vmem:[%s10672_s3 + $0x44] ss:$16 sps:$4 sm:$0xff]   ;;  %v6890_v22 = vld [vmem:[%s10672_s3 + $0x4c] ss:$16 sps:$4 sm:$0xff]   ;;  %v6892_v23 = vld [vmem:[%s10672_s3 + $0x40] ss:$16 sps:$4 sm:$0xff]  }
  0x1e   : > { %618 = vmatprep.subr.bf16.mxu0 %v6870_v9  ;;  %661 = vmatprep.subr.bf16.mxu1 %v6872_v10  ;;  %v6893_v24 = vld [vmem:[%s10672_s3 + $0x48] ss:$16 sps:$4 sm:$0xff]   ;;  %v6894_v25 = vld [vmem:[%s10672_s3 + $0x24] ss:$16 sps:$4 sm:$0xff]   ;;  %v6896_v26 = vld [vmem:[%s10672_s3 + $0x2c] ss:$16 sps:$4 sm:$0xff]  }
  0x1f   : > { %s6116_s28 = sshll.u32 %s10693_s27, 3  ;;  %v6898_v27 = vld [vmem:[%s10672_s3 + $0x20] ss:$16 sps:$4 sm:$0xff]   ;;  %v6899_v28 = vld [vmem:[%s10672_s3 + $0x28] ss:$16 sps:$4 sm:$0xff]   ;;  %s6806_s21 = sshll.u32 %s10693_s27, 5 }
  0x20   : > { %v6900_v29 = vld [vmem:[%s10672_s3 + $0x4] ss:$16 sps:$4 sm:$0xff]   ;;  %v6902_v30 = vld [vmem:[%s10672_s3 + $0xc] ss:$16 sps:$4 sm:$0xff]   ;;  %s378_s18 = scalar_lea.vmem %s10669_s0, %s6116_s28  ;;  %v6904_v31 = vld [vmem:[%s10672_s3] ss:$16 sps:$4 sm:$0xff]   ;;  %s8264_s29 = scalar_lea.vmem %s10671_s2, %s6806_s21 }
  0x21   : > { %619 = vmatpush1.bf16.msra.mxu0 %v6874_v11  ;;  %662 = vmatpush1.bf16.msra.mxu1 %v6875_v12  ;;  %v6905_v32 = vld [vmem:[%s10672_s3 + $0x8] ss:$16 sps:$4 sm:$0xff]   ;;  %v397_v33 = vld [vmem:[%s378_s18] sm:$0xff]  ;;  %s6805_s25 = sshll.u32 %s10693_s27, 10  ;;  %s8941_s21 = scalar_lea.vmem [#allocation2], %s10679_s16 }
  0x22   : > { %620 = vmatprep.subr.bf16.mxu0 %v6876_v13  ;;  %663 = vmatprep.subr.bf16.mxu1 %v6878_v14  ;;  %v398_v34 = vld [vmem:[%s378_s18 + $0x8] sm:$0xff]  ;;  %v6908_v35 = vld [vmem:[%s10675_s6 + $0xe4] ss:$16 sps:$4 sm:$0xff]   ;;  %v6906_v38 = vld [vmem:[%s10675_s6 + $0xe0] ss:$16 sps:$4 sm:$0xff]   ;;  %s8556_s22 = scalar_lea.vmem %s10670_s1, %s6805_s25  ;;  %s10409_s25 = scalar_lea.vmem [#allocation4], %s10684_s26 }
  0x23   : > { %v6911_v36 = vld [vmem:[%s10675_s6 + $0x2e4] ss:$16 sps:$4 sm:$0xff]   ;;  %v399_v37 = vpack.c.bf16 %v398_v34, %v397_v33  ;;  %v6909_v39 = vld [vmem:[%s10675_s6 + $0x2e0] ss:$16 sps:$4 sm:$0xff]   ;;  %v1205_v10 = vld [vmem:[%s8264_s29 + $0x8] sm:$0xff]  ;;  %s10680_s18 = sshll.u32 %s8034_s13, 10 }
  0x24   : > { %v6914_v40 = vld [vmem:[%s10675_s6 + $0xc4] ss:$16 sps:$4 sm:$0xff]   ;;  %v6912_v42 = vld [vmem:[%s10675_s6 + $0xc0] ss:$16 sps:$4 sm:$0xff]   ;;  %v1209_v11 = vld [vmem:[%s8264_s29 + $0x28] sm:$0xff]  ;;  %s5974_s14 = sshll.u32 %s8941_s21, 4  ;;  %s10574_s17 = scalar_lea.hbm %s10677_s8, %s10680_s18  ;;  %s10576_s14 = int_to_ptr.vmem [resolvable:$true] %s5974_s14 }
  0x25   : > { %621 = vmatpush1.bf16.msra.mxu0 %v6880_v15  ;;  %664 = vmatpush1.bf16.msra.mxu1 %v6881_v16  ;;  %v6917_v41 = vld [vmem:[%s10675_s6 + $0x2c4] ss:$16 sps:$4 sm:$0xff]   ;;  %v6915_v43 = vld [vmem:[%s10675_s6 + $0x2c0] ss:$16 sps:$4 sm:$0xff]   ;;  %v1207_v12 = vld [vmem:[%s8264_s29 + $0x18] sm:$0xff]  ;;  %v8288_v14 = vpack.c.bf16 %v1209_v11, %v1205_v10  ;;  %s7866_s27 = scalar_lea.vmem %s10576_s14, 1024 }
  0x26   : > { %622 = vmatprep.subr.bf16.mxu0 %v6882_v17  ;;  %665 = vmatprep.subr.bf16.mxu1 %v6884_v18  ;;  %v6920_v44 = vld [vmem:[%s10675_s6 + $0xa4] ss:$16 sps:$4 sm:$0xff]   ;;  %v6918_v46 = vld [vmem:[%s10675_s6 + $0xa0] ss:$16 sps:$4 sm:$0xff]   ;;  %v1211_v13 = vld [vmem:[%s8264_s29 + $0x38] sm:$0xff]  ;;  %p7867_p11 = scmp.ne.s32.totalorder %s10576_s14, %s7866_s27  ;;  %s7870_s28 = sshll.u32 %s7959_s23, 4  ;;  %s7871_s28 = int_to_ptr.vmem [resolvable:$false] %s7870_s28 }
  0x27   : > { %v6923_v45 = vld [vmem:[%s10675_s6 + $0x2a4] ss:$16 sps:$4 sm:$0xff]   ;;  %v6921_v47 = vld [vmem:[%s10675_s6 + $0x2a0] ss:$16 sps:$4 sm:$0xff]   ;;  %v8290_v15 = vpack.c.bf16 %v1211_v13, %v1207_v12  ;;  %v7038_v10 = vld [vmem:[%s10675_s6 + $0x28] ss:$16 sps:$4 sm:$0xff]   ;;  %p7873_p0 = scmp.lt.s32.totalorder %s10576_s14, %s7871_s28 }
  0x28   : > { %v6926_v48 = vld [vmem:[%s10675_s6 + $0x84] ss:$16 sps:$4 sm:$0xff]   ;;  %v6924_v50 = vld [vmem:[%s10675_s6 + $0x80] ss:$16 sps:$4 sm:$0xff]   ;;  %v7041_v11 = vld [vmem:[%s10675_s6 + $0x228] ss:$16 sps:$4 sm:$0xff]   ;;  %p7868_p12 = pnand %p7867_p11, %p8051_p5 }
  0x29   : > { %623 = vmatpush1.bf16.msra.mxu0 %v6886_v19  ;;  %666 = vmatpush1.bf16.msra.mxu1 %v6887_v20  ;;  %v6929_v49 = vld [vmem:[%s10675_s6 + $0x284] ss:$16 sps:$4 sm:$0xff]   ;;  %v6927_v51 = vld [vmem:[%s10675_s6 + $0x280] ss:$16 sps:$4 sm:$0xff]   ;;  %v7046_v12 = vld [vmem:[%s10675_s6 + $0xc] ss:$16 sps:$4 sm:$0xff]  }
  0x2a   : > { %624 = vmatprep.subr.bf16.mxu0 %v6888_v21  ;;  %667 = vmatprep.subr.bf16.mxu1 %v6890_v22  ;;  %v6932_v52 = vld [vmem:[%s10675_s6 + $0x64] ss:$16 sps:$4 sm:$0xff]   ;;  %v6930_v54 = vld [vmem:[%s10675_s6 + $0x60] ss:$16 sps:$4 sm:$0xff]   ;;  %v7049_v13 = vld [vmem:[%s10675_s6 + $0x20c] ss:$16 sps:$4 sm:$0xff]   ;;  %p7869_p13 = pneg %p7868_p12 }
  0x2b   : > { %v6935_v53 = vld [vmem:[%s10675_s6 + $0x264] ss:$16 sps:$4 sm:$0xff]   ;;  %v6933_v55 = vld [vmem:[%s10675_s6 + $0x260] ss:$16 sps:$4 sm:$0xff]  }
  0x2c   : > { %v6938_v56 = vld [vmem:[%s10675_s6 + $0x44] ss:$16 sps:$4 sm:$0xff]   ;;  %v6936_v58 = vld [vmem:[%s10675_s6 + $0x40] ss:$16 sps:$4 sm:$0xff]  }
  0x2d   : > { %625 = vmatpush1.bf16.msra.mxu0 %v6892_v23  ;;  %668 = vmatpush1.bf16.msra.mxu1 %v6893_v24  ;;  %v6941_v57 = vld [vmem:[%s10675_s6 + $0x244] ss:$16 sps:$4 sm:$0xff]   ;;  %v6939_v59 = vld [vmem:[%s10675_s6 + $0x240] ss:$16 sps:$4 sm:$0xff]  }
  0x2e   : > { %626 = vmatprep.subr.bf16.mxu0 %v6894_v25  ;;  %669 = vmatprep.subr.bf16.mxu1 %v6896_v26  ;;  %v6944_v60 = vld [vmem:[%s10675_s6 + $0x24] ss:$16 sps:$4 sm:$0xff]   ;;  %v6942_v62 = vld [vmem:[%s10675_s6 + $0x20] ss:$16 sps:$4 sm:$0xff]  }
  0x2f   : > { %v6947_v61 = vld [vmem:[%s10675_s6 + $0x224] ss:$16 sps:$4 sm:$0xff]   ;;  %v6945_v63 = vld [vmem:[%s10675_s6 + $0x220] ss:$16 sps:$4 sm:$0xff]  }
  0x30   : > { %v6950_v0 = vld [vmem:[%s10675_s6 + $0x4] ss:$16 sps:$4 sm:$0xff]   ;;  %v6948_v2 = vld [vmem:[%s10675_s6] ss:$16 sps:$4 sm:$0xff]  }
  0x31   : > { %627 = vmatpush1.bf16.msra.mxu0 %v6898_v27  ;;  %670 = vmatpush1.bf16.msra.mxu1 %v6899_v28  ;;  %v6953_v1 = vld [vmem:[%s10675_s6 + $0x204] ss:$16 sps:$4 sm:$0xff]   ;;  %v6951_v3 = vld [vmem:[%s10675_s6 + $0x200] ss:$16 sps:$4 sm:$0xff]  }
  0x32   : > { %628 = vmatprep.subr.bf16.mxu0 %v6900_v29  ;;  %671 = vmatprep.subr.bf16.mxu1 %v6902_v30  ;;  %v6956_v4 = vld [vmem:[%s10675_s6 + $0x1e4] ss:$16 sps:$4 sm:$0xff]   ;;  %v6954_v6 = vld [vmem:[%s10675_s6 + $0x1e0] ss:$16 sps:$4 sm:$0xff]  }
  0x33   : > { %v6959_v5 = vld [vmem:[%s10675_s6 + $0x3e4] ss:$16 sps:$4 sm:$0xff]   ;;  %v6957_v7 = vld [vmem:[%s10675_s6 + $0x3e0] ss:$16 sps:$4 sm:$0xff]  }
  0x34   : > { %v6962_v8 = vld [vmem:[%s10675_s6 + $0x1c4] ss:$16 sps:$4 sm:$0xff]   ;;  %v6960_v16 = vld [vmem:[%s10675_s6 + $0x1c0] ss:$16 sps:$4 sm:$0xff]  }
  0x35   : > { %629 = vmatpush1.bf16.msra.mxu0 %v6904_v31  ;;  %672 = vmatpush1.bf16.msra.mxu1 %v6905_v32  ;;  %v6965_v9 = vld [vmem:[%s10675_s6 + $0x3c4] ss:$16 sps:$4 sm:$0xff]   ;;  %v6963_v17 = vld [vmem:[%s10675_s6 + $0x3c0] ss:$16 sps:$4 sm:$0xff]  }
  0x36   : > { %2496 = vmatprep.subr.bf16.mxu0 %v6908_v35  ;;  %2539 = vmatprep.subr.bf16.mxu1 %v6911_v36  ;;  %v6968_v18 = vld [vmem:[%s10675_s6 + $0x1a4] ss:$16 sps:$4 sm:$0xff]   ;;  %v6966_v20 = vld [vmem:[%s10675_s6 + $0x1a0] ss:$16 sps:$4 sm:$0xff]  }
  0x37   : > { %v6971_v19 = vld [vmem:[%s10675_s6 + $0x3a4] ss:$16 sps:$4 sm:$0xff]   ;;  %v6969_v21 = vld [vmem:[%s10675_s6 + $0x3a0] ss:$16 sps:$4 sm:$0xff]  }
  0x38   : > { %647 = vmatmul.mubr.bf16.vlgmr.msra.gmra.mxu0 %v399_v37  ;;  %690 = vmatmul.mubr.bf16.vlgmr.msra.gmra.mxu1 %v399_v37  ;;  %v6974_v22 = vld [vmem:[%s10675_s6 + $0x184] ss:$16 sps:$4 sm:$0xff]   ;;  %v6972_v24 = vld [vmem:[%s10675_s6 + $0x180] ss:$16 sps:$4 sm:$0xff]  }
  0x39   : > { %2497 = vmatpush1.bf16.msra.mxu0 %v6906_v38  ;;  %2540 = vmatpush1.bf16.msra.mxu1 %v6909_v39  ;;  %v6977_v23 = vld [vmem:[%s10675_s6 + $0x384] ss:$16 sps:$4 sm:$0xff]   ;;  %v6975_v25 = vld [vmem:[%s10675_s6 + $0x380] ss:$16 sps:$4 sm:$0xff]  }
  0x3a   : > { %2498 = vmatprep.subr.bf16.mxu0 %v6914_v40  ;;  %2541 = vmatprep.subr.bf16.mxu1 %v6917_v41  ;;  %v6980_v26 = vld [vmem:[%s10675_s6 + $0x164] ss:$16 sps:$4 sm:$0xff]   ;;  %v6978_v28 = vld [vmem:[%s10675_s6 + $0x160] ss:$16 sps:$4 sm:$0xff]  }
  0x3b   : > { %2528 = vmatprep.mubr.bf16.mxu0 %v8288_v14  ;;  %2571 = vmatprep.mubr.bf16.mxu1 %v8290_v15  ;;  %v6983_v27 = vld [vmem:[%s10675_s6 + $0x364] ss:$16 sps:$4 sm:$0xff]   ;;  %v6981_v29 = vld [vmem:[%s10675_s6 + $0x360] ss:$16 sps:$4 sm:$0xff]  }
  0x3c   : > { %v6986_v30 = vld [vmem:[%s10675_s6 + $0x144] ss:$16 sps:$4 sm:$0xff]   ;;  %v6984_v32 = vld [vmem:[%s10675_s6 + $0x140] ss:$16 sps:$4 sm:$0xff]  }
  0x3d   : > { %2499 = vmatpush1.bf16.msra.mxu0 %v6912_v42  ;;  %2542 = vmatpush1.bf16.msra.mxu1 %v6915_v43  ;;  %v6989_v31 = vld [vmem:[%s10675_s6 + $0x344] ss:$16 sps:$4 sm:$0xff]   ;;  %v6987_v33 = vld [vmem:[%s10675_s6 + $0x340] ss:$16 sps:$4 sm:$0xff]  }
  0x3e   : > { %2500 = vmatprep.subr.bf16.mxu0 %v6920_v44  ;;  %2543 = vmatprep.subr.bf16.mxu1 %v6923_v45  ;;  %v6992_v34 = vld [vmem:[%s10675_s6 + $0x124] ss:$16 sps:$4 sm:$0xff]   ;;  %v6990_v36 = vld [vmem:[%s10675_s6 + $0x120] ss:$16 sps:$4 sm:$0xff]  }
  0x3f   : > { %v6995_v35 = vld [vmem:[%s10675_s6 + $0x324] ss:$16 sps:$4 sm:$0xff]   ;;  %v6993_v37 = vld [vmem:[%s10675_s6 + $0x320] ss:$16 sps:$4 sm:$0xff]  }
  0x40   : > { %v6998_v38 = vld [vmem:[%s10675_s6 + $0x104] ss:$16 sps:$4 sm:$0xff]   ;;  %v6996_v40 = vld [vmem:[%s10675_s6 + $0x100] ss:$16 sps:$4 sm:$0xff]  }
  0x41   : > { %2501 = vmatpush1.bf16.msra.mxu0 %v6918_v46  ;;  %2544 = vmatpush1.bf16.msra.mxu1 %v6921_v47  ;;  %v7001_v39 = vld [vmem:[%s10675_s6 + $0x304] ss:$16 sps:$4 sm:$0xff]   ;;  %v6999_v41 = vld [vmem:[%s10675_s6 + $0x300] ss:$16 sps:$4 sm:$0xff]   ;;  %v7004_v46 = vld [vmem:[%s10675_s6 + $0xec] ss:$16 sps:$4 sm:$0xff]  }
  0x42   : > { %2502 = vmatprep.subr.bf16.mxu0 %v6926_v48  ;;  %2545 = vmatprep.subr.bf16.mxu1 %v6929_v49  ;;  %v1204_v42 = vld [vmem:[%s8264_s29] sm:$0xff]  ;;  %v1206_v44 = vld [vmem:[%s8264_s29 + $0x10] sm:$0xff]  ;;  %v7007_v47 = vld [vmem:[%s10675_s6 + $0x2ec] ss:$16 sps:$4 sm:$0xff]  }
  0x43   : > { %v1208_v43 = vld [vmem:[%s8264_s29 + $0x20] sm:$0xff]  ;;  %v1210_v45 = vld [vmem:[%s8264_s29 + $0x30] sm:$0xff] }
  0x44   : > { %v8382_v48 = vpack.c.bf16 %v1208_v43, %v1204_v42  ;;  %v8384_v49 = vpack.c.bf16 %v1210_v45, %v1206_v44  ;;  %v7086_v42 = vld [vmem:[%s10675_s6 + $0x128] ss:$16 sps:$4 sm:$0xff]   ;;  %v7094_v44 = vld [vmem:[%s10675_s6 + $0x10c] ss:$16 sps:$4 sm:$0xff]  }
  0x45   : > { %2503 = vmatpush1.bf16.msra.mxu0 %v6924_v50  ;;  %2546 = vmatpush1.bf16.msra.mxu1 %v6927_v51  ;;  %v7002_v50 = vld [vmem:[%s10675_s6 + $0xe8] ss:$16 sps:$4 sm:$0xff]   ;;  %v7097_v45 = vld [vmem:[%s10675_s6 + $0x30c] ss:$16 sps:$4 sm:$0xff]  }
  0x46   : > { %2504 = vmatprep.subr.bf16.mxu0 %v6932_v52  ;;  %2547 = vmatprep.subr.bf16.mxu1 %v6935_v53  ;;  %v7005_v51 = vld [vmem:[%s10675_s6 + $0x2e8] ss:$16 sps:$4 sm:$0xff]   ;;  %v7010_v52 = vld [vmem:[%s10675_s6 + $0xcc] ss:$16 sps:$4 sm:$0xff]  }
  0x47   : > { %v7013_v53 = vld [vmem:[%s10675_s6 + $0x2cc] ss:$16 sps:$4 sm:$0xff]   ;;  %v7089_v43 = vld [vmem:[%s10675_s6 + $0x328] ss:$16 sps:$4 sm:$0xff]  }
  0x49   : > { %2505 = vmatpush1.bf16.msra.mxu0 %v6930_v54  ;;  %2548 = vmatpush1.bf16.msra.mxu1 %v6933_v55  ;;  %v7008_v54 = vld [vmem:[%s10675_s6 + $0xc8] ss:$16 sps:$4 sm:$0xff]  }
  0x4a   : > { %2506 = vmatprep.subr.bf16.mxu0 %v6938_v56  ;;  %2549 = vmatprep.subr.bf16.mxu1 %v6941_v57  ;;  %v7011_v55 = vld [vmem:[%s10675_s6 + $0x2c8] ss:$16 sps:$4 sm:$0xff]   ;;  %v7016_v56 = vld [vmem:[%s10675_s6 + $0xac] ss:$16 sps:$4 sm:$0xff]  }
  0x4b   : > { %v7019_v57 = vld [vmem:[%s10675_s6 + $0x2ac] ss:$16 sps:$4 sm:$0xff]  }
  0x4d   : > { %2507 = vmatpush1.bf16.msra.mxu0 %v6936_v58  ;;  %2550 = vmatpush1.bf16.msra.mxu1 %v6939_v59  ;;  %v7014_v58 = vld [vmem:[%s10675_s6 + $0xa8] ss:$16 sps:$4 sm:$0xff]  }
  0x4e   : > { %2508 = vmatprep.subr.bf16.mxu0 %v6944_v60  ;;  %2551 = vmatprep.subr.bf16.mxu1 %v6947_v61  ;;  %v7017_v59 = vld [vmem:[%s10675_s6 + $0x2a8] ss:$16 sps:$4 sm:$0xff]   ;;  %v7022_v60 = vld [vmem:[%s10675_s6 + $0x8c] ss:$16 sps:$4 sm:$0xff]  }
  0x4f   : > { %v7025_v61 = vld [vmem:[%s10675_s6 + $0x28c] ss:$16 sps:$4 sm:$0xff]  }
  0x51   : > { %2509 = vmatpush1.bf16.msra.mxu0 %v6942_v62  ;;  %2552 = vmatpush1.bf16.msra.mxu1 %v6945_v63  ;;  %v7020_v62 = vld [vmem:[%s10675_s6 + $0x88] ss:$16 sps:$4 sm:$0xff]  }
  0x52   : > { %2510 = vmatprep.subr.bf16.mxu0 %v6950_v0  ;;  %2553 = vmatprep.subr.bf16.mxu1 %v6953_v1  ;;  %v7023_v63 = vld [vmem:[%s10675_s6 + $0x288] ss:$16 sps:$4 sm:$0xff]   ;;  %v7028_v0 = vld [vmem:[%s10675_s6 + $0x6c] ss:$16 sps:$4 sm:$0xff]  }
  0x53   : > { %v7031_v1 = vld [vmem:[%s10675_s6 + $0x26c] ss:$16 sps:$4 sm:$0xff]  }
  0x55   : > { %2511 = vmatpush1.bf16.msra.mxu0 %v6948_v2  ;;  %2554 = vmatpush1.bf16.msra.mxu1 %v6951_v3  ;;  %v7026_v2 = vld [vmem:[%s10675_s6 + $0x68] ss:$16 sps:$4 sm:$0xff]  }
  0x56   : > { %2512 = vmatprep.subr.bf16.mxu0 %v6956_v4  ;;  %2555 = vmatprep.subr.bf16.mxu1 %v6959_v5  ;;  %v7029_v3 = vld [vmem:[%s10675_s6 + $0x268] ss:$16 sps:$4 sm:$0xff]   ;;  %v7034_v4 = vld [vmem:[%s10675_s6 + $0x4c] ss:$16 sps:$4 sm:$0xff]  }
  0x57   : > { %v7037_v5 = vld [vmem:[%s10675_s6 + $0x24c] ss:$16 sps:$4 sm:$0xff]  }
  0x59   : > { %2513 = vmatpush2.bf16.msra.mxu0 %v6954_v6  ;;  %2556 = vmatpush2.bf16.msra.mxu1 %v6957_v7  ;;  %v7032_v6 = vld [vmem:[%s10675_s6 + $0x48] ss:$16 sps:$4 sm:$0xff]  }
  0x5a   : > { %2514 = vmatprep.subr.bf16.mxu0 %v6962_v8  ;;  %2557 = vmatprep.subr.bf16.mxu1 %v6965_v9  ;;  %v7035_v7 = vld [vmem:[%s10675_s6 + $0x248] ss:$16 sps:$4 sm:$0xff]   ;;  %v7040_v8 = vld [vmem:[%s10675_s6 + $0x2c] ss:$16 sps:$4 sm:$0xff]  }
  0x5b   : > { %v7043_v9 = vld [vmem:[%s10675_s6 + $0x22c] ss:$16 sps:$4 sm:$0xff]  }
  0x5d   : > { %2515 = vmatpush2.bf16.msra.mxu0 %v6960_v16  ;;  %2558 = vmatpush2.bf16.msra.mxu1 %v6963_v17  ;;  %v7052_v16 = vld [vmem:[%s10675_s6 + $0x1ec] ss:$16 sps:$4 sm:$0xff]  }
  0x5e   : > { %2516 = vmatprep.subr.bf16.mxu0 %v6968_v18  ;;  %2559 = vmatprep.subr.bf16.mxu1 %v6971_v19  ;;  %v7055_v17 = vld [vmem:[%s10675_s6 + $0x3ec] ss:$16 sps:$4 sm:$0xff]   ;;  %v7050_v18 = vld [vmem:[%s10675_s6 + $0x1e8] ss:$16 sps:$4 sm:$0xff]  }
  0x5f   : > { %v7053_v19 = vld [vmem:[%s10675_s6 + $0x3e8] ss:$16 sps:$4 sm:$0xff]  }
  0x61   : > { %2517 = vmatpush2.bf16.msra.mxu0 %v6966_v20  ;;  %2560 = vmatpush2.bf16.msra.mxu1 %v6969_v21  ;;  %v7058_v20 = vld [vmem:[%s10675_s6 + $0x1cc] ss:$16 sps:$4 sm:$0xff]  }
  0x62   : > { %2518 = vmatprep.subr.bf16.mxu0 %v6974_v22  ;;  %2561 = vmatprep.subr.bf16.mxu1 %v6977_v23  ;;  %v7061_v21 = vld [vmem:[%s10675_s6 + $0x3cc] ss:$16 sps:$4 sm:$0xff]   ;;  %v7056_v22 = vld [vmem:[%s10675_s6 + $0x1c8] ss:$16 sps:$4 sm:$0xff]  }
  0x63   : > { %v7059_v23 = vld [vmem:[%s10675_s6 + $0x3c8] ss:$16 sps:$4 sm:$0xff]  }
  0x65   : > { %2519 = vmatpush2.bf16.msra.mxu0 %v6972_v24  ;;  %2562 = vmatpush2.bf16.msra.mxu1 %v6975_v25  ;;  %v7064_v24 = vld [vmem:[%s10675_s6 + $0x1ac] ss:$16 sps:$4 sm:$0xff]  }
  0x66   : > { %2520 = vmatprep.subr.bf16.mxu0 %v6980_v26  ;;  %2563 = vmatprep.subr.bf16.mxu1 %v6983_v27  ;;  %v7067_v25 = vld [vmem:[%s10675_s6 + $0x3ac] ss:$16 sps:$4 sm:$0xff]   ;;  %v7062_v26 = vld [vmem:[%s10675_s6 + $0x1a8] ss:$16 sps:$4 sm:$0xff]  }
  0x67   : > { %v7065_v27 = vld [vmem:[%s10675_s6 + $0x3a8] ss:$16 sps:$4 sm:$0xff]  }
  0x69   : > { %2521 = vmatpush2.bf16.msra.mxu0 %v6978_v28  ;;  %2564 = vmatpush2.bf16.msra.mxu1 %v6981_v29  ;;  %v7070_v28 = vld [vmem:[%s10675_s6 + $0x18c] ss:$16 sps:$4 sm:$0xff]  }
  0x6a   : > { %2522 = vmatprep.subr.bf16.mxu0 %v6986_v30  ;;  %2565 = vmatprep.subr.bf16.mxu1 %v6989_v31  ;;  %v7073_v29 = vld [vmem:[%s10675_s6 + $0x38c] ss:$16 sps:$4 sm:$0xff]   ;;  %v7068_v30 = vld [vmem:[%s10675_s6 + $0x188] ss:$16 sps:$4 sm:$0xff]  }
  0x6b   : > { %v7071_v31 = vld [vmem:[%s10675_s6 + $0x388] ss:$16 sps:$4 sm:$0xff]  }
  0x6d   : > { %2523 = vmatpush2.bf16.msra.mxu0 %v6984_v32  ;;  %2566 = vmatpush2.bf16.msra.mxu1 %v6987_v33  ;;  %v7076_v32 = vld [vmem:[%s10675_s6 + $0x16c] ss:$16 sps:$4 sm:$0xff]  }
  0x6e   : > { %2524 = vmatprep.subr.bf16.mxu0 %v6992_v34  ;;  %2567 = vmatprep.subr.bf16.mxu1 %v6995_v35  ;;  %v7079_v33 = vld [vmem:[%s10675_s6 + $0x36c] ss:$16 sps:$4 sm:$0xff]   ;;  %v7074_v34 = vld [vmem:[%s10675_s6 + $0x168] ss:$16 sps:$4 sm:$0xff]  }
  0x6f   : > { %v7077_v35 = vld [vmem:[%s10675_s6 + $0x368] ss:$16 sps:$4 sm:$0xff]  }
  0x71   : > { %2525 = vmatpush2.bf16.msra.mxu0 %v6990_v36  ;;  %2568 = vmatpush2.bf16.msra.mxu1 %v6993_v37  ;;  %v7082_v36 = vld [vmem:[%s10675_s6 + $0x14c] ss:$16 sps:$4 sm:$0xff]  }
  0x72   : > { %2526 = vmatprep.subr.bf16.mxu0 %v6998_v38  ;;  %2569 = vmatprep.subr.bf16.mxu1 %v7001_v39  ;;  %v7085_v37 = vld [vmem:[%s10675_s6 + $0x34c] ss:$16 sps:$4 sm:$0xff]   ;;  %v7080_v38 = vld [vmem:[%s10675_s6 + $0x148] ss:$16 sps:$4 sm:$0xff]  }
  0x73   : > { %v7083_v39 = vld [vmem:[%s10675_s6 + $0x348] ss:$16 sps:$4 sm:$0xff]  }
  0x75   : > { %2527 = vmatpush2.bf16.msra.mxu0 %v6996_v40  ;;  %2570 = vmatpush2.bf16.msra.mxu1 %v6999_v41  ;;  %v7088_v40 = vld [vmem:[%s10675_s6 + $0x12c] ss:$16 sps:$4 sm:$0xff]  }
  0x76   : > { %2582 = vmatprep.subr.bf16.mxu0 %v7004_v46  ;;  %2625 = vmatprep.subr.bf16.mxu1 %v7007_v47  ;;  %v7091_v41 = vld [vmem:[%s10675_s6 + $0x32c] ss:$16 sps:$4 sm:$0xff]  }
  0x77   : > { %v709_v46 = vld [vmem:[%s8556_s22 + $0x8] sm:$0xff] }
  0x78   : > { %2529 = vmatmul.mubr.bf16.vlgmr.msra.gmra.mxu0 %v8382_v48  ;;  %2572 = vmatmul.mubr.bf16.vlgmr.msra.gmra.mxu1 %v8384_v49  ;;  %v725_v47 = vld [vmem:[%s8556_s22 + $0x408] sm:$0xff] }
  0x79   : > { %2583 = vmatpush1.bf16.msra.mxu0 %v7002_v50  ;;  %2626 = vmatpush1.bf16.msra.mxu1 %v7005_v51  ;;  %v741_v50 = vld [vmem:[%s8556_s22 + $0x88] sm:$0xff] }
  0x7a   : > { %2584 = vmatprep.subr.bf16.mxu0 %v7010_v52  ;;  %2627 = vmatprep.subr.bf16.mxu1 %v7013_v53  ;;  %v757_v51 = vld [vmem:[%s8556_s22 + $0x488] sm:$0xff]  ;;  %v773_v53 = vadd.f32 %v741_v50, %v709_v46  ;;  %v1079_v46 = vld [vmem:[%s8556_s22 + $0x718] sm:$0xff]  ;;  %v7113_v50 = vld [vmem:[%s10674_s5 + $0x2a0] ss:$16 sps:$4 sm:$0xff]  }
  0x7b   : > { %2614 = vmatprep.mubr.bf16.mxu0 %v8288_v14  ;;  %2657 = vmatprep.mubr.bf16.mxu1 %v8290_v15  ;;  %v7044_v14 = vld [vmem:[%s10675_s6 + $0x8] ss:$16 sps:$4 sm:$0xff]  }
  0x7c   : > { %v7047_v15 = vld [vmem:[%s10675_s6 + $0x208] ss:$16 sps:$4 sm:$0xff]  }
  0x7d   : > { %2585 = vmatpush1.bf16.msra.mxu0 %v7008_v54  ;;  %2628 = vmatpush1.bf16.msra.mxu1 %v7011_v55  ;;  %v7092_v52 = vld [vmem:[%s10675_s6 + $0x108] ss:$16 sps:$4 sm:$0xff]   ;;  %v789_v54 = vadd.f32 %v757_v51, %v725_v47  ;;  %v7110_v47 = vld [vmem:[%s10674_s5 + $0xa0] ss:$16 sps:$4 sm:$0xff]  }
  0x7e   : > { %2586 = vmatprep.subr.bf16.mxu0 %v7016_v56  ;;  %2629 = vmatprep.subr.bf16.mxu1 %v7019_v57  ;;  %v805_v55 = vld [vmem:[%s8556_s22 + $0x108] sm:$0xff] }
  0x7f   : > { %v821_v56 = vld [vmem:[%s8556_s22 + $0x508] sm:$0xff] }
  0x80   : > { %v7095_v57 = vld [vmem:[%s10675_s6 + $0x308] ss:$16 sps:$4 sm:$0xff]  }
  0x81   : > { %2587 = vmatpush1.bf16.msra.mxu0 %v7014_v58  ;;  %2630 = vmatpush1.bf16.msra.mxu1 %v7017_v59  ;;  %v869_v58 = vld [vmem:[%s8556_s22 + $0x188] sm:$0xff] }
  0x82   : > { %2588 = vmatprep.subr.bf16.mxu0 %v7022_v60  ;;  %2631 = vmatprep.subr.bf16.mxu1 %v7025_v61  ;;  %v885_v59 = vld [vmem:[%s8556_s22 + $0x588] sm:$0xff]  ;;  %v7100_v60 = vld [vmem:[%s10674_s5 + $0xe4] ss:$16 sps:$4 sm:$0xff]  }
  0x83   : > { %v7103_v61 = vld [vmem:[%s10674_s5 + $0x2e4] ss:$16 sps:$4 sm:$0xff]  }
  0x85   : > { %2589 = vmatpush1.bf16.msra.mxu0 %v7020_v62  ;;  %2632 = vmatpush1.bf16.msra.mxu1 %v7023_v63  ;;  %v837_v62 = vadd.f32 %v805_v55, %v773_v53  ;;  %v853_v63 = vadd.f32 %v821_v56, %v789_v54  ;;  %v1127_v53 = vld [vmem:[%s8556_s22 + $0x398] sm:$0xff]  ;;  %v7118_v54 = vld [vmem:[%s10674_s5 + $0x84] ss:$16 sps:$4 sm:$0xff]  }
  0x86   : > { %2590 = vmatprep.subr.bf16.mxu0 %v7028_v0  ;;  %2633 = vmatprep.subr.bf16.mxu1 %v7031_v1  ;;  %v933_v0 = vld [vmem:[%s8556_s22 + $0x208] sm:$0xff]  ;;  %v7121_v55 = vld [vmem:[%s10674_s5 + $0x284] ss:$16 sps:$4 sm:$0xff]  }
  0x87   : > { %v949_v1 = vld [vmem:[%s8556_s22 + $0x608] sm:$0xff] }
  0x89   : > { %2591 = vmatpush1.bf16.msra.mxu0 %v7026_v2  ;;  %2634 = vmatpush1.bf16.msra.mxu1 %v7029_v3  ;;  %v997_v2 = vld [vmem:[%s8556_s22 + $0x288] sm:$0xff] }
  0x8a   : > { %2592 = vmatprep.subr.bf16.mxu0 %v7034_v4  ;;  %2635 = vmatprep.subr.bf16.mxu1 %v7037_v5  ;;  %v1013_v3 = vld [vmem:[%s8556_s22 + $0x688] sm:$0xff]  ;;  %v7098_v4 = vld [vmem:[%s10674_s5 + $0xe0] ss:$16 sps:$4 sm:$0xff]  }
  0x8b   : > { %v7101_v5 = vld [vmem:[%s10674_s5 + $0x2e0] ss:$16 sps:$4 sm:$0xff]  }
  0x8d   : > { %2593 = vmatpush1.bf16.msra.mxu0 %v7032_v6  ;;  %2636 = vmatpush1.bf16.msra.mxu1 %v7035_v7  ;;  %v901_v6 = vadd.f32 %v869_v58, %v837_v62  ;;  %v917_v7 = vadd.f32 %v885_v59, %v853_v63  ;;  %v7124_v63 = vld [vmem:[%s10674_s5 + $0x64] ss:$16 sps:$4 sm:$0xff]  }
  0x8e   : > { %2594 = vmatprep.subr.bf16.mxu0 %v7040_v8  ;;  %2637 = vmatprep.subr.bf16.mxu1 %v7043_v9  ;;  %v711_v8 = vld [vmem:[%s8556_s22 + $0x18] sm:$0xff] }
  0x8f   : > { %v727_v9 = vld [vmem:[%s8556_s22 + $0x418] sm:$0xff] }
  0x91   : > { %2595 = vmatpush1.bf16.msra.mxu0 %v7038_v10  ;;  %2638 = vmatpush1.bf16.msra.mxu1 %v7041_v11  ;;  %v743_v10 = vld [vmem:[%s8556_s22 + $0x98] sm:$0xff] }
  0x92   : > { %2596 = vmatprep.subr.bf16.mxu0 %v7046_v12  ;;  %2639 = vmatprep.subr.bf16.mxu1 %v7049_v13  ;;  %v759_v11 = vld [vmem:[%s8556_s22 + $0x498] sm:$0xff]  ;;  %v775_v12 = vadd.f32 %v743_v10, %v711_v8  ;;  %v7136_v8 = vld [vmem:[%s10674_s5 + $0x24] ss:$16 sps:$4 sm:$0xff]   ;;  %v7134_v10 = vld [vmem:[%s10674_s5 + $0x20] ss:$16 sps:$4 sm:$0xff]  }
  0x93   : > { %v807_v13 = vld [vmem:[%s8556_s22 + $0x118] sm:$0xff] }
  0x95   : > { %2597 = vmatpush1.bf16.msra.mxu0 %v7044_v14  ;;  %2640 = vmatpush1.bf16.msra.mxu1 %v7047_v15  ;;  %v823_v14 = vld [vmem:[%s8556_s22 + $0x518] sm:$0xff]  ;;  %v7106_v15 = vld [vmem:[%s10674_s5 + $0xc4] ss:$16 sps:$4 sm:$0xff]  }
  0x96   : > { %2598 = vmatprep.subr.bf16.mxu0 %v7052_v16  ;;  %2641 = vmatprep.subr.bf16.mxu1 %v7055_v17  ;;  %v7109_v16 = vld [vmem:[%s10674_s5 + $0x2c4] ss:$16 sps:$4 sm:$0xff]   ;;  %v965_v17 = vadd.f32 %v933_v0, %v901_v6  ;;  %v7128_v6 = vld [vmem:[%s10674_s5 + $0x40] ss:$16 sps:$4 sm:$0xff]  }
  0x97   : > { %v7127_v0 = vld [vmem:[%s10674_s5 + $0x264] ss:$16 sps:$4 sm:$0xff]  }
  0x99   : > { %2599 = vmatpush2.bf16.msra.mxu0 %v7050_v18  ;;  %2642 = vmatpush2.bf16.msra.mxu1 %v7053_v19  ;;  %v981_v18 = vadd.f32 %v949_v1, %v917_v7  ;;  %v791_v19 = vadd.f32 %v759_v11, %v727_v9  ;;  %v7131_v7 = vld [vmem:[%s10674_s5 + $0x240] ss:$16 sps:$4 sm:$0xff]   ;;  %v7139_v9 = vld [vmem:[%s10674_s5 + $0x224] ss:$16 sps:$4 sm:$0xff]  }
  0x9a   : > { %2600 = vmatprep.subr.bf16.mxu0 %v7058_v20  ;;  %2643 = vmatprep.subr.bf16.mxu1 %v7061_v21  ;;  %v871_v20 = vld [vmem:[%s8556_s22 + $0x198] sm:$0xff]  ;;  %v1061_v21 = vld [vmem:[%s8556_s22 + $0x308] sm:$0xff]  ;;  %v7137_v11 = vld [vmem:[%s10674_s5 + $0x220] ss:$16 sps:$4 sm:$0xff]  }
  0x9d   : > { %2601 = vmatpush2.bf16.msra.mxu0 %v7056_v22  ;;  %2644 = vmatpush2.bf16.msra.mxu1 %v7059_v23  ;;  %v1077_v22 = vld [vmem:[%s8556_s22 + $0x708] sm:$0xff]  ;;  %v839_v23 = vadd.f32 %v807_v13, %v775_v12  ;;  %v7142_v12 = vld [vmem:[%s10674_s5 + $0x4] ss:$16 sps:$4 sm:$0xff]  }
  0x9e   : > { %2602 = vmatprep.subr.bf16.mxu0 %v7064_v24  ;;  %2645 = vmatprep.subr.bf16.mxu1 %v7067_v25  ;;  %v887_v24 = vld [vmem:[%s8556_s22 + $0x598] sm:$0xff]  ;;  %v1029_v25 = vadd.f32 %v997_v2, %v965_v17  ;;  %v7122_v2 = vld [vmem:[%s10674_s5 + $0x60] ss:$16 sps:$4 sm:$0xff]   ;;  %v7145_v13 = vld [vmem:[%s10674_s5 + $0x204] ss:$16 sps:$4 sm:$0xff]  }
  0x9f   : > { %v7151_v17 = vld [vmem:[%s10674_s5 + $0x3e4] ss:$16 sps:$4 sm:$0xff]  }
  0xa1   : > { %2603 = vmatpush2.bf16.msra.mxu0 %v7062_v26  ;;  %2646 = vmatpush2.bf16.msra.mxu1 %v7065_v27  ;;  %v1045_v26 = vadd.f32 %v1013_v3, %v981_v18  ;;  %v855_v27 = vadd.f32 %v823_v14, %v791_v19  ;;  %v7125_v3 = vld [vmem:[%s10674_s5 + $0x260] ss:$16 sps:$4 sm:$0xff]  }
  0xa2   : > { %2604 = vmatprep.subr.bf16.mxu0 %v7070_v28  ;;  %2647 = vmatprep.subr.bf16.mxu1 %v7073_v29  ;;  %v935_v28 = vld [vmem:[%s8556_s22 + $0x218] sm:$0xff]  ;;  %v1125_v29 = vld [vmem:[%s8556_s22 + $0x388] sm:$0xff]  ;;  %v7140_v14 = vld [vmem:[%s10674_s5] ss:$16 sps:$4 sm:$0xff]  }
  0xa3   : > { %v708_v18 = vld [vmem:[%s8556_s22] sm:$0xff] }
  0xa4   : > { %v740_v19 = vld [vmem:[%s8556_s22 + $0x80] sm:$0xff] }
  0xa5   : > { %2605 = vmatpush2.bf16.msra.mxu0 %v7068_v30  ;;  %2648 = vmatpush2.bf16.msra.mxu1 %v7071_v31  ;;  %v1141_v30 = vld [vmem:[%s8556_s22 + $0x788] sm:$0xff]  ;;  %v903_v31 = vadd.f32 %v871_v20, %v839_v23  ;;  %v7146_v20 = vld [vmem:[%s10674_s5 + $0x1e0] ss:$16 sps:$4 sm:$0xff]  }
  0xa6   : > { %2606 = vmatprep.subr.bf16.mxu0 %v7076_v32  ;;  %2649 = vmatprep.subr.bf16.mxu1 %v7079_v33  ;;  %v951_v32 = vld [vmem:[%s8556_s22 + $0x618] sm:$0xff]  ;;  %v7104_v33 = vld [vmem:[%s10674_s5 + $0xc0] ss:$16 sps:$4 sm:$0xff]  }
  0xa7   : > { %v756_v23 = vld [vmem:[%s8556_s22 + $0x480] sm:$0xff] }
  0xa9   : > { %2607 = vmatpush2.bf16.msra.mxu0 %v7074_v34  ;;  %2650 = vmatpush2.bf16.msra.mxu1 %v7077_v35  ;;  %v7107_v34 = vld [vmem:[%s10674_s5 + $0x2c0] ss:$16 sps:$4 sm:$0xff]   ;;  %v1109_v35 = vadd.f32 %v1077_v22, %v1045_v26 }
  0xaa   : > { %2608 = vmatprep.subr.bf16.mxu0 %v7082_v36  ;;  %2651 = vmatprep.subr.bf16.mxu1 %v7085_v37  ;;  %v999_v36 = vld [vmem:[%s8556_s22 + $0x298] sm:$0xff]  ;;  %v7112_v37 = vld [vmem:[%s10674_s5 + $0xa4] ss:$16 sps:$4 sm:$0xff]  }
  0xab   : > { %v724_v22 = vld [vmem:[%s8556_s22 + $0x400] sm:$0xff]  ;;  %v726_v26 = vld [vmem:[%s8556_s22 + $0x410] sm:$0xff] }
  0xad   : > { %2609 = vmatpush2.bf16.msra.mxu0 %v7080_v38  ;;  %2652 = vmatpush2.bf16.msra.mxu1 %v7083_v39  ;;  %v7115_v38 = vld [vmem:[%s10674_s5 + $0x2a4] ss:$16 sps:$4 sm:$0xff]   ;;  %v967_v39 = vadd.f32 %v935_v28, %v903_v31  ;;  %v7155_v31 = vld [vmem:[%s10674_s5 + $0x3c0] ss:$16 sps:$4 sm:$0xff]  }
  0xae   : > { %2610 = vmatprep.subr.bf16.mxu0 %v7088_v40  ;;  %2653 = vmatprep.subr.bf16.mxu1 %v7091_v41  ;;  %v1015_v40 = vld [vmem:[%s8556_s22 + $0x698] sm:$0xff]  ;;  %v758_v28 = vld [vmem:[%s8556_s22 + $0x490] sm:$0xff] }
  0xb1   : > { %2611 = vmatpush2.bf16.msra.mxu0 %v7086_v42  ;;  %2654 = vmatpush2.bf16.msra.mxu1 %v7089_v43  ;;  %v1173_v42 = vadd.f32 %v1141_v30, %v1109_v35  ;;  %v7152_v30 = vld [vmem:[%s10674_s5 + $0x1c0] ss:$16 sps:$4 sm:$0xff]  }
  0xb2   : > { %2612 = vmatprep.subr.bf16.mxu0 %v7094_v44  ;;  %2655 = vmatprep.subr.bf16.mxu1 %v7097_v45  ;;  %v1063_v44 = vld [vmem:[%s8556_s22 + $0x318] sm:$0xff]  ;;  %v1031_v45 = vadd.f32 %v999_v36, %v967_v39  ;;  %v820_v35 = vld [vmem:[%s8556_s22 + $0x500] sm:$0xff]  ;;  %v790_v36 = vadd.f32 %v758_v28, %v726_v26  ;;  %v1062_v26 = vld [vmem:[%s8556_s22 + $0x310] sm:$0xff] }
  0xb3   : > { %v7163_v39 = vld [vmem:[%s10674_s5 + $0x3a4] ss:$16 sps:$4 sm:$0xff]  }
  0xb4   : > { %v1095_v56 = vadd.f32 %v1063_v44, %v1031_v45  ;;  %v868_v45 = vld [vmem:[%s8556_s22 + $0x180] sm:$0xff] }
  0xb5   : > { %2613 = vmatpush2.bf16.msra.mxu0 %v7092_v52  ;;  %2656 = vmatpush2.bf16.msra.mxu1 %v7095_v57  ;;  %v1143_v57 = vld [vmem:[%s8556_s22 + $0x798] sm:$0xff]  ;;  %v7187_v28 = vld [vmem:[%s10674_s5 + $0x324] ss:$16 sps:$4 sm:$0xff]  }
  0xb6   : > { %5228 = vmatprep.subr.bf16.mxu0 %v7100_v60  ;;  %5271 = vmatprep.subr.bf16.mxu1 %v7103_v61  ;;  %v1159_v59 = vadd.f32 %v1127_v53, %v1095_v56  ;;  %v7116_v60 = vld [vmem:[%s10674_s5 + $0x80] ss:$16 sps:$4 sm:$0xff]  }
  0xb7   : > { %v7119_v61 = vld [vmem:[%s10674_s5 + $0x280] ss:$16 sps:$4 sm:$0xff]  }
  0xb8   : > { %2615 = vmatmul.mubr.bf16.vlgmr.msra.gmra.mxu0 %v8382_v48  ;;  %2658 = vmatmul.mubr.bf16.vlgmr.msra.gmra.mxu1 %v8384_v49  ;;  %v1093_v48 = vadd.f32 %v1061_v21, %v1029_v25  ;;  %v919_v49 = vadd.f32 %v887_v24, %v855_v27  ;;  %v7149_v21 = vld [vmem:[%s10674_s5 + $0x3e0] ss:$16 sps:$4 sm:$0xff]   ;;  %v7154_v24 = vld [vmem:[%s10674_s5 + $0x1c4] ss:$16 sps:$4 sm:$0xff]  }
  0xb9   : > { %5229 = vmatpush1.bf16.msra.mxu0 %v7098_v4  ;;  %5272 = vmatpush1.bf16.msra.mxu1 %v7101_v5  ;;  %v7130_v4 = vld [vmem:[%s10674_s5 + $0x44] ss:$16 sps:$4 sm:$0xff]   ;;  %v7167_v56 = vld [vmem:[%s10674_s5 + $0x380] ss:$16 sps:$4 sm:$0xff]  }
  0xba   : > { %5230 = vmatprep.subr.bf16.mxu0 %v7106_v15  ;;  %5273 = vmatprep.subr.bf16.mxu1 %v7109_v16  ;;  %v1157_v41 = vadd.f32 %v1125_v29, %v1093_v48  ;;  %v983_v43 = vadd.f32 %v951_v32, %v919_v49  ;;  %v7133_v5 = vld [vmem:[%s10674_s5 + $0x244] ss:$16 sps:$4 sm:$0xff]   ;;  %v7143_v15 = vld [vmem:[%s10674_s5 + $0x200] ss:$16 sps:$4 sm:$0xff]   ;;  %v772_v32 = vadd.f32 %v740_v19, %v708_v18  ;;  %v434_v18 = vlaneseq }
  0xbb   : > { %v7148_v16 = vld [vmem:[%s10674_s5 + $0x1e4] ss:$16 sps:$4 sm:$0xff]  }
  0xbc   : > { %v8650_v51 = vpack.c.bf16 %v1173_v42, %v1157_v41  ;;  %v1047_v52 = vadd.f32 %v1015_v40, %v983_v43  ;;  %v710_v25 = vld [vmem:[%s8556_s22 + $0x10] sm:$0xff]  ;;  %v804_v48 = vld [vmem:[%s8556_s22 + $0x100] sm:$0xff] }
  0xbd   : > { %5231 = vmatpush1.bf16.msra.mxu0 %v7104_v33  ;;  %5274 = vmatpush1.bf16.msra.mxu1 %v7107_v34  ;;  %v742_v27 = vld [vmem:[%s8556_s22 + $0x90] sm:$0xff]  ;;  %v788_v34 = vadd.f32 %v756_v23, %v724_v22  ;;  %v836_v42 = vadd.f32 %v804_v48, %v772_v32  ;;  %v1060_v22 = vld [vmem:[%s8556_s22 + $0x300] sm:$0xff] }
  0xbe   : > { %5232 = vmatprep.subr.bf16.mxu0 %v7112_v37  ;;  %5275 = vmatprep.subr.bf16.mxu1 %v7115_v38  ;;  %v1111_v58 = vadd.f32 %v1079_v46, %v1047_v52  ;;  %v7157_v29 = vld [vmem:[%s10674_s5 + $0x3c4] ss:$16 sps:$4 sm:$0xff]   ;;  %v774_v49 = vadd.f32 %v742_v27, %v710_v25  ;;  %v7158_v40 = vld [vmem:[%s10674_s5 + $0x1a0] ss:$16 sps:$4 sm:$0xff]  }
  0xbf   : > { %5260 = vmatprep.mubr.bf16.mxu0 %v8650_v51  ;;  %v7160_v33 = vld [vmem:[%s10674_s5 + $0x1a4] ss:$16 sps:$4 sm:$0xff]   ;;  %v7161_v41 = vld [vmem:[%s10674_s5 + $0x3a0] ss:$16 sps:$4 sm:$0xff]   ;;  %v852_v44 = vadd.f32 %v820_v35, %v788_v34 }
  0xc0   : > { %v1175_v62 = vadd.f32 %v1143_v57, %v1111_v58  ;;  %v806_v37 = vld [vmem:[%s8556_s22 + $0x110] sm:$0xff]  ;;  %v884_v46 = vld [vmem:[%s8556_s22 + $0x580] sm:$0xff]  ;;  %v900_v57 = vadd.f32 %v868_v45, %v836_v42  ;;  %v745_v42 = vld [vmem:[%s8556_s22 + $0xa8] sm:$0xff] }
  0xc1   : > { %5233 = vmatpush1.bf16.msra.mxu0 %v7110_v47  ;;  %5276 = vmatpush1.bf16.msra.mxu1 %v7113_v50  ;;  %v822_v38 = vld [vmem:[%s8556_s22 + $0x510] sm:$0xff]  ;;  %v838_v47 = vadd.f32 %v806_v37, %v774_v49  ;;  %v1076_v23 = vld [vmem:[%s8556_s22 + $0x700] sm:$0xff] }
  0xc2   : > { %5234 = vmatprep.subr.bf16.mxu0 %v7118_v54  ;;  %5277 = vmatprep.subr.bf16.mxu1 %v7121_v55  ;;  %v8673_v1 = vpack.c.bf16 %v1175_v62, %v1159_v59  ;;  %v7166_v43 = vld [vmem:[%s10674_s5 + $0x184] ss:$16 sps:$4 sm:$0xff]   ;;  %v854_v50 = vadd.f32 %v822_v38, %v790_v36  ;;  %v7164_v55 = vld [vmem:[%s10674_s5 + $0x180] ss:$16 sps:$4 sm:$0xff]   ;;  %v916_v59 = vadd.f32 %v884_v46, %v852_v44  ;;  %v761_v46 = vld [vmem:[%s8556_s22 + $0x4a8] sm:$0xff] }
  0xc3   : > { %v870_v52 = vld [vmem:[%s8556_s22 + $0x190] sm:$0xff]  ;;  %v1124_v35 = vld [vmem:[%s8556_s22 + $0x380] sm:$0xff] }
  0xc4   : > { %5303 = vmatprep.mubr.bf16.mxu1 %v8673_v1  ;;  %v886_v53 = vld [vmem:[%s8556_s22 + $0x590] sm:$0xff]  ;;  %v902_v62 = vadd.f32 %v870_v52, %v838_v47  ;;  %v1140_v49 = vld [vmem:[%s8556_s22 + $0x780] sm:$0xff]  ;;  %v825_v52 = vld [vmem:[%s8556_s22 + $0x528] sm:$0xff] }
  0xc5   : > { %5235 = vmatpush1.bf16.msra.mxu0 %v7116_v60  ;;  %5278 = vmatpush1.bf16.msra.mxu1 %v7119_v61  ;;  %v7169_v54 = vld [vmem:[%s10674_s5 + $0x384] ss:$16 sps:$4 sm:$0xff]  }
  0xc6   : > { %5236 = vmatprep.subr.bf16.mxu0 %v7124_v63  ;;  %5279 = vmatprep.subr.bf16.mxu1 %v7127_v0  ;;  %v7172_v58 = vld [vmem:[%s10674_s5 + $0x164] ss:$16 sps:$4 sm:$0xff]   ;;  %v918_v63 = vadd.f32 %v886_v53, %v854_v50  ;;  %v809_v50 = vld [vmem:[%s8556_s22 + $0x128] sm:$0xff]  ;;  %v7188_v53 = vld [vmem:[%s10674_s5 + $0x100] ss:$16 sps:$4 sm:$0xff]  }
  0xc7   : > { %v932_v60 = vld [vmem:[%s8556_s22 + $0x200] sm:$0xff]  ;;  %v934_v0 = vld [vmem:[%s8556_s22 + $0x210] sm:$0xff] }
  0xc8   : > { %v948_v61 = vld [vmem:[%s8556_s22 + $0x600] sm:$0xff]  ;;  %v1078_v27 = vld [vmem:[%s8556_s22 + $0x710] sm:$0xff] }
  0xc9   : > { %5237 = vmatpush1.bf16.msra.mxu0 %v7122_v2  ;;  %5280 = vmatpush1.bf16.msra.mxu1 %v7125_v3  ;;  %v950_v2 = vld [vmem:[%s8556_s22 + $0x610] sm:$0xff] }
  0xca   : > { %5238 = vmatprep.subr.bf16.mxu0 %v7130_v4  ;;  %5281 = vmatprep.subr.bf16.mxu1 %v7133_v5  ;;  %v7175_v3 = vld [vmem:[%s10674_s5 + $0x364] ss:$16 sps:$4 sm:$0xff]   ;;  %v7170_v4 = vld [vmem:[%s10674_s5 + $0x160] ss:$16 sps:$4 sm:$0xff]  }
  0xcb   : > { %v7173_v5 = vld [vmem:[%s10674_s5 + $0x360] ss:$16 sps:$4 sm:$0xff]   ;;  %v7193_v34 = vld [vmem:[%s10674_s5 + $0x304] ss:$16 sps:$4 sm:$0xff]  }
  0xcc   : > { %v1126_v38 = vld [vmem:[%s8556_s22 + $0x390] sm:$0xff] }
  0xcd   : > { %5239 = vmatpush1.bf16.msra.mxu0 %v7128_v6  ;;  %5282 = vmatpush1.bf16.msra.mxu1 %v7131_v7  ;;  %v964_v6 = vadd.f32 %v932_v60, %v900_v57  ;;  %v7178_v7 = vld [vmem:[%s10674_s5 + $0x144] ss:$16 sps:$4 sm:$0xff]   ;;  %v7191_v60 = vld [vmem:[%s10674_s5 + $0x300] ss:$16 sps:$4 sm:$0xff]  }
  0xce   : > { %5240 = vmatprep.subr.bf16.mxu0 %v7136_v8  ;;  %5283 = vmatprep.subr.bf16.mxu1 %v7139_v9  ;;  %v980_v8 = vadd.f32 %v948_v61, %v916_v59  ;;  %v996_v9 = vld [vmem:[%s8556_s22 + $0x280] sm:$0xff]  ;;  %v873_v59 = vld [vmem:[%s8556_s22 + $0x1a8] sm:$0xff] }
  0xcf   : > { %v1028_v19 = vadd.f32 %v996_v9, %v964_v6  ;;  %v7196_v61 = vld [vmem:[%s10674_s5 + $0x4e4] ss:$16 sps:$4 sm:$0xff]  }
  0xd1   : > { %5241 = vmatpush1.bf16.msra.mxu0 %v7134_v10  ;;  %5284 = vmatpush1.bf16.msra.mxu1 %v7137_v11  ;;  %v1012_v10 = vld [vmem:[%s8556_s22 + $0x680] sm:$0xff]  ;;  %v966_v11 = vadd.f32 %v934_v0, %v902_v62  ;;  %v1092_v32 = vadd.f32 %v1060_v22, %v1028_v19  ;;  %v811_v19 = vld [vmem:[%s8556_s22 + $0x138] sm:$0xff]  ;;  %v1017_v22 = vld [vmem:[%s8556_s22 + $0x6a8] sm:$0xff] }
  0xd2   : > { %5242 = vmatprep.subr.bf16.mxu0 %v7142_v12  ;;  %5285 = vmatprep.subr.bf16.mxu1 %v7145_v13  ;;  %v982_v12 = vadd.f32 %v950_v2, %v918_v63  ;;  %v998_v13 = vld [vmem:[%s8556_s22 + $0x290] sm:$0xff]  ;;  %v889_v63 = vld [vmem:[%s8556_s22 + $0x5a8] sm:$0xff] }
  0xd3   : > { %v1156_v45 = vadd.f32 %v1124_v35, %v1092_v32  ;;  %v7199_v0 = vld [vmem:[%s10674_s5 + $0x6e4] ss:$16 sps:$4 sm:$0xff]  }
  0xd5   : > { %5243 = vmatpush1.bf16.msra.mxu0 %v7140_v14  ;;  %5286 = vmatpush1.bf16.msra.mxu1 %v7143_v15  ;;  %v1014_v14 = vld [vmem:[%s8556_s22 + $0x690] sm:$0xff] }
  0xd6   : > { %5244 = vmatprep.subr.bf16.mxu0 %v7148_v16  ;;  %5287 = vmatprep.subr.bf16.mxu1 %v7151_v17  ;;  %v7181_v15 = vld [vmem:[%s10674_s5 + $0x344] ss:$16 sps:$4 sm:$0xff]   ;;  %v7176_v16 = vld [vmem:[%s10674_s5 + $0x140] ss:$16 sps:$4 sm:$0xff]   ;;  %v1046_v25 = vadd.f32 %v1014_v14, %v982_v12  ;;  %v731_v12 = vld [vmem:[%s8556_s22 + $0x438] sm:$0xff] }
  0xd7   : > { %v7179_v17 = vld [vmem:[%s10674_s5 + $0x340] ss:$16 sps:$4 sm:$0xff]  }
  0xd8   : > { %v1110_v37 = vadd.f32 %v1078_v27, %v1046_v25  ;;  %v827_v25 = vld [vmem:[%s8556_s22 + $0x538] sm:$0xff]  ;;  %v7202_v27 = vld [vmem:[%s10674_s5 + $0x4c4] ss:$16 sps:$4 sm:$0xff]  }
  0xd9   : > { %5245 = vmatpush2.bf16.msra.mxu0 %v7146_v20  ;;  %5288 = vmatpush2.bf16.msra.mxu1 %v7149_v21  ;;  %v7184_v20 = vld [vmem:[%s10674_s5 + $0x124] ss:$16 sps:$4 sm:$0xff]   ;;  %v1044_v21 = vadd.f32 %v1012_v10, %v980_v8  ;;  %v1001_v10 = vld [vmem:[%s8556_s22 + $0x2a8] sm:$0xff] }
  0xda   : > { %5246 = vmatprep.subr.bf16.mxu0 %v7154_v24  ;;  %5289 = vmatprep.subr.bf16.mxu1 %v7157_v29  ;;  %v1030_v24 = vadd.f32 %v998_v13, %v966_v11  ;;  %v7182_v29 = vld [vmem:[%s10674_s5 + $0x120] ss:$16 sps:$4 sm:$0xff]   ;;  %v715_v11 = vld [vmem:[%s8556_s22 + $0x38] sm:$0xff] }
  0xdb   : > { %v1108_v48 = vadd.f32 %v1076_v23, %v1044_v21 }
  0xdc   : > { %v1094_v36 = vadd.f32 %v1062_v26, %v1030_v24 }
  0xdd   : > { %5247 = vmatpush2.bf16.msra.mxu0 %v7152_v30  ;;  %5290 = vmatpush2.bf16.msra.mxu1 %v7155_v31  ;;  %v7185_v30 = vld [vmem:[%s10674_s5 + $0x320] ss:$16 sps:$4 sm:$0xff]   ;;  %v8830_v31 = vshrl.u32 %v434_v18, 7  ;;  %v763_v18 = vld [vmem:[%s8556_s22 + $0x4b8] sm:$0xff] }
  0xde   : > { %5248 = vmatprep.subr.bf16.mxu0 %v7160_v33  ;;  %5291 = vmatprep.subr.bf16.mxu1 %v7163_v39  ;;  %v7190_v33 = vld [vmem:[%s10674_s5 + $0x104] ss:$16 sps:$4 sm:$0xff]   ;;  %v795_v24 = vadd.f32 %v763_v18, %v731_v12  ;;  %v1067_v18 = vld [vmem:[%s8556_s22 + $0x338] sm:$0xff] }
  0xdf   : > { %v1142_v39 = vld [vmem:[%s8556_s22 + $0x790] sm:$0xff]  ;;  %v444_v44 = vsub.s32 2, %v8830_v31  ;;  %v440_v2 = vsub.s32 1, %v8830_v31  ;;  %v448_v8 = vsub.s32 3, %v8830_v31 }
  0xe0   : > { %v1174_v57 = vadd.f32 %v1142_v39, %v1110_v37  ;;  %v859_v35 = vadd.f32 %v827_v25, %v795_v24  ;;  %v7200_v39 = vld [vmem:[%s10674_s5 + $0x4c0] ss:$16 sps:$4 sm:$0xff]  }
  0xe1   : > { %5249 = vmatpush2.bf16.msra.mxu0 %v7158_v40  ;;  %5292 = vmatpush2.bf16.msra.mxu1 %v7161_v41  ;;  %v713_v40 = vld [vmem:[%s8556_s22 + $0x28] sm:$0xff] }
  0xe2   : > { %5250 = vmatprep.subr.bf16.mxu0 %v7166_v43  ;;  %5293 = vmatprep.subr.bf16.mxu1 %v7169_v54  ;;  %v729_v41 = vld [vmem:[%s8556_s22 + $0x428] sm:$0xff]  ;;  %v436_v43 = vsub.s32 0, %v8830_v31  ;;  %v777_v47 = vadd.f32 %v745_v42, %v713_v40  ;;  %v432_v54 = vld [vmem:[%s10673_s4] sm:$0xf] }
  0xe3   : > { %v8886_v13 = vrot.slane %v432_v54, %v444_v44  ;;  %v8903_v26 = vrot.slane %v432_v54, %v440_v2  ;;  %v8914_v32 = vrot.slane %v432_v54, %v448_v8  ;;  %v7203_v40 = vld [vmem:[%s10674_s5 + $0x6c0] ss:$16 sps:$4 sm:$0xff]   ;;  %v1129_v42 = vld [vmem:[%s8556_s22 + $0x3a8] sm:$0xff] }
  0xe4   : > { %v841_v62 = vadd.f32 %v809_v50, %v777_v47  ;;  %v8875_v6 = vrot.slane %v432_v54, %v436_v43  ;;  %v1145_v50 = vld [vmem:[%s8556_s22 + $0x7a8] sm:$0xff] }
  0xe5   : > { %5251 = vmatpush2.bf16.msra.mxu0 %v7164_v55  ;;  %5294 = vmatpush2.bf16.msra.mxu1 %v7167_v56  ;;  %v1172_v55 = vadd.f32 %v1140_v49, %v1108_v48  ;;  %v1158_v56 = vadd.f32 %v1126_v38, %v1094_v36  ;;  %v875_v49 = vld [vmem:[%s8556_s22 + $0x1b8] sm:$0xff] }
  0xe6   : > { %5252 = vmatprep.subr.bf16.mxu0 %v7172_v58  ;;  %5295 = vmatprep.subr.bf16.mxu1 %v7175_v3  ;;  %v793_v58 = vadd.f32 %v761_v46, %v729_v41  ;;  %v905_v9 = vadd.f32 %v873_v59, %v841_v62  ;;  %v891_v36 = vld [vmem:[%s8556_s22 + $0x5b8] sm:$0xff] }
  0xe7   : > { %v8888_v14 = vpack.c.bf16 %v1172_v55, %v1156_v45 }
  0xe8   : > { %v857_v3 = vadd.f32 %v825_v52, %v793_v58  ;;  %v939_v52 = vld [vmem:[%s8556_s22 + $0x238] sm:$0xff] }
  0xe9   : > { %5253 = vmatpush2.bf16.msra.mxu0 %v7170_v4  ;;  %5296 = vmatpush2.bf16.msra.mxu1 %v7173_v5  ;;  %v937_v4 = vld [vmem:[%s8556_s22 + $0x228] sm:$0xff] }
  0xea   : > { %5254 = vmatprep.subr.bf16.mxu0 %v7178_v7  ;;  %5297 = vmatprep.subr.bf16.mxu1 %v7181_v15  ;;  %v953_v5 = vld [vmem:[%s8556_s22 + $0x628] sm:$0xff]  ;;  %v7194_v7 = vld [vmem:[%s10674_s5 + $0x4e0] ss:$16 sps:$4 sm:$0xff]   ;;  %v8890_v15 = vpack.c.bf16 %v1174_v57, %v1158_v56  ;;  %v969_v21 = vadd.f32 %v937_v4, %v905_v9  ;;  %v7208_v56 = vld [vmem:[%s10674_s5 + $0x4a4] ss:$16 sps:$4 sm:$0xff]  }
  0xeb   : > { %v7211_v57 = vld [vmem:[%s10674_s5 + $0x6a4] ss:$16 sps:$4 sm:$0xff]  }
  0xed   : > { %5255 = vmatpush2.bf16.msra.mxu0 %v7176_v16  ;;  %5298 = vmatpush2.bf16.msra.mxu1 %v7179_v17  ;;  %v921_v16 = vadd.f32 %v889_v63, %v857_v3  ;;  %v747_v17 = vld [vmem:[%s8556_s22 + $0xb8] sm:$0xff] }
  0xee   : > { %5256 = vmatprep.subr.bf16.mxu0 %v7184_v20  ;;  %5299 = vmatprep.subr.bf16.mxu1 %v7187_v28  ;;  %v7197_v20 = vld [vmem:[%s10674_s5 + $0x6e0] ss:$16 sps:$4 sm:$0xff]   ;;  %v779_v23 = vadd.f32 %v747_v17, %v715_v11  ;;  %v7205_v28 = vld [vmem:[%s10674_s5 + $0x6c4] ss:$16 sps:$4 sm:$0xff]   ;;  %v1019_v3 = vld [vmem:[%s8556_s22 + $0x6b8] sm:$0xff] }
  0xef   : > { %v7209_v17 = vld [vmem:[%s10674_s5 + $0x6a0] ss:$16 sps:$4 sm:$0xff]  }
  0xf0   : > { %v843_v48 = vadd.f32 %v811_v19, %v779_v23  ;;  %v1083_v19 = vld [vmem:[%s8556_s22 + $0x738] sm:$0xff] }
  0xf1   : > { %5257 = vmatpush2.bf16.msra.mxu0 %v7182_v29  ;;  %5300 = vmatpush2.bf16.msra.mxu1 %v7185_v30  ;;  %v985_v29 = vadd.f32 %v953_v5, %v921_v16  ;;  %v1065_v30 = vld [vmem:[%s8556_s22 + $0x328] sm:$0xff] }
  0xf2   : > { %5258 = vmatprep.subr.bf16.mxu0 %v7190_v33  ;;  %5301 = vmatprep.subr.bf16.mxu1 %v7193_v34  ;;  %v1033_v33 = vadd.f32 %v1001_v10, %v969_v21  ;;  %v1081_v34 = vld [vmem:[%s8556_s22 + $0x728] sm:$0xff]  ;;  %v907_v59 = vadd.f32 %v875_v49, %v843_v48  ;;  %v7223_v48 = vld [vmem:[%s10674_s5 + $0x664] ss:$16 sps:$4 sm:$0xff]  }
  0xf3   : > { %v1049_v41 = vadd.f32 %v1017_v22, %v985_v29  ;;  %v1147_v29 = vld [vmem:[%s8556_s22 + $0x7b8] sm:$0xff] }
  0xf4   : > { %v1097_v47 = vadd.f32 %v1065_v30, %v1033_v33  ;;  %v971_v10 = vadd.f32 %v939_v52, %v907_v59  ;;  %v7238_v52 = vld [vmem:[%s10674_s5 + $0x404] ss:$16 sps:$4 sm:$0xff]  }
  0xf5   : > { %5259 = vmatpush2.bf16.msra.mxu0 %v7188_v53  ;;  %5302 = vmatpush2.bf16.msra.mxu1 %v7191_v60  ;;  %v955_v53 = vld [vmem:[%s8556_s22 + $0x638] sm:$0xff]  ;;  %v1113_v58 = vadd.f32 %v1081_v34, %v1049_v41  ;;  %v923_v60 = vadd.f32 %v891_v36, %v859_v35  ;;  %v7212_v34 = vld [vmem:[%s10674_s5 + $0x480] ss:$16 sps:$4 sm:$0xff]  }
  0xf6   : > { %5314 = vmatprep.subr.bf16.mxu0 %v7196_v61  ;;  %5357 = vmatprep.subr.bf16.mxu1 %v7199_v0  ;;  %v1161_v63 = vadd.f32 %v1129_v42, %v1097_v47  ;;  %v1003_v0 = vld [vmem:[%s8556_s22 + $0x2b8] sm:$0xff]  ;;  %v7218_v36 = vld [vmem:[%s10674_s5 + $0x460] ss:$16 sps:$4 sm:$0xff]  }
  0xf7   : > { %v1177_v9 = vadd.f32 %v1145_v50, %v1113_v58  ;;  %v987_v11 = vadd.f32 %v955_v53, %v923_v60  ;;  %v1035_v23 = vadd.f32 %v1003_v0, %v971_v10  ;;  %v7224_v41 = vld [vmem:[%s10674_s5 + $0x440] ss:$16 sps:$4 sm:$0xff]   ;;  %v7241_v53 = vld [vmem:[%s10674_s5 + $0x604] ss:$16 sps:$4 sm:$0xff]  }
  0xf8   : > { %v648_v37 = vpop.f32.mrf.mxu0  ;;  %v691_v38 = vpop.f32.mrf.mxu1  ;;  %5261 = vmatmul.mubr.bf16.vlgmr.msra.gmra.mxu0 %v8888_v14  ;;  %5304 = vmatmul.mubr.bf16.vlgmr.msra.gmra.mxu1 %v8890_v15  ;;  %v7227_v42 = vld [vmem:[%s10674_s5 + $0x640] ss:$16 sps:$4 sm:$0xff]   ;;  %v7250_v0 = vld [vmem:[%s10674_s5 + $0x5c4] ss:$16 sps:$4 sm:$0xff]  }
  0xf9   : > { %v649_v45 = vadd.f32 %v648_v37, %v8875_v6  ;;  %v692_v46 = vadd.f32 %v691_v38, %v8886_v13  ;;  %5315 = vmatpush1.bf16.msra.mxu0 %v7194_v7  ;;  %5358 = vmatpush1.bf16.msra.mxu1 %v7197_v20  ;;  %v7206_v7 = vld [vmem:[%s10674_s5 + $0x4a0] ss:$16 sps:$4 sm:$0xff]   ;;  %v8967_v22 = vpack.c.bf16 %v1177_v9, %v1161_v63  ;;  %v7253_v9 = vld [vmem:[%s10674_s5 + $0x7c4] ss:$16 sps:$4 sm:$0xff]  }
  0xfa   : > { %v650_v54 = vpop.f32.mrf.mxu0  ;;  %v693_v55 = vpop.f32.mrf.mxu1  ;;  %5316 = vmatprep.subr.bf16.mxu0 %v7202_v27  ;;  %5359 = vmatprep.subr.bf16.mxu1 %v7205_v28  ;;  %v1051_v24 = vadd.f32 %v1019_v3, %v987_v11  ;;  %v1131_v28 = vld [vmem:[%s8556_s22 + $0x3b8] sm:$0xff]  ;;  %v1099_v30 = vadd.f32 %v1067_v18, %v1035_v23  ;;  %v7221_v38 = vld [vmem:[%s10674_s5 + $0x660] ss:$16 sps:$4 sm:$0xff]   ;;  %v7259_v23 = vld [vmem:[%s10674_s5 + $0x7a4] ss:$16 sps:$4 sm:$0xff]  }
  0xfb   : > { %700 = vst [vmem:[%s8941_s21] sm:$0xff] %v649_v45  ;;  %702 = vst [vmem:[%s8941_s21 + $0x10] sm:$0xff] %v692_v46  ;;  %v651_v61 = vadd.f32 %v650_v54, %v8903_v26  ;;  %v694_v62 = vadd.f32 %v693_v55, %v8914_v32  ;;  %5346 = vmatprep.mubr.bf16.mxu0 %v8967_v22  ;;  %v7232_v45 = vld [vmem:[%s10674_s5 + $0x424] ss:$16 sps:$4 sm:$0xff]   ;;  %v7230_v47 = vld [vmem:[%s10674_s5 + $0x420] ss:$16 sps:$4 sm:$0xff]  }
  0xfc   : > { %v652_v4 = vpop.f32.mrf.mxu0  ;;  %v695_v5 = vpop.f32.mrf.mxu1  ;;  %v1115_v33 = vadd.f32 %v1083_v19, %v1051_v24  ;;  %v1163_v35 = vadd.f32 %v1131_v28, %v1099_v30  ;;  %v7235_v46 = vld [vmem:[%s10674_s5 + $0x624] ss:$16 sps:$4 sm:$0xff]   ;;  %v7233_v50 = vld [vmem:[%s10674_s5 + $0x620] ss:$16 sps:$4 sm:$0xff]  }
  0xfd   : > { %701 = vst [vmem:[%s8941_s21 + $0x8] sm:$0xff] %v651_v61  ;;  %703 = vst [vmem:[%s8941_s21 + $0x18] sm:$0xff] %v694_v62  ;;  %v653_v12 = vadd.f32 %v652_v4, %v8875_v6  ;;  %v696_v16 = vadd.f32 %v695_v5, %v8886_v13  ;;  %5317 = vmatpush1.bf16.msra.mxu0 %v7200_v39  ;;  %5360 = vmatpush1.bf16.msra.mxu1 %v7203_v40  ;;  %v7214_v6 = vld [vmem:[%s10674_s5 + $0x484] ss:$16 sps:$4 sm:$0xff]   ;;  %v7236_v54 = vld [vmem:[%s10674_s5 + $0x400] ss:$16 sps:$4 sm:$0xff]  }
  0xfe   : > { %v654_v20 = vpop.f32.mrf.mxu0  ;;  %v697_v21 = vpop.f32.mrf.mxu1  ;;  %5318 = vmatprep.subr.bf16.mxu0 %v7208_v56  ;;  %5361 = vmatprep.subr.bf16.mxu1 %v7211_v57  ;;  %v7217_v13 = vld [vmem:[%s10674_s5 + $0x684] ss:$16 sps:$4 sm:$0xff]   ;;  %v1179_v49 = vadd.f32 %v1147_v29, %v1115_v33  ;;  %v7239_v55 = vld [vmem:[%s10674_s5 + $0x600] ss:$16 sps:$4 sm:$0xff]  }
  0xff   : > { %704 = vst [vmem:[%s8941_s21 + $0x20] sm:$0xff] %v653_v12  ;;  %706 = vst [vmem:[%s8941_s21 + $0x30] sm:$0xff] %v696_v16  ;;  %v655_v25 = vadd.f32 %v654_v20, %v8903_v26  ;;  %v698_v27 = vadd.f32 %v697_v21, %v8914_v32  ;;  %v7215_v26 = vld [vmem:[%s10674_s5 + $0x680] ss:$16 sps:$4 sm:$0xff]   ;;  %v7220_v32 = vld [vmem:[%s10674_s5 + $0x464] ss:$16 sps:$4 sm:$0xff]  }
 0x100   : > { %v8993_v37 = vpack.c.bf16 %v1179_v49, %v1163_v35  ;;  %v7226_v39 = vld [vmem:[%s10674_s5 + $0x444] ss:$16 sps:$4 sm:$0xff]   ;;  %v7242_v60 = vld [vmem:[%s10674_s5 + $0x5e0] ss:$16 sps:$4 sm:$0xff]  }
 0x101   : > { %705 = vst [vmem:[%s8941_s21 + $0x28] sm:$0xff] %v655_v25  ;;  %707 = vst [vmem:[%s8941_s21 + $0x38] sm:$0xff] %v698_v27  ;;  %5319 = vmatpush1.bf16.msra.mxu0 %v7206_v7  ;;  %5362 = vmatpush1.bf16.msra.mxu1 %v7209_v17  ;;  %v7229_v40 = vld [vmem:[%s10674_s5 + $0x644] ss:$16 sps:$4 sm:$0xff]   ;;  %v7245_v61 = vld [vmem:[%s10674_s5 + $0x7e0] ss:$16 sps:$4 sm:$0xff]  }
 0x102   : > { %5320 = vmatprep.subr.bf16.mxu0 %v7214_v6  ;;  %5363 = vmatprep.subr.bf16.mxu1 %v7217_v13  ;;  %v7244_v56 = vld [vmem:[%s10674_s5 + $0x5e4] ss:$16 sps:$4 sm:$0xff]   ;;  %v7248_v10 = vld [vmem:[%s10674_s5 + $0x5c0] ss:$16 sps:$4 sm:$0xff]   ;;  %s7872_s21 = scalar_lea.vmem %s7871_s28, 2048 }
 0x103   : > { %5389 = vmatprep.mubr.bf16.mxu1 %v8993_v37  ;;  %v7247_v57 = vld [vmem:[%s10674_s5 + $0x7e4] ss:$16 sps:$4 sm:$0xff]   ;;  %v7251_v11 = vld [vmem:[%s10674_s5 + $0x7c0] ss:$16 sps:$4 sm:$0xff]   ;;  %p7874_p1 = scmp.lt.s32.totalorder %s7872_s21, %s7866_s27 }
 0x104   : > { %v712_v58 = vld [vmem:[%s8556_s22 + $0x20] sm:$0xff]  ;;  %v714_v3 = vld [vmem:[%s8556_s22 + $0x30] sm:$0xff] }
 0x105   : > { %5321 = vmatpush1.bf16.msra.mxu0 %v7212_v34  ;;  %5364 = vmatpush1.bf16.msra.mxu1 %v7215_v26  ;;  %v744_v59 = vld [vmem:[%s8556_s22 + $0xa0] sm:$0xff]  ;;  %v730_v4 = vld [vmem:[%s8556_s22 + $0x430] sm:$0xff]  ;;  %p7875_p2 = por %p7874_p1, %p7873_p0 }
 0x106   : > { %5322 = vmatprep.subr.bf16.mxu0 %v7220_v32  ;;  %5365 = vmatprep.subr.bf16.mxu1 %v7223_v48  ;;  %v728_v62 = vld [vmem:[%s8556_s22 + $0x420] sm:$0xff]  ;;  %v746_v5 = vld [vmem:[%s8556_s22 + $0xb0] sm:$0xff]  ;;  %v776_v12 = vadd.f32 %v744_v59, %v712_v58 }
 0x107   : > { %v760_v63 = vld [vmem:[%s8556_s22 + $0x4a0] sm:$0xff]  ;;  %v762_v7 = vld [vmem:[%s8556_s22 + $0x4b0] sm:$0xff]  ;;  %v778_v20 = vadd.f32 %v746_v5, %v714_v3  ;;  %p7876_p3 = pnand %p7875_p2, %p7869_p13 }
 0x108   : > { %v7256_v16 = vld [vmem:[%s10674_s5 + $0x5a4] ss:$16 sps:$4 sm:$0xff]   ;;  %v792_v17 = vadd.f32 %v760_v63, %v728_v62  ;;  %v794_v21 = vadd.f32 %v762_v7, %v730_v4  ;;  %v7254_v24 = vld [vmem:[%s10674_s5 + $0x5a0] ss:$16 sps:$4 sm:$0xff]  }
 0x109   : > { %5323 = vmatpush1.bf16.msra.mxu0 %v7218_v36  ;;  %5366 = vmatpush1.bf16.msra.mxu1 %v7221_v38  ;;  %v808_v18 = vld [vmem:[%s8556_s22 + $0x120] sm:$0xff]  ;;  %v810_v6 = vld [vmem:[%s8556_s22 + $0x130] sm:$0xff] }
 0x10a   : > { %5324 = vmatprep.subr.bf16.mxu0 %v7226_v39  ;;  %5367 = vmatprep.subr.bf16.mxu1 %v7229_v40  ;;  %v824_v19 = vld [vmem:[%s8556_s22 + $0x520] sm:$0xff]  ;;  %v826_v13 = vld [vmem:[%s8556_s22 + $0x530] sm:$0xff]  ;;  %v840_v27 = vadd.f32 %v808_v18, %v776_v12  ;;  %v842_v34 = vadd.f32 %v810_v6, %v778_v20 }
 0x10b   : > { %v7257_v25 = vld [vmem:[%s10674_s5 + $0x7a0] ss:$16 sps:$4 sm:$0xff]   ;;  %v7262_v28 = vld [vmem:[%s10674_s5 + $0x584] ss:$16 sps:$4 sm:$0xff]   ;;  %v856_v29 = vadd.f32 %v824_v19, %v792_v17  ;;  %v858_v26 = vadd.f32 %v826_v13, %v794_v21 }
 0x10c   : > { %v872_v30 = vld [vmem:[%s8556_s22 + $0x1a0] sm:$0xff]  ;;  %v874_v32 = vld [vmem:[%s8556_s22 + $0x1b0] sm:$0xff] }
 0x10d   : > { %5325 = vmatpush1.bf16.msra.mxu0 %v7224_v41  ;;  %5368 = vmatpush1.bf16.msra.mxu1 %v7227_v42  ;;  %v888_v33 = vld [vmem:[%s8556_s22 + $0x5a0] sm:$0xff]  ;;  %v890_v48 = vld [vmem:[%s8556_s22 + $0x5b0] sm:$0xff]  ;;  %v904_v38 = vadd.f32 %v872_v30, %v840_v27 }
 0x10e   : > { %5326 = vmatprep.subr.bf16.mxu0 %v7232_v45  ;;  %5369 = vmatprep.subr.bf16.mxu1 %v7235_v46  ;;  %v7265_v35 = vld [vmem:[%s10674_s5 + $0x784] ss:$16 sps:$4 sm:$0xff]   ;;  %v7260_v49 = vld [vmem:[%s10674_s5 + $0x580] ss:$16 sps:$4 sm:$0xff]   ;;  %v920_v40 = vadd.f32 %v888_v33, %v856_v29  ;;  %v906_v45 = vadd.f32 %v874_v32, %v842_v34  ;;  %v922_v46 = vadd.f32 %v890_v48, %v858_v26  ;;  %v717_v34 = vld [vmem:[%s8556_s22 + $0x48] sm:$0xff] }
 0x10f   : > { %v7263_v36 = vld [vmem:[%s10674_s5 + $0x780] ss:$16 sps:$4 sm:$0xff]   ;;  %v7268_v39 = vld [vmem:[%s10674_s5 + $0x564] ss:$16 sps:$4 sm:$0xff]   ;;  %v733_v26 = vld [vmem:[%s8556_s22 + $0x448] sm:$0xff] }
 0x110   : > { %v936_v41 = vld [vmem:[%s8556_s22 + $0x220] sm:$0xff]  ;;  %v1002_v62 = vld [vmem:[%s8556_s22 + $0x2b0] sm:$0xff]  ;;  %v749_v32 = vld [vmem:[%s8556_s22 + $0xc8] sm:$0xff] }
 0x111   : > { %5327 = vmatpush1.bf16.msra.mxu0 %v7230_v47  ;;  %5370 = vmatpush1.bf16.msra.mxu1 %v7233_v50  ;;  %v952_v42 = vld [vmem:[%s8556_s22 + $0x620] sm:$0xff]  ;;  %v938_v47 = vld [vmem:[%s8556_s22 + $0x230] sm:$0xff] }
 0x112   : > { %5328 = vmatprep.subr.bf16.mxu0 %v7238_v52  ;;  %5371 = vmatprep.subr.bf16.mxu1 %v7241_v53  ;;  %v954_v50 = vld [vmem:[%s8556_s22 + $0x630] sm:$0xff]  ;;  %v1000_v58 = vld [vmem:[%s8556_s22 + $0x2a0] sm:$0xff] }
 0x113   : > { %v7271_v52 = vld [vmem:[%s10674_s5 + $0x764] ss:$16 sps:$4 sm:$0xff]   ;;  %v7266_v53 = vld [vmem:[%s10674_s5 + $0x560] ss:$16 sps:$4 sm:$0xff]  }
 0x114   : > { %v1016_v59 = vld [vmem:[%s8556_s22 + $0x6a0] sm:$0xff]  ;;  %v1018_v63 = vld [vmem:[%s8556_s22 + $0x6b0] sm:$0xff] }
 0x115   : > { %5329 = vmatpush1.bf16.msra.mxu0 %v7236_v54  ;;  %5372 = vmatpush1.bf16.msra.mxu1 %v7239_v55  ;;  %v7269_v54 = vld [vmem:[%s10674_s5 + $0x760] ss:$16 sps:$4 sm:$0xff]   ;;  %v968_v55 = vadd.f32 %v936_v41, %v904_v38  ;;  %v7280_v7 = vld [vmem:[%s10674_s5 + $0x524] ss:$16 sps:$4 sm:$0xff]   ;;  %v829_v38 = vld [vmem:[%s8556_s22 + $0x548] sm:$0xff] }
 0x116   : > { %5330 = vmatprep.subr.bf16.mxu0 %v7244_v56  ;;  %5373 = vmatprep.subr.bf16.mxu1 %v7247_v57  ;;  %v7274_v56 = vld [vmem:[%s10674_s5 + $0x544] ss:$16 sps:$4 sm:$0xff]   ;;  %v984_v57 = vadd.f32 %v952_v42, %v920_v40  ;;  %v7272_v3 = vld [vmem:[%s10674_s5 + $0x540] ss:$16 sps:$4 sm:$0xff]  }
 0x117   : > { %v7275_v4 = vld [vmem:[%s10674_s5 + $0x740] ss:$16 sps:$4 sm:$0xff]   ;;  %v1032_v5 = vadd.f32 %v1000_v58, %v968_v55  ;;  %v7283_v19 = vld [vmem:[%s10674_s5 + $0x724] ss:$16 sps:$4 sm:$0xff]  }
 0x118   : > { %v1066_v17 = vld [vmem:[%s8556_s22 + $0x330] sm:$0xff]  ;;  %v1144_v27 = vld [vmem:[%s8556_s22 + $0x7a0] sm:$0xff] }
 0x119   : > { %5331 = vmatpush2.bf16.msra.mxu0 %v7242_v60  ;;  %5374 = vmatpush2.bf16.msra.mxu1 %v7245_v61  ;;  %v970_v60 = vadd.f32 %v938_v47, %v906_v45  ;;  %v986_v61 = vadd.f32 %v954_v50, %v922_v46  ;;  %v1082_v18 = vld [vmem:[%s8556_s22 + $0x730] sm:$0xff]  ;;  %v877_v46 = vld [vmem:[%s8556_s22 + $0x1c8] sm:$0xff] }
 0x11a   : > { %5332 = vmatprep.subr.bf16.mxu0 %v7250_v0  ;;  %5375 = vmatprep.subr.bf16.mxu1 %v7253_v9  ;;  %v7277_v0 = vld [vmem:[%s10674_s5 + $0x744] ss:$16 sps:$4 sm:$0xff]   ;;  %v1048_v9 = vadd.f32 %v1016_v59, %v984_v57  ;;  %v7278_v20 = vld [vmem:[%s10674_s5 + $0x520] ss:$16 sps:$4 sm:$0xff]   ;;  %v957_v57 = vld [vmem:[%s8556_s22 + $0x648] sm:$0xff] }
 0x11b   : > { %v1034_v12 = vadd.f32 %v1002_v62, %v970_v60  ;;  %v7281_v21 = vld [vmem:[%s10674_s5 + $0x720] ss:$16 sps:$4 sm:$0xff]   ;;  %v7286_v13 = vld [vmem:[%s10674_s5 + $0x504] ss:$16 sps:$4 sm:$0xff]   ;;  %v719_v62 = vld [vmem:[%s8556_s22 + $0x58] sm:$0xff] }
 0x11c   : > { %v1130_v30 = vld [vmem:[%s8556_s22 + $0x3b0] sm:$0xff] }
 0x11d   : > { %5333 = vmatpush2.bf16.msra.mxu0 %v7248_v10  ;;  %5376 = vmatpush2.bf16.msra.mxu1 %v7251_v11  ;;  %v1064_v10 = vld [vmem:[%s8556_s22 + $0x320] sm:$0xff]  ;;  %v1146_v33 = vld [vmem:[%s8556_s22 + $0x7b0] sm:$0xff] }
 0x11e   : > { %5334 = vmatprep.subr.bf16.mxu0 %v7256_v16  ;;  %5377 = vmatprep.subr.bf16.mxu1 %v7259_v23  ;;  %v1080_v11 = vld [vmem:[%s8556_s22 + $0x720] sm:$0xff]  ;;  %v1050_v16 = vadd.f32 %v1018_v63, %v986_v61  ;;  %v1096_v6 = vadd.f32 %v1064_v10, %v1032_v5  ;;  %v1005_v61 = vld [vmem:[%s8556_s22 + $0x2c8] sm:$0xff]  ;;  %v735_v63 = vld [vmem:[%s8556_s22 + $0x458] sm:$0xff] }
 0x11f   : > { %v7289_v23 = vld [vmem:[%s10674_s5 + $0x704] ss:$16 sps:$4 sm:$0xff]   ;;  %v7287_v47 = vld [vmem:[%s10674_s5 + $0x700] ss:$16 sps:$4 sm:$0xff]   ;;  %v751_v5 = vld [vmem:[%s8556_s22 + $0xd8] sm:$0xff] }
 0x120   : > { %v1114_v29 = vadd.f32 %v1082_v18, %v1050_v16  ;;  %v7292_v50 = vld [vmem:[%s10674_s5 + $0x8e4] ss:$16 sps:$4 sm:$0xff]   ;;  %v7290_v58 = vld [vmem:[%s10674_s5 + $0x8e0] ss:$16 sps:$4 sm:$0xff]   ;;  %v783_v16 = vadd.f32 %v751_v5, %v719_v62  ;;  %v831_v18 = vld [vmem:[%s8556_s22 + $0x558] sm:$0xff] }
 0x121   : > { %5335 = vmatpush2.bf16.msra.mxu0 %v7254_v24  ;;  %5378 = vmatpush2.bf16.msra.mxu1 %v7257_v25  ;;  %v1112_v24 = vadd.f32 %v1080_v11, %v1048_v9  ;;  %v1128_v25 = vld [vmem:[%s8556_s22 + $0x3a0] sm:$0xff]  ;;  %v815_v9 = vld [vmem:[%s8556_s22 + $0x158] sm:$0xff] }
 0x122   : > { %5336 = vmatprep.subr.bf16.mxu0 %v7262_v28  ;;  %5379 = vmatprep.subr.bf16.mxu1 %v7265_v35  ;;  %v1098_v28 = vadd.f32 %v1066_v17, %v1034_v12  ;;  %v1160_v48 = vadd.f32 %v1128_v25, %v1096_v6  ;;  %v765_v35 = vld [vmem:[%s8556_s22 + $0x4c8] sm:$0xff]  ;;  %v1178_v42 = vadd.f32 %v1146_v33, %v1114_v29  ;;  %v7293_v59 = vld [vmem:[%s10674_s5 + $0xae0] ss:$16 sps:$4 sm:$0xff]   ;;  %v7298_v10 = vld [vmem:[%s10674_s5 + $0x8c4] ss:$16 sps:$4 sm:$0xff]  }
 0x123   : > { %v1176_v40 = vadd.f32 %v1144_v27, %v1112_v24  ;;  %v797_v45 = vadd.f32 %v765_v35, %v733_v26  ;;  %v1021_v12 = vld [vmem:[%s8556_s22 + $0x6c8] sm:$0xff]  ;;  %v879_v6 = vld [vmem:[%s8556_s22 + $0x1d8] sm:$0xff]  ;;  %v847_v24 = vadd.f32 %v815_v9, %v783_v16  ;;  %v7311_v5 = vld [vmem:[%s10674_s5 + $0xa80] ss:$16 sps:$4 sm:$0xff]  }
 0x124   : > { %v1162_v41 = vadd.f32 %v1130_v30, %v1098_v28  ;;  %v895_v27 = vld [vmem:[%s8556_s22 + $0x5d8] sm:$0xff]  ;;  %v7296_v28 = vld [vmem:[%s10674_s5 + $0x8c0] ss:$16 sps:$4 sm:$0xff]   ;;  %v1133_v30 = vld [vmem:[%s8556_s22 + $0x3c8] sm:$0xff] }
 0x125   : > { %5337 = vmatpush2.bf16.msra.mxu0 %v7260_v49  ;;  %5380 = vmatpush2.bf16.msra.mxu1 %v7263_v36  ;;  %v781_v49 = vadd.f32 %v749_v32, %v717_v34  ;;  %v813_v36 = vld [vmem:[%s8556_s22 + $0x148] sm:$0xff]  ;;  %v861_v55 = vadd.f32 %v829_v38, %v797_v45  ;;  %v943_v33 = vld [vmem:[%s8556_s22 + $0x258] sm:$0xff]  ;;  %v7299_v34 = vld [vmem:[%s10674_s5 + $0xac0] ss:$16 sps:$4 sm:$0xff]  }
 0x126   : > { %5338 = vmatprep.subr.bf16.mxu0 %v7268_v39  ;;  %5381 = vmatprep.subr.bf16.mxu1 %v7271_v52  ;;  %v7284_v39 = vld [vmem:[%s10674_s5 + $0x500] ss:$16 sps:$4 sm:$0xff]   ;;  %v1149_v32 = vld [vmem:[%s8556_s22 + $0x7c8] sm:$0xff]  ;;  %v959_v35 = vld [vmem:[%s8556_s22 + $0x658] sm:$0xff] }
 0x127   : > { %v845_v52 = vadd.f32 %v813_v36, %v781_v49  ;;  %v7304_v49 = vld [vmem:[%s10674_s5 + $0x8a4] ss:$16 sps:$4 sm:$0xff]   ;;  %v1023_v45 = vld [vmem:[%s8556_s22 + $0x6d8] sm:$0xff] }
 0x128   : > { %v7307_v36 = vld [vmem:[%s10674_s5 + $0xaa4] ss:$16 sps:$4 sm:$0xff]   ;;  %v1151_v62 = vld [vmem:[%s8556_s22 + $0x7d8] sm:$0xff] }
 0x129   : > { %5339 = vmatpush2.bf16.msra.mxu0 %v7266_v53  ;;  %5382 = vmatpush2.bf16.msra.mxu1 %v7269_v54  ;;  %v893_v53 = vld [vmem:[%s8556_s22 + $0x5c8] sm:$0xff]  ;;  %v7295_v54 = vld [vmem:[%s10674_s5 + $0xae4] ss:$16 sps:$4 sm:$0xff]   ;;  %v909_v60 = vadd.f32 %v877_v46, %v845_v52  ;;  %v7302_v52 = vld [vmem:[%s10674_s5 + $0x8a0] ss:$16 sps:$4 sm:$0xff]  }
 0x12a   : > { %5340 = vmatprep.subr.bf16.mxu0 %v7274_v56  ;;  %5383 = vmatprep.subr.bf16.mxu1 %v7277_v0  ;;  %v941_v56 = vld [vmem:[%s8556_s22 + $0x248] sm:$0xff]  ;;  %v9188_v0 = vpack.c.bf16 %v1176_v40, %v1160_v48  ;;  %v911_v48 = vadd.f32 %v879_v6, %v847_v24  ;;  %v1007_v40 = vld [vmem:[%s8556_s22 + $0x2d8] sm:$0xff]  ;;  %v7316_v9 = vld [vmem:[%s10674_s5 + $0x864] ss:$16 sps:$4 sm:$0xff]  }
 0x12b   : > { %v973_v11 = vadd.f32 %v941_v56, %v909_v60  ;;  %v7310_v56 = vld [vmem:[%s10674_s5 + $0x884] ss:$16 sps:$4 sm:$0xff]   ;;  %v1135_v60 = vld [vmem:[%s8556_s22 + $0x3d8] sm:$0xff]  ;;  %v7329_v24 = vld [vmem:[%s10674_s5 + $0xa20] ss:$16 sps:$4 sm:$0xff]  }
 0x12c   : > { %v7328_v6 = vld [vmem:[%s10674_s5 + $0x824] ss:$16 sps:$4 sm:$0xff]  }
 0x12d   : > { %5341 = vmatpush2.bf16.msra.mxu0 %v7272_v3  ;;  %5384 = vmatpush2.bf16.msra.mxu1 %v7275_v4  ;;  %v9190_v3 = vpack.c.bf16 %v1178_v42, %v1162_v41  ;;  %v925_v4 = vadd.f32 %v893_v53, %v861_v55  ;;  %v975_v42 = vadd.f32 %v943_v33, %v911_v48  ;;  %v7305_v53 = vld [vmem:[%s10674_s5 + $0xaa0] ss:$16 sps:$4 sm:$0xff]   ;;  %v1087_v55 = vld [vmem:[%s8556_s22 + $0x758] sm:$0xff]  ;;  %v7343_v33 = vld [vmem:[%s10674_s5 + $0xbe4] ss:$16 sps:$4 sm:$0xff]  }
 0x12e   : > { %5342 = vmatprep.subr.bf16.mxu0 %v7280_v7  ;;  %5385 = vmatprep.subr.bf16.mxu1 %v7283_v19  ;;  %v767_v7 = vld [vmem:[%s8556_s22 + $0x4d8] sm:$0xff]  ;;  %v7301_v19 = vld [vmem:[%s10674_s5 + $0xac4] ss:$16 sps:$4 sm:$0xff]   ;;  %v7341_v48 = vld [vmem:[%s10674_s5 + $0xbe0] ss:$16 sps:$4 sm:$0xff]  }
 0x12f   : > { %v799_v17 = vadd.f32 %v767_v7, %v735_v63 }
 0x131   : > { %5343 = vmatpush2.bf16.msra.mxu0 %v7278_v20  ;;  %5386 = vmatpush2.bf16.msra.mxu1 %v7281_v21  ;;  %v989_v20 = vadd.f32 %v957_v57, %v925_v4  ;;  %v1069_v21 = vld [vmem:[%s8556_s22 + $0x348] sm:$0xff]  ;;  %v863_v25 = vadd.f32 %v831_v18, %v799_v17  ;;  %v7313_v57 = vld [vmem:[%s10674_s5 + $0xa84] ss:$16 sps:$4 sm:$0xff]   ;;  %v7308_v4 = vld [vmem:[%s10674_s5 + $0x880] ss:$16 sps:$4 sm:$0xff]  }
 0x132   : > { %5344 = vmatprep.subr.bf16.mxu0 %v7286_v13  ;;  %5387 = vmatprep.subr.bf16.mxu1 %v7289_v23  ;;  %v1037_v13 = vadd.f32 %v1005_v61, %v973_v11  ;;  %v1085_v23 = vld [vmem:[%s8556_s22 + $0x748] sm:$0xff]  ;;  %v7317_v17 = vld [vmem:[%s10674_s5 + $0xa60] ss:$16 sps:$4 sm:$0xff]   ;;  %v7322_v18 = vld [vmem:[%s10674_s5 + $0x844] ss:$16 sps:$4 sm:$0xff]  }
 0x133   : > { %v1053_v29 = vadd.f32 %v1021_v12, %v989_v20  ;;  %v7314_v12 = vld [vmem:[%s10674_s5 + $0x860] ss:$16 sps:$4 sm:$0xff]  }
 0x134   : > { %v1101_v26 = vadd.f32 %v1069_v21, %v1037_v13  ;;  %v7320_v20 = vld [vmem:[%s10674_s5 + $0x840] ss:$16 sps:$4 sm:$0xff]   ;;  %v7331_v13 = vld [vmem:[%s10674_s5 + $0xa24] ss:$16 sps:$4 sm:$0xff]  }
 0x135   : > { %5345 = vmatpush2.bf16.msra.mxu0 %v7284_v39  ;;  %5388 = vmatpush2.bf16.msra.mxu1 %v7287_v47  ;;  %v1117_v38 = vadd.f32 %v1085_v23, %v1053_v29  ;;  %v927_v39 = vadd.f32 %v895_v27, %v863_v25  ;;  %v7323_v21 = vld [vmem:[%s10674_s5 + $0xa40] ss:$16 sps:$4 sm:$0xff]   ;;  %v7334_v25 = vld [vmem:[%s10674_s5 + $0x804] ss:$16 sps:$4 sm:$0xff]  }
 0x136   : > { %5400 = vmatprep.subr.bf16.mxu0 %v7292_v50  ;;  %5443 = vmatprep.subr.bf16.mxu1 %v7295_v54  ;;  %v1165_v41 = vadd.f32 %v1133_v30, %v1101_v26  ;;  %v1071_v50 = vld [vmem:[%s8556_s22 + $0x358] sm:$0xff]  ;;  %v1039_v54 = vadd.f32 %v1007_v40, %v975_v42  ;;  %v7326_v23 = vld [vmem:[%s10674_s5 + $0x820] ss:$16 sps:$4 sm:$0xff]   ;;  %v7337_v27 = vld [vmem:[%s10674_s5 + $0xa04] ss:$16 sps:$4 sm:$0xff]  }
 0x137   : > { %v1181_v46 = vadd.f32 %v1149_v32, %v1117_v38  ;;  %v991_v47 = vadd.f32 %v959_v35, %v927_v39  ;;  %v7335_v29 = vld [vmem:[%s10674_s5 + $0xa00] ss:$16 sps:$4 sm:$0xff]   ;;  %v7340_v30 = vld [vmem:[%s10674_s5 + $0x9e4] ss:$16 sps:$4 sm:$0xff]  }
 0x138   : > { %5347 = vmatmul.mubr.bf16.vlgmr.msra.gmra.mxu0 %v9188_v0  ;;  %5390 = vmatmul.mubr.bf16.vlgmr.msra.gmra.mxu1 %v9190_v3  ;;  %v1103_v61 = vadd.f32 %v1071_v50, %v1039_v54  ;;  %v748_v26 = vld [vmem:[%s8556_s22 + $0xc0] sm:$0xff]  ;;  %v718_v38 = vld [vmem:[%s8556_s22 + $0x50] sm:$0xff] }
 0x139   : > { %5401 = vmatpush1.bf16.msra.mxu0 %v7290_v58  ;;  %5444 = vmatpush1.bf16.msra.mxu1 %v7293_v59  ;;  %v9241_v58 = vpack.c.bf16 %v1181_v46, %v1165_v41  ;;  %v1055_v59 = vadd.f32 %v1023_v45, %v991_v47  ;;  %v7338_v32 = vld [vmem:[%s10674_s5 + $0x9e0] ss:$16 sps:$4 sm:$0xff]   ;;  %v7349_v42 = vld [vmem:[%s10674_s5 + $0xbc4] ss:$16 sps:$4 sm:$0xff]  }
 0x13a   : > { %5402 = vmatprep.subr.bf16.mxu0 %v7298_v10  ;;  %5445 = vmatprep.subr.bf16.mxu1 %v7301_v19  ;;  %v1167_v7 = vadd.f32 %v1135_v60, %v1103_v61  ;;  %v7319_v10 = vld [vmem:[%s10674_s5 + $0xa64] ss:$16 sps:$4 sm:$0xff]   ;;  %v7344_v45 = vld [vmem:[%s10674_s5 + $0x9c0] ss:$16 sps:$4 sm:$0xff]  }
 0x13b   : > { %5432 = vmatprep.mubr.bf16.mxu0 %v9241_v58  ;;  %v1119_v63 = vadd.f32 %v1087_v55, %v1055_v59  ;;  %v7325_v19 = vld [vmem:[%s10674_s5 + $0xa44] ss:$16 sps:$4 sm:$0xff]   ;;  %v7347_v46 = vld [vmem:[%s10674_s5 + $0xbc0] ss:$16 sps:$4 sm:$0xff]  }
 0x13c   : > { %v732_v35 = vld [vmem:[%s8556_s22 + $0x440] sm:$0xff]  ;;  %v734_v39 = vld [vmem:[%s8556_s22 + $0x450] sm:$0xff] }
 0x13d   : > { %5403 = vmatpush1.bf16.msra.mxu0 %v7296_v28  ;;  %5446 = vmatpush1.bf16.msra.mxu1 %v7299_v34  ;;  %v1183_v11 = vadd.f32 %v1151_v62, %v1119_v63  ;;  %v7332_v28 = vld [vmem:[%s10674_s5 + $0x800] ss:$16 sps:$4 sm:$0xff]   ;;  %v7352_v50 = vld [vmem:[%s10674_s5 + $0x9a4] ss:$16 sps:$4 sm:$0xff]  }
 0x13e   : > { %5404 = vmatprep.subr.bf16.mxu0 %v7304_v49  ;;  %5447 = vmatprep.subr.bf16.mxu1 %v7307_v36  ;;  %v716_v34 = vld [vmem:[%s8556_s22 + $0x40] sm:$0xff]  ;;  %v750_v40 = vld [vmem:[%s8556_s22 + $0xd0] sm:$0xff] }
 0x13f   : > { %v9261_v16 = vpack.c.bf16 %v1183_v11, %v1167_v7  ;;  %v764_v49 = vld [vmem:[%s8556_s22 + $0x4c0] sm:$0xff]  ;;  %v766_v41 = vld [vmem:[%s8556_s22 + $0x4d0] sm:$0xff]  ;;  %v780_v47 = vadd.f32 %v748_v26, %v716_v34  ;;  %v782_v55 = vadd.f32 %v750_v40, %v718_v38 }
 0x140   : > { %v7346_v36 = vld [vmem:[%s10674_s5 + $0x9c4] ss:$16 sps:$4 sm:$0xff]   ;;  %v7350_v61 = vld [vmem:[%s10674_s5 + $0x9a0] ss:$16 sps:$4 sm:$0xff]  }
 0x141   : > { %5405 = vmatpush1.bf16.msra.mxu0 %v7302_v52  ;;  %5448 = vmatpush1.bf16.msra.mxu1 %v7305_v53  ;;  %v796_v52 = vadd.f32 %v764_v49, %v732_v35  ;;  %v812_v53 = vld [vmem:[%s8556_s22 + $0x140] sm:$0xff]  ;;  %v830_v59 = vld [vmem:[%s8556_s22 + $0x550] sm:$0xff] }
 0x142   : > { %5406 = vmatprep.subr.bf16.mxu0 %v7310_v56  ;;  %5449 = vmatprep.subr.bf16.mxu1 %v7313_v57  ;;  %v828_v54 = vld [vmem:[%s8556_s22 + $0x540] sm:$0xff]  ;;  %v798_v56 = vadd.f32 %v766_v41, %v734_v39  ;;  %v814_v57 = vld [vmem:[%s8556_s22 + $0x150] sm:$0xff]  ;;  %v844_v63 = vadd.f32 %v812_v53, %v780_v47 }
 0x143   : > { %5475 = vmatprep.mubr.bf16.mxu1 %v9261_v16  ;;  %v7355_v60 = vld [vmem:[%s10674_s5 + $0xba4] ss:$16 sps:$4 sm:$0xff]   ;;  %v7353_v62 = vld [vmem:[%s10674_s5 + $0xba0] ss:$16 sps:$4 sm:$0xff]  }
 0x144   : > { %v876_v7 = vld [vmem:[%s8556_s22 + $0x1c0] sm:$0xff]  ;;  %v862_v11 = vadd.f32 %v830_v59, %v798_v56  ;;  %v1006_v39 = vld [vmem:[%s8556_s22 + $0x2d0] sm:$0xff]  ;;  %v9406_v59 = vpop.f32.mrf.mxu0 }
 0x145   : > { %5407 = vmatpush1.bf16.msra.mxu0 %v7308_v4  ;;  %5450 = vmatpush1.bf16.msra.mxu1 %v7311_v5  ;;  %v7358_v4 = vld [vmem:[%s10674_s5 + $0x984] ss:$16 sps:$4 sm:$0xff]   ;;  %v860_v5 = vadd.f32 %v828_v54, %v796_v52  ;;  %v7365_v34 = vld [vmem:[%s10674_s5 + $0xb60] ss:$16 sps:$4 sm:$0xff]  }
 0x146   : > { %5408 = vmatprep.subr.bf16.mxu0 %v7316_v9  ;;  %5451 = vmatprep.subr.bf16.mxu1 %v7319_v10  ;;  %v892_v9 = vld [vmem:[%s8556_s22 + $0x5c0] sm:$0xff]  ;;  %v846_v10 = vadd.f32 %v814_v57, %v782_v55  ;;  %v1022_v40 = vld [vmem:[%s8556_s22 + $0x6d0] sm:$0xff] }
 0x147   : > { %v1004_v35 = vld [vmem:[%s8556_s22 + $0x2c0] sm:$0xff]  ;;  %v1070_v56 = vld [vmem:[%s8556_s22 + $0x350] sm:$0xff] }
 0x148   : > { %v1020_v49 = vld [vmem:[%s8556_s22 + $0x6c0] sm:$0xff]  ;;  %v1086_v57 = vld [vmem:[%s8556_s22 + $0x750] sm:$0xff] }
 0x149   : > { %5409 = vmatpush1.bf16.msra.mxu0 %v7314_v12  ;;  %5452 = vmatpush1.bf16.msra.mxu1 %v7317_v17  ;;  %v878_v12 = vld [vmem:[%s8556_s22 + $0x1d0] sm:$0xff]  ;;  %v1068_v52 = vld [vmem:[%s8556_s22 + $0x340] sm:$0xff] }
 0x14a   : > { %5410 = vmatprep.subr.bf16.mxu0 %v7322_v18  ;;  %5453 = vmatprep.subr.bf16.mxu1 %v7325_v19  ;;  %v894_v17 = vld [vmem:[%s8556_s22 + $0x5d0] sm:$0xff]  ;;  %v1084_v53 = vld [vmem:[%s8556_s22 + $0x740] sm:$0xff] }
 0x14b   : > { %v7361_v18 = vld [vmem:[%s10674_s5 + $0xb84] ss:$16 sps:$4 sm:$0xff]   ;;  %v7356_v19 = vld [vmem:[%s10674_s5 + $0x980] ss:$16 sps:$4 sm:$0xff]  }
 0x14c   : > { %v7373_v41 = vld [vmem:[%s10674_s5 + $0xb44] ss:$16 sps:$4 sm:$0xff]  }
 0x14d   : > { %5411 = vmatpush1.bf16.msra.mxu0 %v7320_v20  ;;  %5454 = vmatpush1.bf16.msra.mxu1 %v7323_v21  ;;  %v7359_v20 = vld [vmem:[%s10674_s5 + $0xb80] ss:$16 sps:$4 sm:$0xff]   ;;  %v908_v21 = vadd.f32 %v876_v7, %v844_v63  ;;  %v7376_v47 = vld [vmem:[%s10674_s5 + $0x924] ss:$16 sps:$4 sm:$0xff]  }
 0x14e   : > { %5412 = vmatprep.subr.bf16.mxu0 %v7328_v6  ;;  %5455 = vmatprep.subr.bf16.mxu1 %v7331_v13  ;;  %v7364_v6 = vld [vmem:[%s10674_s5 + $0x964] ss:$16 sps:$4 sm:$0xff]   ;;  %v924_v13 = vadd.f32 %v892_v9, %v860_v5  ;;  %v7377_v63 = vld [vmem:[%s10674_s5 + $0xb20] ss:$16 sps:$4 sm:$0xff]  }
 0x14f   : > { %v7382_v5 = vld [vmem:[%s10674_s5 + $0x904] ss:$16 sps:$4 sm:$0xff]  }
 0x150   : > { %v7385_v7 = vld [vmem:[%s10674_s5 + $0xb04] ss:$16 sps:$4 sm:$0xff]  }
 0x151   : > { %5413 = vmatpush1.bf16.msra.mxu0 %v7326_v23  ;;  %5456 = vmatpush1.bf16.msra.mxu1 %v7329_v24  ;;  %v940_v23 = vld [vmem:[%s8556_s22 + $0x240] sm:$0xff] }
 0x152   : > { %5414 = vmatprep.subr.bf16.mxu0 %v7334_v25  ;;  %5457 = vmatprep.subr.bf16.mxu1 %v7337_v27  ;;  %v956_v24 = vld [vmem:[%s8556_s22 + $0x640] sm:$0xff]  ;;  %v910_v25 = vadd.f32 %v878_v12, %v846_v10  ;;  %v926_v27 = vadd.f32 %v894_v17, %v862_v11  ;;  %v972_v26 = vadd.f32 %v940_v23, %v908_v21  ;;  %v753_v23 = vld [vmem:[%s8556_s22 + $0xe8] sm:$0xff] }
 0x153   : > { %v1132_v10 = vld [vmem:[%s8556_s22 + $0x3c0] sm:$0xff] }
 0x154   : > { %v1148_v11 = vld [vmem:[%s8556_s22 + $0x7c0] sm:$0xff] }
 0x155   : > { %5415 = vmatpush1.bf16.msra.mxu0 %v7332_v28  ;;  %5458 = vmatpush1.bf16.msra.mxu1 %v7335_v29  ;;  %v942_v28 = vld [vmem:[%s8556_s22 + $0x250] sm:$0xff] }
 0x156   : > { %5416 = vmatprep.subr.bf16.mxu0 %v7340_v30  ;;  %5459 = vmatprep.subr.bf16.mxu1 %v7343_v33  ;;  %v958_v29 = vld [vmem:[%s8556_s22 + $0x650] sm:$0xff] }
 0x157   : > { %v7367_v30 = vld [vmem:[%s10674_s5 + $0xb64] ss:$16 sps:$4 sm:$0xff]   ;;  %v7362_v33 = vld [vmem:[%s10674_s5 + $0x960] ss:$16 sps:$4 sm:$0xff]   ;;  %v990_v38 = vadd.f32 %v958_v29, %v926_v27  ;;  %v833_v29 = vld [vmem:[%s8556_s22 + $0x568] sm:$0xff] }
 0x159   : > { %5417 = vmatpush2.bf16.msra.mxu0 %v7338_v32  ;;  %5460 = vmatpush2.bf16.msra.mxu1 %v7341_v48  ;;  %v7370_v32 = vld [vmem:[%s10674_s5 + $0x944] ss:$16 sps:$4 sm:$0xff]   ;;  %v988_v48 = vadd.f32 %v956_v24, %v924_v13  ;;  %v1054_v55 = vadd.f32 %v1022_v40, %v990_v38  ;;  %v737_v13 = vld [vmem:[%s8556_s22 + $0x468] sm:$0xff] }
 0x15a   : > { %5418 = vmatprep.subr.bf16.mxu0 %v7346_v36  ;;  %5461 = vmatprep.subr.bf16.mxu1 %v7349_v42  ;;  %v974_v36 = vadd.f32 %v942_v28, %v910_v25  ;;  %v7368_v42 = vld [vmem:[%s10674_s5 + $0x940] ss:$16 sps:$4 sm:$0xff]   ;;  %v769_v25 = vld [vmem:[%s8556_s22 + $0x4e8] sm:$0xff] }
 0x15b   : > { %v1118_v17 = vadd.f32 %v1086_v57, %v1054_v55  ;;  %v817_v28 = vld [vmem:[%s8556_s22 + $0x168] sm:$0xff]  ;;  %v739_v55 = vld [vmem:[%s8556_s22 + $0x478] sm:$0xff] }
 0x15c   : > { %v1038_v54 = vadd.f32 %v1006_v39, %v974_v36  ;;  %v897_v38 = vld [vmem:[%s8556_s22 + $0x5e8] sm:$0xff] }
 0x15d   : > { %5419 = vmatpush2.bf16.msra.mxu0 %v7344_v45  ;;  %5462 = vmatpush2.bf16.msra.mxu1 %v7347_v46  ;;  %v7371_v45 = vld [vmem:[%s10674_s5 + $0xb40] ss:$16 sps:$4 sm:$0xff]   ;;  %v1036_v46 = vadd.f32 %v1004_v35, %v972_v26 }
 0x15e   : > { %5420 = vmatprep.subr.bf16.mxu0 %v7352_v50  ;;  %5463 = vmatprep.subr.bf16.mxu1 %v7355_v60  ;;  %v1052_v50 = vadd.f32 %v1020_v49, %v988_v48  ;;  %v9408_v60 = vpop.f32.mrf.mxu1  ;;  %v1102_v12 = vadd.f32 %v1070_v56, %v1038_v54  ;;  %v881_v48 = vld [vmem:[%s8556_s22 + $0x1e8] sm:$0xff]  ;;  %v7383_v35 = vld [vmem:[%s10674_s5 + $0xb00] ss:$16 sps:$4 sm:$0xff]   ;;  %v7388_v49 = vld [vmem:[%s10674_s5 + $0xce4] ss:$16 sps:$4 sm:$0xff]  }
 0x15f   : > { %v723_v54 = vld [vmem:[%s8556_s22 + $0x78] sm:$0xff] }
 0x160   : > { %v1116_v9 = vadd.f32 %v1084_v53, %v1052_v50  ;;  %v9431_v21 = vpop.f32.mrf.mxu1  ;;  %v7389_v50 = vld [vmem:[%s10674_s5 + $0xee0] ss:$16 sps:$4 sm:$0xff]   ;;  %v1009_v53 = vld [vmem:[%s8556_s22 + $0x2e8] sm:$0xff] }
 0x161   : > { %5421 = vmatpush2.bf16.msra.mxu0 %v7350_v61  ;;  %5464 = vmatpush2.bf16.msra.mxu1 %v7353_v62  ;;  %v7379_v61 = vld [vmem:[%s10674_s5 + $0xb24] ss:$16 sps:$4 sm:$0xff]   ;;  %v7374_v62 = vld [vmem:[%s10674_s5 + $0x920] ss:$16 sps:$4 sm:$0xff]  }
 0x162   : > { %5422 = vmatprep.subr.bf16.mxu0 %v7358_v4  ;;  %5465 = vmatprep.subr.bf16.mxu1 %v7361_v18  ;;  %v1100_v4 = vadd.f32 %v1068_v52, %v1036_v46  ;;  %v1134_v18 = vld [vmem:[%s8556_s22 + $0x3d0] sm:$0xff]  ;;  %v9452_v40 = vpop.f32.mrf.mxu1  ;;  %v961_v46 = vld [vmem:[%s8556_s22 + $0x668] sm:$0xff] }
 0x164   : > { %v1164_v24 = vadd.f32 %v1132_v10, %v1100_v4  ;;  %v819_v4 = vld [vmem:[%s8556_s22 + $0x178] sm:$0xff] }
 0x165   : > { %5423 = vmatpush2.bf16.msra.mxu0 %v7356_v19  ;;  %5466 = vmatpush2.bf16.msra.mxu1 %v7359_v20  ;;  %v1150_v19 = vld [vmem:[%s8556_s22 + $0x7d0] sm:$0xff]  ;;  %v9429_v20 = vpop.f32.mrf.mxu0 }
 0x166   : > { %5424 = vmatprep.subr.bf16.mxu0 %v7364_v6  ;;  %5467 = vmatprep.subr.bf16.mxu1 %v7367_v30  ;;  %v721_v6 = vld [vmem:[%s8556_s22 + $0x68] sm:$0xff]  ;;  %v7380_v30 = vld [vmem:[%s10674_s5 + $0x900] ss:$16 sps:$4 sm:$0xff]   ;;  %v1182_v26 = vadd.f32 %v1150_v19, %v1118_v17  ;;  %v7397_v19 = vld [vmem:[%s10674_s5 + $0xec4] ss:$16 sps:$4 sm:$0xff]  }
 0x167   : > { %v785_v27 = vadd.f32 %v753_v23, %v721_v6  ;;  %v9450_v39 = vpop.f32.mrf.mxu0  ;;  %v883_v23 = vld [vmem:[%s8556_s22 + $0x1f8] sm:$0xff] }
 0x169   : > { %5425 = vmatpush2.bf16.msra.mxu0 %v7362_v33  ;;  %5468 = vmatpush2.bf16.msra.mxu1 %v7365_v34  ;;  %v1180_v33 = vadd.f32 %v1148_v11, %v1116_v9  ;;  %v1166_v34 = vadd.f32 %v1134_v18, %v1102_v12  ;;  %v849_v36 = vadd.f32 %v817_v28, %v785_v27  ;;  %v1025_v9 = vld [vmem:[%s8556_s22 + $0x6e8] sm:$0xff]  ;;  %v835_v12 = vld [vmem:[%s8556_s22 + $0x578] sm:$0xff]  ;;  %v9480_v17 = vpop.f32.mrf.mxu0  ;;  %v9482_v18 = vpop.f32.mrf.mxu1 }
 0x16a   : > { %5426 = vmatprep.subr.bf16.mxu0 %v7370_v32  ;;  %5469 = vmatprep.subr.bf16.mxu1 %v7373_v41  ;;  %v801_v32 = vadd.f32 %v769_v25, %v737_v13  ;;  %v7391_v41 = vld [vmem:[%s10674_s5 + $0xee4] ss:$16 sps:$4 sm:$0xff]   ;;  %v1073_v13 = vld [vmem:[%s8556_s22 + $0x368] sm:$0xff] }
 0x16b   : > { %v913_v52 = vadd.f32 %v881_v48, %v849_v36  ;;  %v9468_v56 = vpack.c.bf16 %v1180_v33, %v1164_v24  ;;  %v9470_v57 = vpack.c.bf16 %v1182_v26, %v1166_v34  ;;  %v1089_v25 = vld [vmem:[%s8556_s22 + $0x768] sm:$0xff]  ;;  %v7392_v34 = vld [vmem:[%s10674_s5 + $0xcc0] ss:$16 sps:$4 sm:$0xff]   ;;  %v947_v48 = vld [vmem:[%s8556_s22 + $0x278] sm:$0xff] }
 0x16d   : > { %5427 = vmatpush2.bf16.msra.mxu0 %v7368_v42  ;;  %5470 = vmatpush2.bf16.msra.mxu1 %v7371_v45  ;;  %v865_v42 = vadd.f32 %v833_v29, %v801_v32  ;;  %v945_v45 = vld [vmem:[%s8556_s22 + $0x268] sm:$0xff]  ;;  %v899_v29 = vld [vmem:[%s8556_s22 + $0x5f8] sm:$0xff] }
 0x16e   : > { %5428 = vmatprep.subr.bf16.mxu0 %v7376_v47  ;;  %5471 = vmatprep.subr.bf16.mxu1 %v7379_v61  ;;  %v7386_v47 = vld [vmem:[%s10674_s5 + $0xce0] ss:$16 sps:$4 sm:$0xff]   ;;  %v1137_v32 = vld [vmem:[%s8556_s22 + $0x3e8] sm:$0xff] }
 0x16f   : > { %v929_v61 = vadd.f32 %v897_v38, %v865_v42  ;;  %v1153_v38 = vld [vmem:[%s8556_s22 + $0x7e8] sm:$0xff]  ;;  %v963_v42 = vld [vmem:[%s8556_s22 + $0x678] sm:$0xff] }
 0x171   : > { %5429 = vmatpush2.bf16.msra.mxu0 %v7374_v62  ;;  %5472 = vmatpush2.bf16.msra.mxu1 %v7377_v63  ;;  %v755_v62 = vld [vmem:[%s8556_s22 + $0xf8] sm:$0xff]  ;;  %v993_v6 = vadd.f32 %v961_v46, %v929_v61 }
 0x172   : > { %5430 = vmatprep.subr.bf16.mxu0 %v7382_v5  ;;  %5473 = vmatprep.subr.bf16.mxu1 %v7385_v7  ;;  %v771_v63 = vld [vmem:[%s8556_s22 + $0x4f8] sm:$0xff]  ;;  %v7394_v5 = vld [vmem:[%s10674_s5 + $0xcc4] ss:$16 sps:$4 sm:$0xff]   ;;  %v977_v7 = vadd.f32 %v945_v45, %v913_v52  ;;  %v787_v10 = vadd.f32 %v755_v62, %v723_v54 }
 0x173   : > { %v803_v11 = vadd.f32 %v771_v63, %v739_v55  ;;  %v1057_v26 = vadd.f32 %v1025_v9, %v993_v6  ;;  %v7400_v52 = vld [vmem:[%s10674_s5 + $0xca4] ss:$16 sps:$4 sm:$0xff]   ;;  %v1011_v54 = vld [vmem:[%s8556_s22 + $0x2f8] sm:$0xff] }
 0x174   : > { %v1041_v24 = vadd.f32 %v1009_v53, %v977_v7  ;;  %v851_v27 = vadd.f32 %v819_v4, %v787_v10  ;;  %v1027_v63 = vld [vmem:[%s8556_s22 + $0x6f8] sm:$0xff] }
 0x175   : > { %5431 = vmatpush2.bf16.msra.mxu0 %v7380_v30  ;;  %5474 = vmatpush2.bf16.msra.mxu1 %v7383_v35  ;;  %v867_v28 = vadd.f32 %v835_v12, %v803_v11  ;;  %v1075_v10 = vld [vmem:[%s8556_s22 + $0x378] sm:$0xff]  ;;  %v7398_v12 = vld [vmem:[%s10674_s5 + $0xca0] ss:$16 sps:$4 sm:$0xff]  }
 0x176   : > { %5486 = vmatprep.subr.bf16.mxu0 %v7388_v49  ;;  %5529 = vmatprep.subr.bf16.mxu1 %v7391_v41  ;;  %v7395_v49 = vld [vmem:[%s10674_s5 + $0xec0] ss:$16 sps:$4 sm:$0xff]   ;;  %v1105_v36 = vadd.f32 %v1073_v13, %v1041_v24  ;;  %v915_v41 = vadd.f32 %v883_v23, %v851_v27  ;;  %v1091_v13 = vld [vmem:[%s8556_s22 + $0x778] sm:$0xff]  ;;  %v7409_v27 = vld [vmem:[%s10674_s5 + $0xe84] ss:$16 sps:$4 sm:$0xff]  }
 0x177   : > { %v931_v53 = vadd.f32 %v899_v29, %v867_v28 }
 0x178   : > { %v2616_v30 = vpop.f32.mrf.mxu0  ;;  %v2659_v33 = vpop.f32.mrf.mxu1  ;;  %5433 = vmatmul.mubr.bf16.vlgmr.msra.gmra.mxu0 %v9468_v56  ;;  %5476 = vmatmul.mubr.bf16.vlgmr.msra.gmra.mxu1 %v9470_v57  ;;  %v1169_v61 = vadd.f32 %v1137_v32, %v1105_v36  ;;  %v979_v62 = vadd.f32 %v947_v48, %v915_v41  ;;  %v7404_v48 = vld [vmem:[%s10674_s5 + $0xc80] ss:$16 sps:$4 sm:$0xff]   ;;  %v7415_v41 = vld [vmem:[%s10674_s5 + $0xe64] ss:$16 sps:$4 sm:$0xff]  }
 0x179   : > { %v9498_v35 = vadd.f32 %v2659_v33, %v2616_v30  ;;  %5487 = vmatpush1.bf16.msra.mxu0 %v7386_v47  ;;  %5530 = vmatpush1.bf16.msra.mxu1 %v7389_v50  ;;  %v7403_v47 = vld [vmem:[%s10674_s5 + $0xea4] ss:$16 sps:$4 sm:$0xff]   ;;  %v1121_v50 = vadd.f32 %v1089_v25, %v1057_v26  ;;  %v995_v9 = vadd.f32 %v963_v42, %v931_v53  ;;  %v1139_v30 = vld [vmem:[%s8556_s22 + $0x3f8] sm:$0xff]  ;;  %v7416_v53 = vld [vmem:[%s10674_s5 + $0xc40] ss:$16 sps:$4 sm:$0xff]  }
 0x17a   : > { %v2618_v45 = vpop.f32.mrf.mxu0  ;;  %v2661_v46 = vpop.f32.mrf.mxu1  ;;  %5488 = vmatprep.subr.bf16.mxu0 %v7394_v5  ;;  %5531 = vmatprep.subr.bf16.mxu1 %v7397_v19  ;;  %v7401_v19 = vld [vmem:[%s10674_s5 + $0xea0] ss:$16 sps:$4 sm:$0xff]   ;;  %v1043_v6 = vadd.f32 %v1011_v54, %v979_v62  ;;  %v7406_v25 = vld [vmem:[%s10674_s5 + $0xc84] ss:$16 sps:$4 sm:$0xff]   ;;  %v1155_v26 = vld [vmem:[%s8556_s22 + $0x7f8] sm:$0xff] }
 0x17b   : > { %v9512_v55 = vadd.f32 %v2661_v46, %v2618_v45  ;;  %v1185_v7 = vadd.f32 %v1153_v38, %v1121_v50  ;;  %v1059_v29 = vadd.f32 %v1027_v63, %v995_v9  ;;  %v7412_v38 = vld [vmem:[%s10674_s5 + $0xc64] ss:$16 sps:$4 sm:$0xff]   ;;  %v7410_v45 = vld [vmem:[%s10674_s5 + $0xc60] ss:$16 sps:$4 sm:$0xff]  }
 0x17c   : > { %v2620_v4 = vpop.f32.mrf.mxu0  ;;  %v2663_v5 = vpop.f32.mrf.mxu1  ;;  %v7421_v50 = vld [vmem:[%s10674_s5 + $0xe44] ss:$16 sps:$4 sm:$0xff]   ;;  %v7419_v54 = vld [vmem:[%s10674_s5 + $0xe40] ss:$16 sps:$4 sm:$0xff]  }
 0x17d   : > { %v9516_v11 = vadd.f32 %v2663_v5, %v2620_v4  ;;  %5489 = vmatpush1.bf16.msra.mxu0 %v7392_v34  ;;  %5532 = vmatpush1.bf16.msra.mxu1 %v7395_v49  ;;  %v9531_v28 = vpack.c.bf16 %v1185_v7, %v1169_v61  ;;  %v1107_v34 = vadd.f32 %v1075_v10, %v1043_v6  ;;  %v7407_v49 = vld [vmem:[%s10674_s5 + $0xe80] ss:$16 sps:$4 sm:$0xff]   ;;  %v7424_v61 = vld [vmem:[%s10674_s5 + $0xc24] ss:$16 sps:$4 sm:$0xff]  }
 0x17e   : > { %v2622_v23 = vpop.f32.mrf.mxu0  ;;  %v2665_v24 = vpop.f32.mrf.mxu1  ;;  %5490 = vmatprep.subr.bf16.mxu0 %v7400_v52  ;;  %5533 = vmatprep.subr.bf16.mxu1 %v7403_v47  ;;  %v1123_v32 = vadd.f32 %v1091_v13, %v1059_v29  ;;  %v7413_v52 = vld [vmem:[%s10674_s5 + $0xe60] ss:$16 sps:$4 sm:$0xff]   ;;  %v7418_v47 = vld [vmem:[%s10674_s5 + $0xc44] ss:$16 sps:$4 sm:$0xff]  }
 0x17f   : > { %v9534_v33 = vadd.f32 %v2665_v24, %v2622_v23  ;;  %5518 = vmatprep.mubr.bf16.mxu0 %v9531_v28  ;;  %v1171_v36 = vadd.f32 %v1139_v30, %v1107_v34  ;;  %v7427_v62 = vld [vmem:[%s10674_s5 + $0xe24] ss:$16 sps:$4 sm:$0xff]   ;;  %v7422_v63 = vld [vmem:[%s10674_s5 + $0xc20] ss:$16 sps:$4 sm:$0xff]  }
 0x180   : > { %v1187_v42 = vadd.f32 %v1155_v26, %v1123_v32  ;;  %v7425_v4 = vld [vmem:[%s10674_s5 + $0xe20] ss:$16 sps:$4 sm:$0xff]   ;;  %v7430_v5 = vld [vmem:[%s10674_s5 + $0xc04] ss:$16 sps:$4 sm:$0xff]  }
 0x181   : > { %5491 = vmatpush1.bf16.msra.mxu0 %v7398_v12  ;;  %5534 = vmatpush1.bf16.msra.mxu1 %v7401_v19  ;;  %v7433_v7 = vld [vmem:[%s10674_s5 + $0xe04] ss:$16 sps:$4 sm:$0xff]   ;;  %v7428_v9 = vld [vmem:[%s10674_s5 + $0xc00] ss:$16 sps:$4 sm:$0xff]  }
 0x182   : > { %5492 = vmatprep.subr.bf16.mxu0 %v7406_v25  ;;  %5535 = vmatprep.subr.bf16.mxu1 %v7409_v27  ;;  %v9553_v46 = vpack.c.bf16 %v1187_v42, %v1171_v36  ;;  %v7431_v10 = vld [vmem:[%s10674_s5 + $0xe00] ss:$16 sps:$4 sm:$0xff]   ;;  %v7436_v12 = vld [vmem:[%s10674_s5 + $0xde4] ss:$16 sps:$4 sm:$0xff]  }
 0x183   : > { %v7439_v19 = vld [vmem:[%s10674_s5 + $0xfe4] ss:$16 sps:$4 sm:$0xff]   ;;  %v7434_v6 = vld [vmem:[%s10674_s5 + $0xde0] ss:$16 sps:$4 sm:$0xff]  }
 0x184   : > { %5561 = vmatprep.mubr.bf16.mxu1 %v9553_v46  ;;  %v7437_v13 = vld [vmem:[%s10674_s5 + $0xfe0] ss:$16 sps:$4 sm:$0xff]   ;;  %v7442_v29 = vld [vmem:[%s10674_s5 + $0xdc4] ss:$16 sps:$4 sm:$0xff]  }
 0x185   : > { %5493 = vmatpush1.bf16.msra.mxu0 %v7404_v48  ;;  %5536 = vmatpush1.bf16.msra.mxu1 %v7407_v49  ;;  %v720_v23 = vld [vmem:[%s8556_s22 + $0x60] sm:$0xff]  ;;  %v722_v30 = vld [vmem:[%s8556_s22 + $0x70] sm:$0xff] }
 0x186   : > { %5494 = vmatprep.subr.bf16.mxu0 %v7412_v38  ;;  %5537 = vmatprep.subr.bf16.mxu1 %v7415_v41  ;;  %v736_v24 = vld [vmem:[%s8556_s22 + $0x460] sm:$0xff]  ;;  %v738_v34 = vld [vmem:[%s8556_s22 + $0x470] sm:$0xff] }
 0x187   : > { %v752_v25 = vld [vmem:[%s8556_s22 + $0xe0] sm:$0xff]  ;;  %v754_v26 = vld [vmem:[%s8556_s22 + $0xf0] sm:$0xff] }
 0x188   : > { %v768_v27 = vld [vmem:[%s8556_s22 + $0x4e0] sm:$0xff]  ;;  %v770_v32 = vld [vmem:[%s8556_s22 + $0x4f0] sm:$0xff]  ;;  %v784_v41 = vadd.f32 %v752_v25, %v720_v23 }
 0x189   : > { %5495 = vmatpush1.bf16.msra.mxu0 %v7410_v45  ;;  %5538 = vmatpush1.bf16.msra.mxu1 %v7413_v52  ;;  %v7445_v48 = vld [vmem:[%s10674_s5 + $0xfc4] ss:$16 sps:$4 sm:$0xff]   ;;  %v7440_v49 = vld [vmem:[%s10674_s5 + $0xdc0] ss:$16 sps:$4 sm:$0xff]   ;;  %v800_v42 = vadd.f32 %v768_v27, %v736_v24 }
 0x18a   : > { %5496 = vmatprep.subr.bf16.mxu0 %v7418_v47  ;;  %5539 = vmatprep.subr.bf16.mxu1 %v7421_v50  ;;  %v7443_v36 = vld [vmem:[%s10674_s5 + $0xfc0] ss:$16 sps:$4 sm:$0xff]   ;;  %v7448_v38 = vld [vmem:[%s10674_s5 + $0xda4] ss:$16 sps:$4 sm:$0xff]   ;;  %v786_v47 = vadd.f32 %v754_v26, %v722_v30  ;;  %v802_v50 = vadd.f32 %v770_v32, %v738_v34 }
 0x18b   : > { %v816_v45 = vld [vmem:[%s8556_s22 + $0x160] sm:$0xff] }
 0x18c   : > { %v832_v52 = vld [vmem:[%s8556_s22 + $0x560] sm:$0xff] }
 0x18d   : > { %5497 = vmatpush1.bf16.msra.mxu0 %v7416_v53  ;;  %5540 = vmatpush1.bf16.msra.mxu1 %v7419_v54  ;;  %v818_v53 = vld [vmem:[%s8556_s22 + $0x170] sm:$0xff]  ;;  %v944_v34 = vld [vmem:[%s8556_s22 + $0x260] sm:$0xff] }
 0x18e   : > { %5498 = vmatprep.subr.bf16.mxu0 %v7424_v61  ;;  %5541 = vmatprep.subr.bf16.mxu1 %v7427_v62  ;;  %v834_v54 = vld [vmem:[%s8556_s22 + $0x570] sm:$0xff]  ;;  %v960_v26 = vld [vmem:[%s8556_s22 + $0x660] sm:$0xff] }
 0x18f   : > { %v7451_v61 = vld [vmem:[%s10674_s5 + $0xfa4] ss:$16 sps:$4 sm:$0xff]   ;;  %v7446_v62 = vld [vmem:[%s10674_s5 + $0xda0] ss:$16 sps:$4 sm:$0xff]  }
 0x190   : > { %v7457_v23 = vld [vmem:[%s10674_s5 + $0xf84] ss:$16 sps:$4 sm:$0xff]   ;;  %v7452_v24 = vld [vmem:[%s10674_s5 + $0xd80] ss:$16 sps:$4 sm:$0xff]  }
 0x191   : > { %5499 = vmatpush1.bf16.msra.mxu0 %v7422_v63  ;;  %5542 = vmatpush1.bf16.msra.mxu1 %v7425_v4  ;;  %v7449_v63 = vld [vmem:[%s10674_s5 + $0xfa0] ss:$16 sps:$4 sm:$0xff]   ;;  %v7454_v4 = vld [vmem:[%s10674_s5 + $0xd84] ss:$16 sps:$4 sm:$0xff]  }
 0x192   : > { %5500 = vmatprep.subr.bf16.mxu0 %v7430_v5  ;;  %5543 = vmatprep.subr.bf16.mxu1 %v7433_v7  ;;  %v848_v5 = vadd.f32 %v816_v45, %v784_v41  ;;  %v864_v7 = vadd.f32 %v832_v52, %v800_v42  ;;  %v7455_v25 = vld [vmem:[%s10674_s5 + $0xf80] ss:$16 sps:$4 sm:$0xff]   ;;  %v7460_v27 = vld [vmem:[%s10674_s5 + $0xd64] ss:$16 sps:$4 sm:$0xff]  }
 0x193   : > { %v7458_v41 = vld [vmem:[%s10674_s5 + $0xd60] ss:$16 sps:$4 sm:$0xff]   ;;  %v7466_v45 = vld [vmem:[%s10674_s5 + $0xd44] ss:$16 sps:$4 sm:$0xff]  }
 0x194   : > { %v7461_v42 = vld [vmem:[%s10674_s5 + $0xf60] ss:$16 sps:$4 sm:$0xff]  }
 0x195   : > { %5501 = vmatpush1.bf16.msra.mxu0 %v7428_v9  ;;  %5544 = vmatpush1.bf16.msra.mxu1 %v7431_v10  ;;  %v880_v9 = vld [vmem:[%s8556_s22 + $0x1e0] sm:$0xff] }
 0x196   : > { %5502 = vmatprep.subr.bf16.mxu0 %v7436_v12  ;;  %5545 = vmatprep.subr.bf16.mxu1 %v7439_v19  ;;  %v896_v10 = vld [vmem:[%s8556_s22 + $0x5e0] sm:$0xff]  ;;  %v850_v12 = vadd.f32 %v818_v53, %v786_v47  ;;  %v866_v19 = vadd.f32 %v834_v54, %v802_v50 }
 0x197   : > { %v928_v30 = vadd.f32 %v896_v10, %v864_v7  ;;  %v1008_v50 = vld [vmem:[%s8556_s22 + $0x2e0] sm:$0xff] }
 0x198   : > { %v1024_v53 = vld [vmem:[%s8556_s22 + $0x6e0] sm:$0xff] }
 0x199   : > { %5503 = vmatpush2.bf16.msra.mxu0 %v7434_v6  ;;  %5546 = vmatpush2.bf16.msra.mxu1 %v7437_v13  ;;  %v882_v6 = vld [vmem:[%s8556_s22 + $0x1f0] sm:$0xff]  ;;  %v992_v47 = vadd.f32 %v960_v26, %v928_v30 }
 0x19a   : > { %5504 = vmatprep.subr.bf16.mxu0 %v7442_v29  ;;  %5547 = vmatprep.subr.bf16.mxu1 %v7445_v48  ;;  %v898_v13 = vld [vmem:[%s8556_s22 + $0x5f0] sm:$0xff]  ;;  %v912_v29 = vadd.f32 %v880_v9, %v848_v5  ;;  %v914_v32 = vadd.f32 %v882_v6, %v850_v12  ;;  %v1088_v6 = vld [vmem:[%s8556_s22 + $0x760] sm:$0xff] }
 0x19b   : > { %v930_v48 = vadd.f32 %v898_v13, %v866_v19  ;;  %v7464_v5 = vld [vmem:[%s10674_s5 + $0xd40] ss:$16 sps:$4 sm:$0xff]   ;;  %v7472_v9 = vld [vmem:[%s10674_s5 + $0xd24] ss:$16 sps:$4 sm:$0xff]   ;;  %v1056_v12 = vadd.f32 %v1024_v53, %v992_v47 }
 0x19c   : > { %v976_v52 = vadd.f32 %v944_v34, %v912_v29  ;;  %v7467_v7 = vld [vmem:[%s10674_s5 + $0xf40] ss:$16 sps:$4 sm:$0xff]   ;;  %v7478_v34 = vld [vmem:[%s10674_s5 + $0xd04] ss:$16 sps:$4 sm:$0xff]  }
 0x19d   : > { %5505 = vmatpush2.bf16.msra.mxu0 %v7440_v49  ;;  %5548 = vmatpush2.bf16.msra.mxu1 %v7443_v36  ;;  %v946_v49 = vld [vmem:[%s8556_s22 + $0x270] sm:$0xff]  ;;  %v1072_v19 = vld [vmem:[%s8556_s22 + $0x360] sm:$0xff] }
 0x19e   : > { %5506 = vmatprep.subr.bf16.mxu0 %v7448_v38  ;;  %5549 = vmatprep.subr.bf16.mxu1 %v7451_v61  ;;  %v962_v36 = vld [vmem:[%s8556_s22 + $0x670] sm:$0xff]  ;;  %v978_v54 = vadd.f32 %v946_v49, %v914_v32  ;;  %v1040_v10 = vadd.f32 %v1008_v50, %v976_v52  ;;  %v1120_v32 = vadd.f32 %v1088_v6, %v1056_v12  ;;  %v1152_v49 = vld [vmem:[%s8556_s22 + $0x7e0] sm:$0xff]  ;;  %v7493_v12 = vld [vmem:[%s10674_s5 + $0x2cc] ss:$16 sps:$4 sm:$0xff]  }
 0x19f   : > { %v7463_v38 = vld [vmem:[%s10674_s5 + $0xf64] ss:$16 sps:$4 sm:$0xff]   ;;  %v994_v61 = vadd.f32 %v962_v36, %v930_v48  ;;  %v7470_v29 = vld [vmem:[%s10674_s5 + $0xd20] ss:$16 sps:$4 sm:$0xff]   ;;  %v7491_v6 = vld [vmem:[%s10674_s5 + $0x2c8] ss:$16 sps:$4 sm:$0xff]  }
 0x1a0   : > { %v7473_v30 = vld [vmem:[%s10674_s5 + $0xf20] ss:$16 sps:$4 sm:$0xff]   ;;  %v1104_v26 = vadd.f32 %v1072_v19, %v1040_v10  ;;  %v1184_v50 = vadd.f32 %v1152_v49, %v1120_v32  ;;  %v7490_v10 = vld [vmem:[%s10674_s5 + $0xcc] ss:$16 sps:$4 sm:$0xff]   ;;  %v7488_v19 = vld [vmem:[%s10674_s5 + $0xc8] ss:$16 sps:$4 sm:$0xff]  }
 0x1a1   : > { %5507 = vmatpush2.bf16.msra.mxu0 %v7446_v62  ;;  %5550 = vmatpush2.bf16.msra.mxu1 %v7449_v63  ;;  %v1010_v62 = vld [vmem:[%s8556_s22 + $0x2f0] sm:$0xff]  ;;  %v1136_v48 = vld [vmem:[%s8556_s22 + $0x3e0] sm:$0xff]  ;;  %v7509_v32 = vld [vmem:[%s10674_s5 + $0x268] ss:$16 sps:$4 sm:$0xff]  }
 0x1a2   : > { %5508 = vmatprep.subr.bf16.mxu0 %v7454_v4  ;;  %5551 = vmatprep.subr.bf16.mxu1 %v7457_v23  ;;  %v1026_v63 = vld [vmem:[%s8556_s22 + $0x6f0] sm:$0xff]  ;;  %v1042_v13 = vadd.f32 %v1010_v62, %v978_v54  ;;  %v1168_v47 = vadd.f32 %v1136_v48, %v1104_v26  ;;  %v7484_v62 = vld [vmem:[%s10674_s5 + $0xec] ss:$16 sps:$4 sm:$0xff]   ;;  %v7506_v26 = vld [vmem:[%s10674_s5 + $0x68] ss:$16 sps:$4 sm:$0xff]  }
 0x1a3   : > { %v7469_v4 = vld [vmem:[%s10674_s5 + $0xf44] ss:$16 sps:$4 sm:$0xff]   ;;  %v1058_v23 = vadd.f32 %v1026_v63, %v994_v61  ;;  %v7476_v52 = vld [vmem:[%s10674_s5 + $0xd00] ss:$16 sps:$4 sm:$0xff]   ;;  %v7487_v63 = vld [vmem:[%s10674_s5 + $0x2ec] ss:$16 sps:$4 sm:$0xff]  }
 0x1a4   : > { %v7479_v61 = vld [vmem:[%s10674_s5 + $0xf00] ss:$16 sps:$4 sm:$0xff]   ;;  %v7514_v48 = vld [vmem:[%s10674_s5 + $0x4c] ss:$16 sps:$4 sm:$0xff]  }
 0x1a5   : > { %5509 = vmatpush2.bf16.msra.mxu0 %v7452_v24  ;;  %5552 = vmatpush2.bf16.msra.mxu1 %v7455_v25  ;;  %v1074_v24 = vld [vmem:[%s8556_s22 + $0x370] sm:$0xff]  ;;  %v7517_v49 = vld [vmem:[%s10674_s5 + $0x24c] ss:$16 sps:$4 sm:$0xff]  }
 0x1a6   : > { %5510 = vmatprep.subr.bf16.mxu0 %v7460_v27  ;;  %5553 = vmatprep.subr.bf16.mxu1 %v7463_v38  ;;  %v1090_v25 = vld [vmem:[%s8556_s22 + $0x770] sm:$0xff]  ;;  %v1106_v36 = vadd.f32 %v1074_v24, %v1042_v13  ;;  %v7496_v13 = vld [vmem:[%s10674_s5 + $0xac] ss:$16 sps:$4 sm:$0xff]   ;;  %v7494_v24 = vld [vmem:[%s10674_s5 + $0xa8] ss:$16 sps:$4 sm:$0xff]  }
 0x1a7   : > { %v7475_v27 = vld [vmem:[%s10674_s5 + $0xf24] ss:$16 sps:$4 sm:$0xff]   ;;  %v1122_v38 = vadd.f32 %v1090_v25, %v1058_v23  ;;  %v7499_v23 = vld [vmem:[%s10674_s5 + $0x2ac] ss:$16 sps:$4 sm:$0xff]   ;;  %v7497_v25 = vld [vmem:[%s10674_s5 + $0x2a8] ss:$16 sps:$4 sm:$0xff]  }
 0x1a9   : > { %5511 = vmatpush2.bf16.msra.mxu0 %v7458_v41  ;;  %5554 = vmatpush2.bf16.msra.mxu1 %v7461_v42  ;;  %v1138_v41 = vld [vmem:[%s8556_s22 + $0x3f0] sm:$0xff] }
 0x1aa   : > { %5512 = vmatprep.subr.bf16.mxu0 %v7466_v45  ;;  %5555 = vmatprep.subr.bf16.mxu1 %v7469_v4  ;;  %v1154_v42 = vld [vmem:[%s8556_s22 + $0x7f0] sm:$0xff]  ;;  %v1170_v53 = vadd.f32 %v1138_v41, %v1106_v36  ;;  %v9729_v4 = vpack.c.bf16 %v1184_v50, %v1168_v47  ;;  %v7512_v36 = vld [vmem:[%s10674_s5 + $0x48] ss:$16 sps:$4 sm:$0xff]   ;;  %v7520_v41 = vld [vmem:[%s10674_s5 + $0x2c] ss:$16 sps:$4 sm:$0xff]  }
 0x1ab   : > { %v7481_v45 = vld [vmem:[%s10674_s5 + $0xf04] ss:$16 sps:$4 sm:$0xff]   ;;  %v1186_v54 = vadd.f32 %v1154_v42, %v1122_v38  ;;  %v7515_v38 = vld [vmem:[%s10674_s5 + $0x248] ss:$16 sps:$4 sm:$0xff]   ;;  %v7523_v42 = vld [vmem:[%s10674_s5 + $0x22c] ss:$16 sps:$4 sm:$0xff]  }
 0x1ac   : > { %v7526_v47 = vld [vmem:[%s10674_s5 + $0xc] ss:$16 sps:$4 sm:$0xff]  }
 0x1ad   : > { %5513 = vmatpush2.bf16.msra.mxu0 %v7464_v5  ;;  %5556 = vmatpush2.bf16.msra.mxu1 %v7467_v7  ;;  %v9731_v5 = vpack.c.bf16 %v1186_v54, %v1170_v53  ;;  %v7482_v7 = vld [vmem:[%s10674_s5 + $0xe8] ss:$16 sps:$4 sm:$0xff]   ;;  %v7529_v50 = vld [vmem:[%s10674_s5 + $0x20c] ss:$16 sps:$4 sm:$0xff]  }
 0x1ae   : > { %5514 = vmatprep.subr.bf16.mxu0 %v7472_v9  ;;  %5557 = vmatprep.subr.bf16.mxu1 %v7475_v27  ;;  %v7485_v9 = vld [vmem:[%s10674_s5 + $0x2e8] ss:$16 sps:$4 sm:$0xff]   ;;  %v7502_v27 = vld [vmem:[%s10674_s5 + $0x8c] ss:$16 sps:$4 sm:$0xff]  }
 0x1af   : > { %v7524_v53 = vld [vmem:[%s10674_s5 + $0x8] ss:$16 sps:$4 sm:$0xff]  }
 0x1b0   : > { %v7527_v54 = vld [vmem:[%s10674_s5 + $0x208] ss:$16 sps:$4 sm:$0xff]  }
 0x1b1   : > { %5515 = vmatpush2.bf16.msra.mxu0 %v7470_v29  ;;  %5558 = vmatpush2.bf16.msra.mxu1 %v7473_v30  ;;  %v7503_v29 = vld [vmem:[%s10674_s5 + $0x288] ss:$16 sps:$4 sm:$0xff]   ;;  %v7508_v30 = vld [vmem:[%s10674_s5 + $0x6c] ss:$16 sps:$4 sm:$0xff]  }
 0x1b2   : > { %5516 = vmatprep.subr.bf16.mxu0 %v7478_v34  ;;  %5559 = vmatprep.subr.bf16.mxu1 %v7481_v45  ;;  %v7511_v34 = vld [vmem:[%s10674_s5 + $0x26c] ss:$16 sps:$4 sm:$0xff]   ;;  %v7518_v45 = vld [vmem:[%s10674_s5 + $0x28] ss:$16 sps:$4 sm:$0xff]  }
 0x1b5   : > { %5517 = vmatpush2.bf16.msra.mxu0 %v7476_v52  ;;  %5560 = vmatpush2.bf16.msra.mxu1 %v7479_v61  ;;  %v7521_v52 = vld [vmem:[%s10674_s5 + $0x228] ss:$16 sps:$4 sm:$0xff]   ;;  %v7532_v61 = vld [vmem:[%s10674_s5 + $0x1ec] ss:$16 sps:$4 sm:$0xff]  }
 0x1b6   : > { %5572 = vmatprep.subr.bf16.mxu0 %v7484_v62  ;;  %5615 = vmatprep.subr.bf16.mxu1 %v7487_v63  ;;  %v7535_v62 = vld [vmem:[%s10674_s5 + $0x3ec] ss:$16 sps:$4 sm:$0xff]   ;;  %v7530_v63 = vld [vmem:[%s10674_s5 + $0x1e8] ss:$16 sps:$4 sm:$0xff]  }
 0x1b8   : > { %5519 = vmatmul.mubr.bf16.vlgmr.msra.gmra.mxu0 %v9729_v4  ;;  %5562 = vmatmul.mubr.bf16.vlgmr.msra.gmra.mxu1 %v9731_v5 }
 0x1b9   : > { %5573 = vmatpush1.bf16.msra.mxu0 %v7482_v7  ;;  %5616 = vmatpush1.bf16.msra.mxu1 %v7485_v9  ;;  %v7533_v7 = vld [vmem:[%s10674_s5 + $0x3e8] ss:$16 sps:$4 sm:$0xff]   ;;  %v7538_v9 = vld [vmem:[%s10674_s5 + $0x1cc] ss:$16 sps:$4 sm:$0xff]  }
 0x1ba   : > { %5574 = vmatprep.subr.bf16.mxu0 %v7490_v10  ;;  %5617 = vmatprep.subr.bf16.mxu1 %v7493_v12  ;;  %v7541_v10 = vld [vmem:[%s10674_s5 + $0x3cc] ss:$16 sps:$4 sm:$0xff]   ;;  %v7536_v12 = vld [vmem:[%s10674_s5 + $0x1c8] ss:$16 sps:$4 sm:$0xff]  }
 0x1bb   : > { %5604 = vmatprep.mubr.bf16.mxu0 %v8650_v51  ;;  %5647 = vmatprep.mubr.bf16.mxu1 %v8673_v1  ;;  %v7505_v51 = vld [vmem:[%s10674_s5 + $0x28c] ss:$16 sps:$4 sm:$0xff]   ;;  %v7500_v1 = vld [vmem:[%s10674_s5 + $0x88] ss:$16 sps:$4 sm:$0xff]  }
 0x1bd   : > { %5575 = vmatpush1.bf16.msra.mxu0 %v7488_v19  ;;  %5618 = vmatpush1.bf16.msra.mxu1 %v7491_v6  ;;  %v7539_v19 = vld [vmem:[%s10674_s5 + $0x3c8] ss:$16 sps:$4 sm:$0xff]   ;;  %v7544_v6 = vld [vmem:[%s10674_s5 + $0x1ac] ss:$16 sps:$4 sm:$0xff]  }
 0x1be   : > { %5576 = vmatprep.subr.bf16.mxu0 %v7496_v13  ;;  %5619 = vmatprep.subr.bf16.mxu1 %v7499_v23  ;;  %v7547_v13 = vld [vmem:[%s10674_s5 + $0x3ac] ss:$16 sps:$4 sm:$0xff]   ;;  %v7542_v23 = vld [vmem:[%s10674_s5 + $0x1a8] ss:$16 sps:$4 sm:$0xff]  }
 0x1c1   : > { %5577 = vmatpush1.bf16.msra.mxu0 %v7494_v24  ;;  %5620 = vmatpush1.bf16.msra.mxu1 %v7497_v25  ;;  %v7545_v24 = vld [vmem:[%s10674_s5 + $0x3a8] ss:$16 sps:$4 sm:$0xff]   ;;  %v7550_v25 = vld [vmem:[%s10674_s5 + $0x18c] ss:$16 sps:$4 sm:$0xff]  }
 0x1c2   : > { %5578 = vmatprep.subr.bf16.mxu0 %v7502_v27  ;;  %5621 = vmatprep.subr.bf16.mxu1 %v7505_v51  ;;  %v7553_v27 = vld [vmem:[%s10674_s5 + $0x38c] ss:$16 sps:$4 sm:$0xff]   ;;  %v7548_v51 = vld [vmem:[%s10674_s5 + $0x188] ss:$16 sps:$4 sm:$0xff]  }
 0x1c5   : > { %5579 = vmatpush1.bf16.msra.mxu0 %v7500_v1  ;;  %5622 = vmatpush1.bf16.msra.mxu1 %v7503_v29  ;;  %v7551_v1 = vld [vmem:[%s10674_s5 + $0x388] ss:$16 sps:$4 sm:$0xff]   ;;  %v7556_v29 = vld [vmem:[%s10674_s5 + $0x16c] ss:$16 sps:$4 sm:$0xff]  }
 0x1c6   : > { %5580 = vmatprep.subr.bf16.mxu0 %v7508_v30  ;;  %5623 = vmatprep.subr.bf16.mxu1 %v7511_v34  ;;  %v7559_v30 = vld [vmem:[%s10674_s5 + $0x36c] ss:$16 sps:$4 sm:$0xff]   ;;  %v7554_v34 = vld [vmem:[%s10674_s5 + $0x168] ss:$16 sps:$4 sm:$0xff]  }
 0x1c9   : > { %5581 = vmatpush1.bf16.msra.mxu0 %v7506_v26  ;;  %5624 = vmatpush1.bf16.msra.mxu1 %v7509_v32  ;;  %v7557_v26 = vld [vmem:[%s10674_s5 + $0x368] ss:$16 sps:$4 sm:$0xff]   ;;  %v7562_v32 = vld [vmem:[%s10674_s5 + $0x14c] ss:$16 sps:$4 sm:$0xff]  }
 0x1ca   : > { %5582 = vmatprep.subr.bf16.mxu0 %v7514_v48  ;;  %5625 = vmatprep.subr.bf16.mxu1 %v7517_v49  ;;  %v7565_v48 = vld [vmem:[%s10674_s5 + $0x34c] ss:$16 sps:$4 sm:$0xff]   ;;  %v7560_v49 = vld [vmem:[%s10674_s5 + $0x148] ss:$16 sps:$4 sm:$0xff]  }
 0x1cd   : > { %5583 = vmatpush1.bf16.msra.mxu0 %v7512_v36  ;;  %5626 = vmatpush1.bf16.msra.mxu1 %v7515_v38  ;;  %v7563_v36 = vld [vmem:[%s10674_s5 + $0x348] ss:$16 sps:$4 sm:$0xff]   ;;  %v7568_v38 = vld [vmem:[%s10674_s5 + $0x12c] ss:$16 sps:$4 sm:$0xff]  }
 0x1ce   : > { %5584 = vmatprep.subr.bf16.mxu0 %v7520_v41  ;;  %5627 = vmatprep.subr.bf16.mxu1 %v7523_v42  ;;  %v7571_v41 = vld [vmem:[%s10674_s5 + $0x32c] ss:$16 sps:$4 sm:$0xff]   ;;  %v7566_v42 = vld [vmem:[%s10674_s5 + $0x128] ss:$16 sps:$4 sm:$0xff]  }
 0x1d1   : > { %5585 = vmatpush1.bf16.msra.mxu0 %v7518_v45  ;;  %5628 = vmatpush1.bf16.msra.mxu1 %v7521_v52  ;;  %v7569_v45 = vld [vmem:[%s10674_s5 + $0x328] ss:$16 sps:$4 sm:$0xff]   ;;  %v7574_v52 = vld [vmem:[%s10674_s5 + $0x10c] ss:$16 sps:$4 sm:$0xff]  }
 0x1d2   : > { %5586 = vmatprep.subr.bf16.mxu0 %v7526_v47  ;;  %5629 = vmatprep.subr.bf16.mxu1 %v7529_v50  ;;  %v7577_v47 = vld [vmem:[%s10674_s5 + $0x30c] ss:$16 sps:$4 sm:$0xff]   ;;  %v7572_v50 = vld [vmem:[%s10674_s5 + $0x108] ss:$16 sps:$4 sm:$0xff]  }
 0x1d5   : > { %5587 = vmatpush1.bf16.msra.mxu0 %v7524_v53  ;;  %5630 = vmatpush1.bf16.msra.mxu1 %v7527_v54  ;;  %v7575_v53 = vld [vmem:[%s10674_s5 + $0x308] ss:$16 sps:$4 sm:$0xff]   ;;  %v7580_v54 = vld [vmem:[%s10674_s5 + $0x4ec] ss:$16 sps:$4 sm:$0xff]  }
 0x1d6   : > { %5588 = vmatprep.subr.bf16.mxu0 %v7532_v61  ;;  %5631 = vmatprep.subr.bf16.mxu1 %v7535_v62  ;;  %v7583_v61 = vld [vmem:[%s10674_s5 + $0x6ec] ss:$16 sps:$4 sm:$0xff]   ;;  %v7578_v62 = vld [vmem:[%s10674_s5 + $0x4e8] ss:$16 sps:$4 sm:$0xff]  }
 0x1d9   : > { %5589 = vmatpush2.bf16.msra.mxu0 %v7530_v63  ;;  %5632 = vmatpush2.bf16.msra.mxu1 %v7533_v7  ;;  %v7581_v63 = vld [vmem:[%s10674_s5 + $0x6e8] ss:$16 sps:$4 sm:$0xff]   ;;  %v7586_v7 = vld [vmem:[%s10674_s5 + $0x4cc] ss:$16 sps:$4 sm:$0xff]  }
 0x1da   : > { %5590 = vmatprep.subr.bf16.mxu0 %v7538_v9  ;;  %5633 = vmatprep.subr.bf16.mxu1 %v7541_v10  ;;  %v7589_v9 = vld [vmem:[%s10674_s5 + $0x6cc] ss:$16 sps:$4 sm:$0xff]   ;;  %v7584_v10 = vld [vmem:[%s10674_s5 + $0x4c8] ss:$16 sps:$4 sm:$0xff]  }
 0x1dd   : > { %5591 = vmatpush2.bf16.msra.mxu0 %v7536_v12  ;;  %5634 = vmatpush2.bf16.msra.mxu1 %v7539_v19  ;;  %v7587_v12 = vld [vmem:[%s10674_s5 + $0x6c8] ss:$16 sps:$4 sm:$0xff]   ;;  %v7592_v19 = vld [vmem:[%s10674_s5 + $0x4ac] ss:$16 sps:$4 sm:$0xff]  }
 0x1de   : > { %5592 = vmatprep.subr.bf16.mxu0 %v7544_v6  ;;  %5635 = vmatprep.subr.bf16.mxu1 %v7547_v13  ;;  %v7593_v6 = vld [vmem:[%s10674_s5 + $0x6a8] ss:$16 sps:$4 sm:$0xff]   ;;  %v7598_v13 = vld [vmem:[%s10674_s5 + $0x48c] ss:$16 sps:$4 sm:$0xff]  }
 0x1e1   : > { %5593 = vmatpush2.bf16.msra.mxu0 %v7542_v23  ;;  %5636 = vmatpush2.bf16.msra.mxu1 %v7545_v24  ;;  %v7599_v23 = vld [vmem:[%s10674_s5 + $0x688] ss:$16 sps:$4 sm:$0xff]   ;;  %v7604_v24 = vld [vmem:[%s10674_s5 + $0x46c] ss:$16 sps:$4 sm:$0xff]  }
 0x1e2   : > { %5594 = vmatprep.subr.bf16.mxu0 %v7550_v25  ;;  %5637 = vmatprep.subr.bf16.mxu1 %v7553_v27  ;;  %v7607_v25 = vld [vmem:[%s10674_s5 + $0x66c] ss:$16 sps:$4 sm:$0xff]   ;;  %v7602_v27 = vld [vmem:[%s10674_s5 + $0x468] ss:$16 sps:$4 sm:$0xff]  }
 0x1e5   : > { %5595 = vmatpush2.bf16.msra.mxu0 %v7548_v51  ;;  %5638 = vmatpush2.bf16.msra.mxu1 %v7551_v1  ;;  %v7605_v51 = vld [vmem:[%s10674_s5 + $0x668] ss:$16 sps:$4 sm:$0xff]   ;;  %v7610_v1 = vld [vmem:[%s10674_s5 + $0x44c] ss:$16 sps:$4 sm:$0xff]  }
 0x1e6   : > { %5596 = vmatprep.subr.bf16.mxu0 %v7556_v29  ;;  %5639 = vmatprep.subr.bf16.mxu1 %v7559_v30  ;;  %v7613_v29 = vld [vmem:[%s10674_s5 + $0x64c] ss:$16 sps:$4 sm:$0xff]   ;;  %v7608_v30 = vld [vmem:[%s10674_s5 + $0x448] ss:$16 sps:$4 sm:$0xff]  }
 0x1e9   : > { %5597 = vmatpush2.bf16.msra.mxu0 %v7554_v34  ;;  %5640 = vmatpush2.bf16.msra.mxu1 %v7557_v26  ;;  %v7611_v34 = vld [vmem:[%s10674_s5 + $0x648] ss:$16 sps:$4 sm:$0xff]   ;;  %v7616_v26 = vld [vmem:[%s10674_s5 + $0x42c] ss:$16 sps:$4 sm:$0xff]  }
 0x1ea   : > { %5598 = vmatprep.subr.bf16.mxu0 %v7562_v32  ;;  %5641 = vmatprep.subr.bf16.mxu1 %v7565_v48  ;;  %v7619_v32 = vld [vmem:[%s10674_s5 + $0x62c] ss:$16 sps:$4 sm:$0xff]   ;;  %v7614_v48 = vld [vmem:[%s10674_s5 + $0x428] ss:$16 sps:$4 sm:$0xff]  }
 0x1ed   : > { %5599 = vmatpush2.bf16.msra.mxu0 %v7560_v49  ;;  %5642 = vmatpush2.bf16.msra.mxu1 %v7563_v36  ;;  %v7617_v49 = vld [vmem:[%s10674_s5 + $0x628] ss:$16 sps:$4 sm:$0xff]   ;;  %v7622_v36 = vld [vmem:[%s10674_s5 + $0x40c] ss:$16 sps:$4 sm:$0xff]  }
 0x1ee   : > { %5600 = vmatprep.subr.bf16.mxu0 %v7568_v38  ;;  %5643 = vmatprep.subr.bf16.mxu1 %v7571_v41  ;;  %v7625_v38 = vld [vmem:[%s10674_s5 + $0x60c] ss:$16 sps:$4 sm:$0xff]   ;;  %v7620_v41 = vld [vmem:[%s10674_s5 + $0x408] ss:$16 sps:$4 sm:$0xff]  }
 0x1f1   : > { %5601 = vmatpush2.bf16.msra.mxu0 %v7566_v42  ;;  %5644 = vmatpush2.bf16.msra.mxu1 %v7569_v45  ;;  %v7623_v42 = vld [vmem:[%s10674_s5 + $0x608] ss:$16 sps:$4 sm:$0xff]   ;;  %v7628_v45 = vld [vmem:[%s10674_s5 + $0x5ec] ss:$16 sps:$4 sm:$0xff]  }
 0x1f2   : > { %5602 = vmatprep.subr.bf16.mxu0 %v7574_v52  ;;  %5645 = vmatprep.subr.bf16.mxu1 %v7577_v47  ;;  %v7631_v52 = vld [vmem:[%s10674_s5 + $0x7ec] ss:$16 sps:$4 sm:$0xff]   ;;  %v7626_v47 = vld [vmem:[%s10674_s5 + $0x5e8] ss:$16 sps:$4 sm:$0xff]  }
 0x1f5   : > { %5603 = vmatpush2.bf16.msra.mxu0 %v7572_v50  ;;  %5646 = vmatpush2.bf16.msra.mxu1 %v7575_v53  ;;  %v7629_v50 = vld [vmem:[%s10674_s5 + $0x7e8] ss:$16 sps:$4 sm:$0xff]   ;;  %v7634_v53 = vld [vmem:[%s10674_s5 + $0x5cc] ss:$16 sps:$4 sm:$0xff]  }
 0x1f6   : > { %5658 = vmatprep.subr.bf16.mxu0 %v7580_v54  ;;  %5701 = vmatprep.subr.bf16.mxu1 %v7583_v61  ;;  %v7637_v54 = vld [vmem:[%s10674_s5 + $0x7cc] ss:$16 sps:$4 sm:$0xff]   ;;  %v7632_v61 = vld [vmem:[%s10674_s5 + $0x5c8] ss:$16 sps:$4 sm:$0xff]  }
 0x1f8   : > { %5605 = vmatmul.mubr.bf16.vlgmr.msra.gmra.mxu0 %v8888_v14  ;;  %5648 = vmatmul.mubr.bf16.vlgmr.msra.gmra.mxu1 %v8890_v15  ;;  %v7595_v14 = vld [vmem:[%s10674_s5 + $0x6ac] ss:$16 sps:$4 sm:$0xff]   ;;  %v7590_v15 = vld [vmem:[%s10674_s5 + $0x4a8] ss:$16 sps:$4 sm:$0xff]  }
 0x1f9   : > { %5659 = vmatpush1.bf16.msra.mxu0 %v7578_v62  ;;  %5702 = vmatpush1.bf16.msra.mxu1 %v7581_v63  ;;  %v7635_v62 = vld [vmem:[%s10674_s5 + $0x7c8] ss:$16 sps:$4 sm:$0xff]   ;;  %v7640_v63 = vld [vmem:[%s10674_s5 + $0x5ac] ss:$16 sps:$4 sm:$0xff]  }
 0x1fa   : > { %5660 = vmatprep.subr.bf16.mxu0 %v7586_v7  ;;  %5703 = vmatprep.subr.bf16.mxu1 %v7589_v9  ;;  %v7643_v7 = vld [vmem:[%s10674_s5 + $0x7ac] ss:$16 sps:$4 sm:$0xff]   ;;  %v7638_v9 = vld [vmem:[%s10674_s5 + $0x5a8] ss:$16 sps:$4 sm:$0xff]  }
 0x1fb   : > { %5690 = vmatprep.mubr.bf16.mxu0 %v8967_v22  ;;  %5733 = vmatprep.mubr.bf16.mxu1 %v8993_v37  ;;  %v7601_v22 = vld [vmem:[%s10674_s5 + $0x68c] ss:$16 sps:$4 sm:$0xff]   ;;  %v7596_v37 = vld [vmem:[%s10674_s5 + $0x488] ss:$16 sps:$4 sm:$0xff]  }
 0x1fd   : > { %5661 = vmatpush1.bf16.msra.mxu0 %v7584_v10  ;;  %5704 = vmatpush1.bf16.msra.mxu1 %v7587_v12  ;;  %v7641_v10 = vld [vmem:[%s10674_s5 + $0x7a8] ss:$16 sps:$4 sm:$0xff]   ;;  %v7646_v12 = vld [vmem:[%s10674_s5 + $0x58c] ss:$16 sps:$4 sm:$0xff]  }
 0x1fe   : > { %5662 = vmatprep.subr.bf16.mxu0 %v7592_v19  ;;  %5705 = vmatprep.subr.bf16.mxu1 %v7595_v14  ;;  %v7649_v19 = vld [vmem:[%s10674_s5 + $0x78c] ss:$16 sps:$4 sm:$0xff]   ;;  %v7644_v14 = vld [vmem:[%s10674_s5 + $0x588] ss:$16 sps:$4 sm:$0xff]  }
 0x201   : > { %5663 = vmatpush1.bf16.msra.mxu0 %v7590_v15  ;;  %5706 = vmatpush1.bf16.msra.mxu1 %v7593_v6  ;;  %v7647_v15 = vld [vmem:[%s10674_s5 + $0x788] ss:$16 sps:$4 sm:$0xff]   ;;  %v7652_v6 = vld [vmem:[%s10674_s5 + $0x56c] ss:$16 sps:$4 sm:$0xff]  }
 0x202   : > { %5664 = vmatprep.subr.bf16.mxu0 %v7598_v13  ;;  %5707 = vmatprep.subr.bf16.mxu1 %v7601_v22  ;;  %v7655_v13 = vld [vmem:[%s10674_s5 + $0x76c] ss:$16 sps:$4 sm:$0xff]   ;;  %v7650_v22 = vld [vmem:[%s10674_s5 + $0x568] ss:$16 sps:$4 sm:$0xff]  }
 0x205   : > { %5665 = vmatpush1.bf16.msra.mxu0 %v7596_v37  ;;  %5708 = vmatpush1.bf16.msra.mxu1 %v7599_v23  ;;  %v7653_v37 = vld [vmem:[%s10674_s5 + $0x768] ss:$16 sps:$4 sm:$0xff]   ;;  %v7658_v23 = vld [vmem:[%s10674_s5 + $0x54c] ss:$16 sps:$4 sm:$0xff]  }
 0x206   : > { %5666 = vmatprep.subr.bf16.mxu0 %v7604_v24  ;;  %5709 = vmatprep.subr.bf16.mxu1 %v7607_v25  ;;  %v7661_v24 = vld [vmem:[%s10674_s5 + $0x74c] ss:$16 sps:$4 sm:$0xff]   ;;  %v7656_v25 = vld [vmem:[%s10674_s5 + $0x548] ss:$16 sps:$4 sm:$0xff]  }
 0x209   : > { %5667 = vmatpush1.bf16.msra.mxu0 %v7602_v27  ;;  %5710 = vmatpush1.bf16.msra.mxu1 %v7605_v51  ;;  %v7659_v27 = vld [vmem:[%s10674_s5 + $0x748] ss:$16 sps:$4 sm:$0xff]   ;;  %v7664_v51 = vld [vmem:[%s10674_s5 + $0x52c] ss:$16 sps:$4 sm:$0xff]  }
 0x20a   : > { %5668 = vmatprep.subr.bf16.mxu0 %v7610_v1  ;;  %5711 = vmatprep.subr.bf16.mxu1 %v7613_v29  ;;  %v7667_v1 = vld [vmem:[%s10674_s5 + $0x72c] ss:$16 sps:$4 sm:$0xff]   ;;  %v7662_v29 = vld [vmem:[%s10674_s5 + $0x528] ss:$16 sps:$4 sm:$0xff]  }
 0x20d   : > { %5669 = vmatpush1.bf16.msra.mxu0 %v7608_v30  ;;  %5712 = vmatpush1.bf16.msra.mxu1 %v7611_v34  ;;  %v7665_v30 = vld [vmem:[%s10674_s5 + $0x728] ss:$16 sps:$4 sm:$0xff]   ;;  %v7670_v34 = vld [vmem:[%s10674_s5 + $0x50c] ss:$16 sps:$4 sm:$0xff]  }
 0x20e   : > { %5670 = vmatprep.subr.bf16.mxu0 %v7616_v26  ;;  %5713 = vmatprep.subr.bf16.mxu1 %v7619_v32  ;;  %v7673_v26 = vld [vmem:[%s10674_s5 + $0x70c] ss:$16 sps:$4 sm:$0xff]   ;;  %v7668_v32 = vld [vmem:[%s10674_s5 + $0x508] ss:$16 sps:$4 sm:$0xff]  }
 0x211   : > { %5671 = vmatpush1.bf16.msra.mxu0 %v7614_v48  ;;  %5714 = vmatpush1.bf16.msra.mxu1 %v7617_v49  ;;  %v7671_v48 = vld [vmem:[%s10674_s5 + $0x708] ss:$16 sps:$4 sm:$0xff]   ;;  %v7676_v49 = vld [vmem:[%s10674_s5 + $0x8ec] ss:$16 sps:$4 sm:$0xff]  }
 0x212   : > { %5672 = vmatprep.subr.bf16.mxu0 %v7622_v36  ;;  %5715 = vmatprep.subr.bf16.mxu1 %v7625_v38  ;;  %v7679_v36 = vld [vmem:[%s10674_s5 + $0xaec] ss:$16 sps:$4 sm:$0xff]   ;;  %v7674_v38 = vld [vmem:[%s10674_s5 + $0x8e8] ss:$16 sps:$4 sm:$0xff]  }
 0x215   : > { %5673 = vmatpush1.bf16.msra.mxu0 %v7620_v41  ;;  %5716 = vmatpush1.bf16.msra.mxu1 %v7623_v42  ;;  %v7677_v41 = vld [vmem:[%s10674_s5 + $0xae8] ss:$16 sps:$4 sm:$0xff]   ;;  %v7682_v42 = vld [vmem:[%s10674_s5 + $0x8cc] ss:$16 sps:$4 sm:$0xff]  }
 0x216   : > { %5674 = vmatprep.subr.bf16.mxu0 %v7628_v45  ;;  %5717 = vmatprep.subr.bf16.mxu1 %v7631_v52  ;;  %v7685_v45 = vld [vmem:[%s10674_s5 + $0xacc] ss:$16 sps:$4 sm:$0xff]   ;;  %v7680_v52 = vld [vmem:[%s10674_s5 + $0x8c8] ss:$16 sps:$4 sm:$0xff]  }
 0x219   : > { %5675 = vmatpush2.bf16.msra.mxu0 %v7626_v47  ;;  %5718 = vmatpush2.bf16.msra.mxu1 %v7629_v50  ;;  %v7683_v47 = vld [vmem:[%s10674_s5 + $0xac8] ss:$16 sps:$4 sm:$0xff]   ;;  %v7688_v50 = vld [vmem:[%s10674_s5 + $0x8ac] ss:$16 sps:$4 sm:$0xff]  }
 0x21a   : > { %5676 = vmatprep.subr.bf16.mxu0 %v7634_v53  ;;  %5719 = vmatprep.subr.bf16.mxu1 %v7637_v54  ;;  %v7689_v53 = vld [vmem:[%s10674_s5 + $0xaa8] ss:$16 sps:$4 sm:$0xff]   ;;  %v7694_v54 = vld [vmem:[%s10674_s5 + $0x88c] ss:$16 sps:$4 sm:$0xff]  }
 0x21d   : > { %5677 = vmatpush2.bf16.msra.mxu0 %v7632_v61  ;;  %5720 = vmatpush2.bf16.msra.mxu1 %v7635_v62  ;;  %v7695_v61 = vld [vmem:[%s10674_s5 + $0xa88] ss:$16 sps:$4 sm:$0xff]   ;;  %v7700_v62 = vld [vmem:[%s10674_s5 + $0x86c] ss:$16 sps:$4 sm:$0xff]  }
 0x21e   : > { %5678 = vmatprep.subr.bf16.mxu0 %v7640_v63  ;;  %5721 = vmatprep.subr.bf16.mxu1 %v7643_v7  ;;  %v7703_v63 = vld [vmem:[%s10674_s5 + $0xa6c] ss:$16 sps:$4 sm:$0xff]   ;;  %v7698_v7 = vld [vmem:[%s10674_s5 + $0x868] ss:$16 sps:$4 sm:$0xff]  }
 0x221   : > { %5679 = vmatpush2.bf16.msra.mxu0 %v7638_v9  ;;  %5722 = vmatpush2.bf16.msra.mxu1 %v7641_v10  ;;  %v7701_v9 = vld [vmem:[%s10674_s5 + $0xa68] ss:$16 sps:$4 sm:$0xff]   ;;  %v7706_v10 = vld [vmem:[%s10674_s5 + $0x84c] ss:$16 sps:$4 sm:$0xff]  }
 0x222   : > { %5680 = vmatprep.subr.bf16.mxu0 %v7646_v12  ;;  %5723 = vmatprep.subr.bf16.mxu1 %v7649_v19  ;;  %v7709_v12 = vld [vmem:[%s10674_s5 + $0xa4c] ss:$16 sps:$4 sm:$0xff]   ;;  %v7704_v19 = vld [vmem:[%s10674_s5 + $0x848] ss:$16 sps:$4 sm:$0xff]  }
 0x225   : > { %5681 = vmatpush2.bf16.msra.mxu0 %v7644_v14  ;;  %5724 = vmatpush2.bf16.msra.mxu1 %v7647_v15  ;;  %v7707_v14 = vld [vmem:[%s10674_s5 + $0xa48] ss:$16 sps:$4 sm:$0xff]   ;;  %v7712_v15 = vld [vmem:[%s10674_s5 + $0x82c] ss:$16 sps:$4 sm:$0xff]  }
 0x226   : > { %5682 = vmatprep.subr.bf16.mxu0 %v7652_v6  ;;  %5725 = vmatprep.subr.bf16.mxu1 %v7655_v13  ;;  %v7715_v6 = vld [vmem:[%s10674_s5 + $0xa2c] ss:$16 sps:$4 sm:$0xff]   ;;  %v10201_v13 = vpop.f32.mrf.mxu0 }
 0x229   : > { %5683 = vmatpush2.bf16.msra.mxu0 %v7650_v22  ;;  %5726 = vmatpush2.bf16.msra.mxu1 %v7653_v37  ;;  %v7710_v22 = vld [vmem:[%s10674_s5 + $0x828] ss:$16 sps:$4 sm:$0xff]  }
 0x22a   : > { %5684 = vmatprep.subr.bf16.mxu0 %v7658_v23  ;;  %5727 = vmatprep.subr.bf16.mxu1 %v7661_v24  ;;  %v7713_v37 = vld [vmem:[%s10674_s5 + $0xa28] ss:$16 sps:$4 sm:$0xff]   ;;  %v10209_v23 = vpop.f32.mrf.mxu1  ;;  %v7718_v24 = vld [vmem:[%s10674_s5 + $0x80c] ss:$16 sps:$4 sm:$0xff]  }
 0x22d   : > { %5685 = vmatpush2.bf16.msra.mxu0 %v7656_v25  ;;  %5728 = vmatpush2.bf16.msra.mxu1 %v7659_v27  ;;  %v7721_v25 = vld [vmem:[%s10674_s5 + $0xa0c] ss:$16 sps:$4 sm:$0xff]   ;;  %v10217_v27 = vpop.f32.mrf.mxu0 }
 0x22e   : > { %5686 = vmatprep.subr.bf16.mxu0 %v7664_v51  ;;  %5729 = vmatprep.subr.bf16.mxu1 %v7667_v1  ;;  %v7716_v51 = vld [vmem:[%s10674_s5 + $0x808] ss:$16 sps:$4 sm:$0xff]  }
 0x22f   : > { %v7719_v1 = vld [vmem:[%s10674_s5 + $0xa08] ss:$16 sps:$4 sm:$0xff]  }
 0x231   : > { %5687 = vmatpush2.bf16.msra.mxu0 %v7662_v29  ;;  %5730 = vmatpush2.bf16.msra.mxu1 %v7665_v30  ;;  %v10225_v29 = vpop.f32.mrf.mxu1  ;;  %v7724_v30 = vld [vmem:[%s10674_s5 + $0x9ec] ss:$16 sps:$4 sm:$0xff]  }
 0x232   : > { %5688 = vmatprep.subr.bf16.mxu0 %v7670_v34  ;;  %5731 = vmatprep.subr.bf16.mxu1 %v7673_v26  ;;  %v7727_v34 = vld [vmem:[%s10674_s5 + $0xbec] ss:$16 sps:$4 sm:$0xff]   ;;  %v10233_v26 = vpop.f32.mrf.mxu0 }
 0x235   : > { %5689 = vmatpush2.bf16.msra.mxu0 %v7668_v32  ;;  %5732 = vmatpush2.bf16.msra.mxu1 %v7671_v48  ;;  %v7722_v32 = vld [vmem:[%s10674_s5 + $0x9e8] ss:$16 sps:$4 sm:$0xff]  }
 0x236   : > { %5744 = vmatprep.subr.bf16.mxu0 %v7676_v49  ;;  %5787 = vmatprep.subr.bf16.mxu1 %v7679_v36  ;;  %v7725_v48 = vld [vmem:[%s10674_s5 + $0xbe8] ss:$16 sps:$4 sm:$0xff]   ;;  %v10241_v49 = vpop.f32.mrf.mxu1  ;;  %v7730_v36 = vld [vmem:[%s10674_s5 + $0x9cc] ss:$16 sps:$4 sm:$0xff]  }
 0x238   : > { %5691 = vmatmul.mubr.bf16.vlgmr.msra.gmra.mxu0 %v9188_v0  ;;  %5734 = vmatmul.mubr.bf16.vlgmr.msra.gmra.mxu1 %v9190_v3  ;;  %v7691_v0 = vld [vmem:[%s10674_s5 + $0xaac] ss:$16 sps:$4 sm:$0xff]   ;;  %v7686_v3 = vld [vmem:[%s10674_s5 + $0x8a8] ss:$16 sps:$4 sm:$0xff]  }
 0x239   : > { %5745 = vmatpush1.bf16.msra.mxu0 %v7674_v38  ;;  %5788 = vmatpush1.bf16.msra.mxu1 %v7677_v41  ;;  %v7733_v38 = vld [vmem:[%s10674_s5 + $0xbcc] ss:$16 sps:$4 sm:$0xff]   ;;  %v5268_v41 = vpop.f32.mrf.mxu0 }
 0x23a   : > { %5746 = vmatprep.subr.bf16.mxu0 %v7682_v42  ;;  %5789 = vmatprep.subr.bf16.mxu1 %v7685_v45  ;;  %v7728_v42 = vld [vmem:[%s10674_s5 + $0x9c8] ss:$16 sps:$4 sm:$0xff]  }
 0x23b   : > { %5776 = vmatprep.mubr.bf16.mxu0 %v9241_v58  ;;  %5819 = vmatprep.mubr.bf16.mxu1 %v9261_v16  ;;  %v7697_v58 = vld [vmem:[%s10674_s5 + $0xa8c] ss:$16 sps:$4 sm:$0xff]   ;;  %v7692_v16 = vld [vmem:[%s10674_s5 + $0x888] ss:$16 sps:$4 sm:$0xff]  }
 0x23c   : > { %v7731_v45 = vld [vmem:[%s10674_s5 + $0xbc8] ss:$16 sps:$4 sm:$0xff]  }
 0x23d   : > { %5747 = vmatpush1.bf16.msra.mxu0 %v7680_v52  ;;  %5790 = vmatpush1.bf16.msra.mxu1 %v7683_v47  ;;  %v10255_v52 = vpop.f32.mrf.mxu1  ;;  %v7736_v47 = vld [vmem:[%s10674_s5 + $0x9ac] ss:$16 sps:$4 sm:$0xff]  }
 0x23e   : > { %5748 = vmatprep.subr.bf16.mxu0 %v7688_v50  ;;  %5791 = vmatprep.subr.bf16.mxu1 %v7691_v0  ;;  %v7739_v50 = vld [vmem:[%s10674_s5 + $0xbac] ss:$16 sps:$4 sm:$0xff]   ;;  %v5348_v0 = vpop.f32.mrf.mxu0 }
 0x241   : > { %5749 = vmatpush1.bf16.msra.mxu0 %v7686_v3  ;;  %5792 = vmatpush1.bf16.msra.mxu1 %v7689_v53  ;;  %v10263_v3 = vpop.f32.mrf.mxu1  ;;  %v7734_v53 = vld [vmem:[%s10674_s5 + $0x9a8] ss:$16 sps:$4 sm:$0xff]  }
 0x242   : > { %5750 = vmatprep.subr.bf16.mxu0 %v7694_v54  ;;  %5793 = vmatprep.subr.bf16.mxu1 %v7697_v58  ;;  %v7737_v54 = vld [vmem:[%s10674_s5 + $0xba8] ss:$16 sps:$4 sm:$0xff]   ;;  %v7742_v58 = vld [vmem:[%s10674_s5 + $0x98c] ss:$16 sps:$4 sm:$0xff]  }
 0x245   : > { %5751 = vmatpush1.bf16.msra.mxu0 %v7692_v16  ;;  %5794 = vmatpush1.bf16.msra.mxu1 %v7695_v61  ;;  %v7745_v16 = vld [vmem:[%s10674_s5 + $0xb8c] ss:$16 sps:$4 sm:$0xff]   ;;  %v5350_v61 = vpop.f32.mrf.mxu0 }
 0x246   : > { %5752 = vmatprep.subr.bf16.mxu0 %v7700_v62  ;;  %5795 = vmatprep.subr.bf16.mxu1 %v7703_v63  ;;  %v10277_v62 = vpop.f32.mrf.mxu1  ;;  %v7740_v63 = vld [vmem:[%s10674_s5 + $0x988] ss:$16 sps:$4 sm:$0xff]  }
 0x249   : > { %5753 = vmatpush1.bf16.msra.mxu0 %v7698_v7  ;;  %5796 = vmatpush1.bf16.msra.mxu1 %v7701_v9  ;;  %v7743_v7 = vld [vmem:[%s10674_s5 + $0xb88] ss:$16 sps:$4 sm:$0xff]   ;;  %v7748_v9 = vld [vmem:[%s10674_s5 + $0x96c] ss:$16 sps:$4 sm:$0xff]  }
 0x24a   : > { %5754 = vmatprep.subr.bf16.mxu0 %v7706_v10  ;;  %5797 = vmatprep.subr.bf16.mxu1 %v7709_v12  ;;  %v7751_v10 = vld [vmem:[%s10674_s5 + $0xb6c] ss:$16 sps:$4 sm:$0xff]   ;;  %v5352_v12 = vpop.f32.mrf.mxu0 }
 0x24d   : > { %5755 = vmatpush1.bf16.msra.mxu0 %v7704_v19  ;;  %5798 = vmatpush1.bf16.msra.mxu1 %v7707_v14  ;;  %v5395_v19 = vpop.f32.mrf.mxu1  ;;  %v2574_v14 = vadd.f32 %v9408_v60, %v9406_v59  ;;  %v7757_v59 = vld [vmem:[%s10674_s5 + $0xb4c] ss:$16 sps:$4 sm:$0xff]   ;;  %v2576_v60 = vadd.f32 %v9431_v21, %v9429_v20  ;;  %v7755_v20 = vld [vmem:[%s10674_s5 + $0xb48] ss:$16 sps:$4 sm:$0xff]   ;;  %v2580_v21 = vadd.f32 %v9482_v18, %v9480_v17 }
 0x24e   : > { %5756 = vmatprep.subr.bf16.mxu0 %v7712_v15  ;;  %5799 = vmatprep.subr.bf16.mxu1 %v7715_v6  ;;  %v7746_v15 = vld [vmem:[%s10674_s5 + $0x968] ss:$16 sps:$4 sm:$0xff]  }
 0x24f   : > { %v7749_v6 = vld [vmem:[%s10674_s5 + $0xb68] ss:$16 sps:$4 sm:$0xff]  }
 0x250   : > { %v7758_v18 = vld [vmem:[%s10674_s5 + $0x928] ss:$16 sps:$4 sm:$0xff]  }
 0x251   : > { %5757 = vmatpush1.bf16.msra.mxu0 %v7710_v22  ;;  %5800 = vmatpush1.bf16.msra.mxu1 %v7713_v37  ;;  %v7754_v22 = vld [vmem:[%s10674_s5 + $0x94c] ss:$16 sps:$4 sm:$0xff]   ;;  %v5263_v37 = vadd.f32 %v10201_v13, %v2574_v14  ;;  %v7773_v14 = vld [vmem:[%s10674_s5 + $0xee8] ss:$16 sps:$4 sm:$0xff]  }
 0x252   : > { %5758 = vmatprep.subr.bf16.mxu0 %v7718_v24  ;;  %5801 = vmatprep.subr.bf16.mxu1 %v7721_v25  ;;  %v5354_v24 = vpop.f32.mrf.mxu0  ;;  %v5397_v25 = vpop.f32.mrf.mxu1 }
 0x254   : > { %v5477_v13 = vpop.f32.mrf.mxu1 }
 0x255   : > { %5759 = vmatpush1.bf16.msra.mxu0 %v7716_v51  ;;  %5802 = vmatpush1.bf16.msra.mxu1 %v7719_v1  ;;  %v2578_v51 = vadd.f32 %v9452_v40, %v9450_v39  ;;  %v5265_v1 = vadd.f32 %v10217_v27, %v2576_v60  ;;  %v7760_v39 = vld [vmem:[%s10674_s5 + $0x92c] ss:$16 sps:$4 sm:$0xff]   ;;  %v5306_v27 = vadd.f32 %v10209_v23, %v5263_v37 }
 0x256   : > { %5760 = vmatprep.subr.bf16.mxu0 %v7724_v30  ;;  %5803 = vmatprep.subr.bf16.mxu1 %v7727_v34  ;;  %v5434_v30 = vpop.f32.mrf.mxu0  ;;  %v7752_v34 = vld [vmem:[%s10674_s5 + $0x948] ss:$16 sps:$4 sm:$0xff]   ;;  %v7763_v40 = vld [vmem:[%s10674_s5 + $0xb2c] ss:$16 sps:$4 sm:$0xff]  }
 0x257   : > { %v7766_v23 = vld [vmem:[%s10674_s5 + $0x90c] ss:$16 sps:$4 sm:$0xff]  }
 0x258   : > { %v5436_v17 = vpop.f32.mrf.mxu0 }
 0x259   : > { %5761 = vmatpush2.bf16.msra.mxu0 %v7722_v32  ;;  %5804 = vmatpush2.bf16.msra.mxu1 %v7725_v48  ;;  %v5267_v32 = vadd.f32 %v10233_v26, %v2578_v51  ;;  %v5269_v48 = vadd.f32 %v5268_v41, %v2580_v21 }
 0x25a   : > { %5762 = vmatprep.subr.bf16.mxu0 %v7730_v36  ;;  %5805 = vmatprep.subr.bf16.mxu1 %v7733_v38  ;;  %v5308_v36 = vadd.f32 %v10225_v29, %v5265_v1  ;;  %v5349_v38 = vadd.f32 %v5348_v0, %v5306_v27  ;;  %v7769_v29 = vld [vmem:[%s10674_s5 + $0xb0c] ss:$16 sps:$4 sm:$0xff]  }
 0x25b   : > { %v5310_v26 = vadd.f32 %v10241_v49, %v5267_v32  ;;  %v7772_v49 = vld [vmem:[%s10674_s5 + $0xcec] ss:$16 sps:$4 sm:$0xff]  }
 0x25c   : > { %v5351_v41 = vadd.f32 %v5350_v61, %v5308_v36 }
 0x25d   : > { %5763 = vmatpush2.bf16.msra.mxu0 %v7728_v42  ;;  %5806 = vmatpush2.bf16.msra.mxu1 %v7731_v45  ;;  %v7761_v42 = vld [vmem:[%s10674_s5 + $0xb28] ss:$16 sps:$4 sm:$0xff]   ;;  %v5479_v45 = vpop.f32.mrf.mxu1  ;;  %v5353_v0 = vadd.f32 %v5352_v12, %v5310_v26 }
 0x25e   : > { %5764 = vmatprep.subr.bf16.mxu0 %v7736_v47  ;;  %5807 = vmatprep.subr.bf16.mxu1 %v7739_v50  ;;  %v5312_v47 = vadd.f32 %v10255_v52, %v5269_v48  ;;  %v5392_v50 = vadd.f32 %v10263_v3, %v5349_v38  ;;  %v7775_v52 = vld [vmem:[%s10674_s5 + $0xeec] ss:$16 sps:$4 sm:$0xff]   ;;  %v5394_v3 = vadd.f32 %v10277_v62, %v5351_v41  ;;  %v7770_v12 = vld [vmem:[%s10674_s5 + $0xce8] ss:$16 sps:$4 sm:$0xff]   ;;  %v10365_v62 = vld [vmem:[%s10676_s7] sm:$0xf] }
 0x260   : > { %v5435_v61 = vadd.f32 %v5434_v30, %v5392_v50  ;;  %v5921_v30 = vrot.slane %v10365_v62, %v436_v43  ;;  %v7784_v43 = vld [vmem:[%s10674_s5 + $0xcac] ss:$16 sps:$4 sm:$0xff]  }
 0x261   : > { %5765 = vmatpush2.bf16.msra.mxu0 %v7734_v53  ;;  %5808 = vmatpush2.bf16.msra.mxu1 %v7737_v54  ;;  %v5438_v53 = vpop.f32.mrf.mxu0  ;;  %v7764_v54 = vld [vmem:[%s10674_s5 + $0x908] ss:$16 sps:$4 sm:$0xff]  }
 0x262   : > { %5766 = vmatprep.subr.bf16.mxu0 %v7742_v58  ;;  %5809 = vmatprep.subr.bf16.mxu1 %v7745_v16  ;;  %v7767_v58 = vld [vmem:[%s10674_s5 + $0xb08] ss:$16 sps:$4 sm:$0xff]   ;;  %v5355_v16 = vadd.f32 %v5354_v24, %v5312_v47 }
 0x265   : > { %5767 = vmatpush2.bf16.msra.mxu0 %v7740_v63  ;;  %5810 = vmatpush2.bf16.msra.mxu1 %v7743_v7  ;;  %v5481_v63 = vpop.f32.mrf.mxu1  ;;  %v5396_v7 = vadd.f32 %v5395_v19, %v5353_v0  ;;  %v7778_v19 = vld [vmem:[%s10674_s5 + $0xccc] ss:$16 sps:$4 sm:$0xff]   ;;  %v7788_v0 = vld [vmem:[%s10674_s5 + $0xc88] ss:$16 sps:$4 sm:$0xff]  }
 0x266   : > { %5768 = vmatprep.subr.bf16.mxu0 %v7748_v9  ;;  %5811 = vmatprep.subr.bf16.mxu1 %v7751_v10  ;;  %v5437_v9 = vadd.f32 %v5436_v17, %v5394_v3  ;;  %v5440_v10 = vpop.f32.mrf.mxu0  ;;  %v7805_v3 = vld [vmem:[%s10674_s5 + $0xe4c] ss:$16 sps:$4 sm:$0xff]  }
 0x267   : > { %v5439_v60 = vadd.f32 %v5438_v53, %v5396_v7  ;;  %v7791_v53 = vld [vmem:[%s10674_s5 + $0xe88] ss:$16 sps:$4 sm:$0xff]  }
 0x268   : > { %v5480_v51 = vadd.f32 %v5479_v45, %v5437_v9  ;;  %v7793_v45 = vld [vmem:[%s10674_s5 + $0xe8c] ss:$16 sps:$4 sm:$0xff]   ;;  %v7803_v7 = vld [vmem:[%s10674_s5 + $0xe48] ss:$16 sps:$4 sm:$0xff]  }
 0x269   : > { %5769 = vmatpush2.bf16.msra.mxu0 %v7746_v15  ;;  %5812 = vmatpush2.bf16.msra.mxu1 %v7749_v6  ;;  %v5398_v15 = vadd.f32 %v5397_v25, %v5355_v16  ;;  %v5483_v6 = vpop.f32.mrf.mxu1  ;;  %v7808_v9 = vld [vmem:[%s10674_s5 + $0xc2c] ss:$16 sps:$4 sm:$0xff]  }
 0x26a   : > { %5770 = vmatprep.subr.bf16.mxu0 %v7754_v22  ;;  %5813 = vmatprep.subr.bf16.mxu1 %v7757_v59  ;;  %v7781_v22 = vld [vmem:[%s10674_s5 + $0xecc] ss:$16 sps:$4 sm:$0xff]   ;;  %v5478_v59 = vadd.f32 %v5477_v13, %v5435_v61  ;;  %v7800_v61 = vld [vmem:[%s10674_s5 + $0xc48] ss:$16 sps:$4 sm:$0xff]  }
 0x26b   : > { %v5441_v37 = vadd.f32 %v5440_v10, %v5398_v15  ;;  %v7787_v13 = vld [vmem:[%s10674_s5 + $0xeac] ss:$16 sps:$4 sm:$0xff]  }
 0x26c   : > { %v7811_v10 = vld [vmem:[%s10674_s5 + $0xe2c] ss:$16 sps:$4 sm:$0xff]  }
 0x26d   : > { %5771 = vmatpush2.bf16.msra.mxu0 %v7752_v34  ;;  %5814 = vmatpush2.bf16.msra.mxu1 %v7755_v20  ;;  %v7776_v34 = vld [vmem:[%s10674_s5 + $0xcc8] ss:$16 sps:$4 sm:$0xff]   ;;  %v5484_v32 = vadd.f32 %v5483_v6, %v5441_v37  ;;  %v7814_v15 = vld [vmem:[%s10674_s5 + $0xc0c] ss:$16 sps:$4 sm:$0xff]  }
 0x26e   : > { %5772 = vmatprep.subr.bf16.mxu0 %v7760_v39  ;;  %5815 = vmatprep.subr.bf16.mxu1 %v7763_v40  ;;  %v7779_v20 = vld [vmem:[%s10674_s5 + $0xec8] ss:$16 sps:$4 sm:$0xff]   ;;  %v5482_v39 = vadd.f32 %v5481_v63, %v5439_v60  ;;  %v7817_v6 = vld [vmem:[%s10674_s5 + $0xe0c] ss:$16 sps:$4 sm:$0xff]  }
 0x26f   : > { %v7794_v63 = vld [vmem:[%s10674_s5 + $0xc68] ss:$16 sps:$4 sm:$0xff]   ;;  %v7823_v60 = vld [vmem:[%s10674_s5 + $0xfec] ss:$16 sps:$4 sm:$0xff]  }
 0x270   : > { %v7818_v37 = vld [vmem:[%s10674_s5 + $0xde8] ss:$16 sps:$4 sm:$0xff]  }
 0x271   : > { %5773 = vmatpush2.bf16.msra.mxu0 %v7758_v18  ;;  %5816 = vmatpush2.bf16.msra.mxu1 %v7761_v42  ;;  %v7782_v18 = vld [vmem:[%s10674_s5 + $0xca8] ss:$16 sps:$4 sm:$0xff]  }
 0x272   : > { %5774 = vmatprep.subr.bf16.mxu0 %v7766_v23  ;;  %5817 = vmatprep.subr.bf16.mxu1 %v7769_v29  ;;  %v7785_v42 = vld [vmem:[%s10674_s5 + $0xea8] ss:$16 sps:$4 sm:$0xff]  }
 0x275   : > { %5775 = vmatpush2.bf16.msra.mxu0 %v7764_v54  ;;  %5818 = vmatpush2.bf16.msra.mxu1 %v7767_v58  ;;  %v7796_v54 = vld [vmem:[%s10674_s5 + $0xc6c] ss:$16 sps:$4 sm:$0xff]  }
 0x276   : > { %5830 = vmatprep.subr.bf16.mxu0 %v7772_v49  ;;  %5873 = vmatprep.subr.bf16.mxu1 %v7775_v52  ;;  %v7799_v58 = vld [vmem:[%s10674_s5 + $0xe6c] ss:$16 sps:$4 sm:$0xff]   ;;  %v7797_v49 = vld [vmem:[%s10674_s5 + $0xe68] ss:$16 sps:$4 sm:$0xff]  }
 0x277   : > { %v7802_v52 = vld [vmem:[%s10674_s5 + $0xc4c] ss:$16 sps:$4 sm:$0xff]  }
 0x278   : > { %v5520_v24 = vpop.f32.mrf.mxu0  ;;  %v5563_v25 = vpop.f32.mrf.mxu1  ;;  %5777 = vmatmul.mubr.bf16.vlgmr.msra.gmra.mxu0 %v9468_v56  ;;  %5820 = vmatmul.mubr.bf16.vlgmr.msra.gmra.mxu1 %v9470_v57  ;;  %v5925_v57 = vrot.slane %v10365_v62, %v440_v2 }
 0x279   : > { %v5521_v1 = vadd.f32 %v5520_v24, %v5478_v59  ;;  %5831 = vmatpush1.bf16.msra.mxu0 %v7770_v12  ;;  %5874 = vmatpush1.bf16.msra.mxu1 %v7773_v14  ;;  %v7806_v12 = vld [vmem:[%s10674_s5 + $0xc28] ss:$16 sps:$4 sm:$0xff]   ;;  %v7820_v59 = vld [vmem:[%s10674_s5 + $0xdec] ss:$16 sps:$4 sm:$0xff]  }
 0x27a   : > { %v5522_v21 = vpop.f32.mrf.mxu0  ;;  %v5565_v56 = vpop.f32.mrf.mxu1  ;;  %5832 = vmatprep.subr.bf16.mxu0 %v7778_v19  ;;  %5875 = vmatprep.subr.bf16.mxu1 %v7781_v22  ;;  %v7809_v14 = vld [vmem:[%s10674_s5 + $0xe28] ss:$16 sps:$4 sm:$0xff]  }
 0x27b   : > { %v5564_v40 = vadd.f32 %v5563_v25, %v5521_v1  ;;  %v5523_v27 = vadd.f32 %v5522_v21, %v5480_v51  ;;  %5862 = vmatprep.mubr.bf16.mxu0 %v9531_v28  ;;  %5905 = vmatprep.mubr.bf16.mxu1 %v9553_v46  ;;  %v7790_v46 = vld [vmem:[%s10674_s5 + $0xc8c] ss:$16 sps:$4 sm:$0xff]   ;;  %v7812_v19 = vld [vmem:[%s10674_s5 + $0xc08] ss:$16 sps:$4 sm:$0xff]  }
 0x27c   : > { %v5524_v2 = vpop.f32.mrf.mxu0  ;;  %v5567_v48 = vpop.f32.mrf.mxu1  ;;  %v7815_v22 = vld [vmem:[%s10674_s5 + $0xe08] ss:$16 sps:$4 sm:$0xff]   ;;  %v7826_v25 = vld [vmem:[%s10674_s5 + $0xdcc] ss:$16 sps:$4 sm:$0xff]  }
 0x27d   : > { %v5938_v36 = vadd.f32 %v5921_v30, %v5564_v40  ;;  %v5566_v38 = vadd.f32 %v5565_v56, %v5523_v27  ;;  %v5525_v17 = vadd.f32 %v5524_v2, %v5482_v39  ;;  %5833 = vmatpush1.bf16.msra.mxu0 %v7776_v34  ;;  %5876 = vmatpush1.bf16.msra.mxu1 %v7779_v20  ;;  %v7821_v24 = vld [vmem:[%s10674_s5 + $0xfe8] ss:$16 sps:$4 sm:$0xff]   ;;  %v7829_v51 = vld [vmem:[%s10674_s5 + $0xfcc] ss:$16 sps:$4 sm:$0xff]  }
 0x27e   : > { %v5526_v28 = vpop.f32.mrf.mxu0  ;;  %5834 = vmatprep.subr.bf16.mxu0 %v7784_v43  ;;  %5877 = vmatprep.subr.bf16.mxu1 %v7787_v13  ;;  %v5569_v41 = vpop.f32.mrf.mxu1  ;;  %v7824_v1 = vld [vmem:[%s10674_s5 + $0xdc8] ss:$16 sps:$4 sm:$0xff]   ;;  %v7832_v34 = vld [vmem:[%s10674_s5 + $0xdac] ss:$16 sps:$4 sm:$0xff]  }
 0x27f   : > { %5946 = vst [vmem:[%s10409_s25] sm:$0xff] %v5938_v36  ;;  %v5939_v23 = vadd.f32 %v5925_v57, %v5566_v38  ;;  %v5568_v29 = vadd.f32 %v5567_v48, %v5525_v17  ;;  %v5527_v26 = vadd.f32 %v5526_v28, %v5484_v32  ;;  %v7835_v20 = vld [vmem:[%s10674_s5 + $0xfac] ss:$16 sps:$4 sm:$0xff]   ;;  %v7830_v21 = vld [vmem:[%s10674_s5 + $0xda8] ss:$16 sps:$4 sm:$0xff]  }
 0x280   : > { %v7833_v56 = vld [vmem:[%s10674_s5 + $0xfa8] ss:$16 sps:$4 sm:$0xff]   ;;  %v7841_v43 = vld [vmem:[%s10674_s5 + $0xf8c] ss:$16 sps:$4 sm:$0xff]  }
 0x281   : > { %5947 = vst [vmem:[%s10409_s25 + $0x8] sm:$0xff] %v5939_v23  ;;  %v5942_v47 = vadd.f32 %v5921_v30, %v5568_v29  ;;  %v5570_v50 = vadd.f32 %v5569_v41, %v5527_v26  ;;  %5835 = vmatpush1.bf16.msra.mxu0 %v7782_v18  ;;  %5878 = vmatpush1.bf16.msra.mxu1 %v7785_v42  ;;  %v7827_v30 = vld [vmem:[%s10674_s5 + $0xfc8] ss:$16 sps:$4 sm:$0xff]   ;;  %v7844_v40 = vld [vmem:[%s10674_s5 + $0xd6c] ss:$16 sps:$4 sm:$0xff]  }
 0x282   : > { %5836 = vmatprep.subr.bf16.mxu0 %v7790_v46  ;;  %5879 = vmatprep.subr.bf16.mxu1 %v7793_v45  ;;  %v7836_v13 = vld [vmem:[%s10674_s5 + $0xd88] ss:$16 sps:$4 sm:$0xff]   ;;  %v7847_v27 = vld [vmem:[%s10674_s5 + $0xf6c] ss:$16 sps:$4 sm:$0xff]  }
 0x283   : > { %5950 = vst [vmem:[%s10409_s25 + $0x20] sm:$0xff] %v5942_v47  ;;  %v5943_v16 = vadd.f32 %v5925_v57, %v5570_v50  ;;  %v7838_v57 = vld [vmem:[%s10674_s5 + $0xd8c] ss:$16 sps:$4 sm:$0xff]   ;;  %v7839_v39 = vld [vmem:[%s10674_s5 + $0xf88] ss:$16 sps:$4 sm:$0xff]  }
 0x284   : > { %v7842_v32 = vld [vmem:[%s10674_s5 + $0xd68] ss:$16 sps:$4 sm:$0xff]   ;;  %v7850_v48 = vld [vmem:[%s10674_s5 + $0xd4c] ss:$16 sps:$4 sm:$0xff]  }
 0x285   : > { %5951 = vst [vmem:[%s10409_s25 + $0x28] sm:$0xff] %v5943_v16  ;;  %5837 = vmatpush1.bf16.msra.mxu0 %v7788_v0  ;;  %5880 = vmatpush1.bf16.msra.mxu1 %v7791_v53  ;;  %v7845_v2 = vld [vmem:[%s10674_s5 + $0xf68] ss:$16 sps:$4 sm:$0xff]   ;;  %v7853_v36 = vld [vmem:[%s10674_s5 + $0xf4c] ss:$16 sps:$4 sm:$0xff]  }
 0x286   : > { %5838 = vmatprep.subr.bf16.mxu0 %v7796_v54  ;;  %5881 = vmatprep.subr.bf16.mxu1 %v7799_v58  ;;  %v7848_v38 = vld [vmem:[%s10674_s5 + $0xd48] ss:$16 sps:$4 sm:$0xff]   ;;  %v7856_v18 = vld [vmem:[%s10674_s5 + $0xd2c] ss:$16 sps:$4 sm:$0xff]  }
 0x287   : > { %v7851_v17 = vld [vmem:[%s10674_s5 + $0xf48] ss:$16 sps:$4 sm:$0xff]   ;;  %v7859_v42 = vld [vmem:[%s10674_s5 + $0xf2c] ss:$16 sps:$4 sm:$0xff]  }
 0x288   : > { %v7854_v28 = vld [vmem:[%s10674_s5 + $0xd28] ss:$16 sps:$4 sm:$0xff]   ;;  %v7862_v45 = vld [vmem:[%s10674_s5 + $0xd0c] ss:$16 sps:$4 sm:$0xff]  }
 0x289   : > { %5839 = vmatpush1.bf16.msra.mxu0 %v7794_v63  ;;  %5882 = vmatpush1.bf16.msra.mxu1 %v7797_v49  ;;  %v7857_v46 = vld [vmem:[%s10674_s5 + $0xf28] ss:$16 sps:$4 sm:$0xff]   ;;  %v7865_v23 = vld [vmem:[%s10674_s5 + $0xf0c] ss:$16 sps:$4 sm:$0xff]  }
 0x28a   : > { %5840 = vmatprep.subr.bf16.mxu0 %v7802_v52  ;;  %5883 = vmatprep.subr.bf16.mxu1 %v7805_v3  ;;  %v7860_v29 = vld [vmem:[%s10674_s5 + $0xd08] ss:$16 sps:$4 sm:$0xff]  }
 0x28b   : > { %v7863_v26 = vld [vmem:[%s10674_s5 + $0xf08] ss:$16 sps:$4 sm:$0xff]  }
 0x28d   : > { %5841 = vmatpush1.bf16.msra.mxu0 %v7800_v61  ;;  %5884 = vmatpush1.bf16.msra.mxu1 %v7803_v7 }
 0x28e   : > { %5842 = vmatprep.subr.bf16.mxu0 %v7808_v9  ;;  %5885 = vmatprep.subr.bf16.mxu1 %v7811_v10 }
 0x291   : > { %5843 = vmatpush1.bf16.msra.mxu0 %v7806_v12  ;;  %5886 = vmatpush1.bf16.msra.mxu1 %v7809_v14 }
 0x292   : > { %5844 = vmatprep.subr.bf16.mxu0 %v7814_v15  ;;  %5887 = vmatprep.subr.bf16.mxu1 %v7817_v6 }
 0x295   : > { %5845 = vmatpush1.bf16.msra.mxu0 %v7812_v19  ;;  %5888 = vmatpush1.bf16.msra.mxu1 %v7815_v22 }
 0x296   : > { %5846 = vmatprep.subr.bf16.mxu0 %v7820_v59  ;;  %5889 = vmatprep.subr.bf16.mxu1 %v7823_v60 }
 0x299   : > { %5847 = vmatpush2.bf16.msra.mxu0 %v7818_v37  ;;  %5890 = vmatpush2.bf16.msra.mxu1 %v7821_v24 }
 0x29a   : > { %5848 = vmatprep.subr.bf16.mxu0 %v7826_v25  ;;  %5891 = vmatprep.subr.bf16.mxu1 %v7829_v51 }
 0x29d   : > { %5849 = vmatpush2.bf16.msra.mxu0 %v7824_v1  ;;  %5892 = vmatpush2.bf16.msra.mxu1 %v7827_v30 }
 0x29e   : > { %5850 = vmatprep.subr.bf16.mxu0 %v7832_v34  ;;  %5893 = vmatprep.subr.bf16.mxu1 %v7835_v20 }
 0x2a1   : > { %5851 = vmatpush2.bf16.msra.mxu0 %v7830_v21  ;;  %5894 = vmatpush2.bf16.msra.mxu1 %v7833_v56 }
 0x2a2   : > { %5852 = vmatprep.subr.bf16.mxu0 %v7838_v57  ;;  %5895 = vmatprep.subr.bf16.mxu1 %v7841_v43 }
 0x2a5   : > { %5853 = vmatpush2.bf16.msra.mxu0 %v7836_v13  ;;  %5896 = vmatpush2.bf16.msra.mxu1 %v7839_v39 }
 0x2a6   : > { %5854 = vmatprep.subr.bf16.mxu0 %v7844_v40  ;;  %5897 = vmatprep.subr.bf16.mxu1 %v7847_v27 }
 0x2a9   : > { %5855 = vmatpush2.bf16.msra.mxu0 %v7842_v32  ;;  %5898 = vmatpush2.bf16.msra.mxu1 %v7845_v2 }
 0x2aa   : > { %5856 = vmatprep.subr.bf16.mxu0 %v7850_v48  ;;  %5899 = vmatprep.subr.bf16.mxu1 %v7853_v36 }
 0x2ad   : > { %5857 = vmatpush2.bf16.msra.mxu0 %v7848_v38  ;;  %5900 = vmatpush2.bf16.msra.mxu1 %v7851_v17 }
 0x2ae   : > { %5858 = vmatprep.subr.bf16.mxu0 %v7856_v18  ;;  %5901 = vmatprep.subr.bf16.mxu1 %v7859_v42 }
 0x2b1   : > { %5859 = vmatpush2.bf16.msra.mxu0 %v7854_v28  ;;  %5902 = vmatpush2.bf16.msra.mxu1 %v7857_v46 }
 0x2b2   : > { %5860 = vmatprep.subr.bf16.mxu0 %v7862_v45  ;;  %5903 = vmatprep.subr.bf16.mxu1 %v7865_v23 }
 0x2b5   : > { %5861 = vmatpush2.bf16.msra.mxu0 %v7860_v29  ;;  %5904 = vmatpush2.bf16.msra.mxu1 %v7863_v26 }
 0x2b8   : > { %5863 = vmatmul.mubr.bf16.vlgmr.msra.gmra.mxu0 %v9729_v4  ;;  %5906 = vmatmul.mubr.bf16.vlgmr.msra.gmra.mxu1 %v9731_v5 }
 0x2b9   : > { %7879 = shalt.err (!%p7876_p3)
}
 0x2ba   : > { %s7880_s26 = scalar_lea.hbm %s10574_s17, 1024  ;;  %s7884_s23 = scalar_lea.hbm %s10677_s8, 2048 }
 0x2bb   : > { %p7881_p4 = scmp.ne.s32.totalorder %s10574_s17, %s7880_s26  ;;  %p7885_p9 = scmp.lt.s32.totalorder %s10574_s17, %s10677_s8 }
 0x2bc   : > { %p7886_p10 = scmp.lt.s32.totalorder %s7884_s23, %s7880_s26 }
 0x2bd   : > { %p7882_p7 = pnand %p7881_p4, %p8051_p5 }
 0x2be   : > { %p7887_p11 = por %p7886_p10, %p7885_p9 }
 0x2bf   : > { %p7883_p8 = pneg %p7882_p7 }
 0x2c1   : > { %p7888_p12 = pnand %p7887_p11, %p7883_p8 }
 0x2c3   : > { %7891 = shalt.err (!%p7888_p12)
}
 0x2c4   : > { %s7960_s27 = smov 512   ;;  %s7961_s28 = smov 32   ;;  %v5606_v4 = vpop.f32.mrf.mxu0  ;;  %v5649_v5 = vpop.f32.mrf.mxu1  ;;  %v5929_v36 = vrot.slane %v10365_v62, %v444_v44  ;;  %v5933_v46 = vrot.slane %v10365_v62, %v448_v8 }
 0x2c5   : > { %s10685_s21 = scalar_lea.sflag [#allocation3], %s8865_s24  ;;  %v5607_v61 = vadd.f32 %v5606_v4, %v9498_v35  ;;  %s5991_s18 = sshll.u32 %s10409_s25, 4  ;;  %s10625_s18 = int_to_ptr.vmem [resolvable:$true] %s5991_s18 }
 0x2c6   : > { %6811 = dma.vmem_to_hbm [thread:$0]  (%p8051_p5), %s10576_s14, 1024, %s10574_s17, %s10685_s21, %s7960_s27, %s7960_s27, %s7961_s28   ;;  %v5608_v41 = vpop.f32.mrf.mxu0  ;;  %v5651_v47 = vpop.f32.mrf.mxu1 }
 0x2c7   : > { %v5609_v10 = vadd.f32 %v5608_v41, %v9512_v55  ;;  %v5650_v15 = vadd.f32 %v5649_v5, %v5607_v61  ;;  %s10686_s14 = sshll.u32 %s8034_s13, 10  ;;  %s5960_s22 = scalar_lea.sflag [#allocation5], %s8865_s24 }
 0x2c8   : > { %v5610_v50 = vpop.f32.mrf.mxu0  ;;  %v5653_v0 = vpop.f32.mrf.mxu1  ;;  %s10623_s26 = scalar_lea.hbm %s10678_s9, %s10686_s14  ;;  %s7892_s16 = scalar_lea.vmem %s10625_s18, 1024 }
 0x2c9   : > { %v5611_v6 = vadd.f32 %v5610_v50, %v9516_v11  ;;  %v5652_v19 = vadd.f32 %v5651_v47, %v5609_v10  ;;  %p7893_p13 = scmp.ne.s32.totalorder %s10625_s18, %s7892_s16  ;;  %s7962_s23 = smov [#allocation4]  }
 0x2ca   : > { %v5612_v53 = vpop.f32.mrf.mxu0  ;;  %v5655_v54 = vpop.f32.mrf.mxu1  ;;  %s7896_s21 = sshll.u32 %s7962_s23, 4  ;;  %s7897_s21 = int_to_ptr.vmem [resolvable:$false] %s7896_s21 }
 0x2cb   : > { %v5613_v22 = vadd.f32 %v5612_v53, %v9534_v33  ;;  %v5654_v24 = vadd.f32 %v5653_v0, %v5611_v6  ;;  %p7894_p0 = pnand %p7893_p13, %p8051_p5  ;;  %s7898_s13 = scalar_lea.vmem %s7897_s21, 2048 }
 0x2cc   : > { %p7899_p2 = scmp.lt.s32.totalorder %s10625_s18, %s7897_s21  ;;  %p7900_p3 = scmp.lt.s32.totalorder %s7898_s13, %s7892_s16 }
 0x2cd   : > { %v5656_v51 = vadd.f32 %v5655_v54, %v5613_v22  ;;  %p7895_p1 = pneg %p7894_p0 }
 0x2ce   : > { %p7901_p4 = por %p7900_p3, %p7899_p2 }
 0x2d0   : > { %p7902_p7 = pnand %p7901_p4, %p7895_p1 }
 0x2f8   : > { %v5692_v58 = vpop.f32.mrf.mxu0  ;;  %v5735_v16 = vpop.f32.mrf.mxu1 }
 0x2f9   : > { %v5693_v59 = vadd.f32 %v5692_v58, %v5650_v15 }
 0x2fa   : > { %v5694_v63 = vpop.f32.mrf.mxu0  ;;  %v5737_v49 = vpop.f32.mrf.mxu1 }
 0x2fb   : > { %v5695_v25 = vadd.f32 %v5694_v63, %v5652_v19  ;;  %v5736_v1 = vadd.f32 %v5735_v16, %v5693_v59 }
 0x2fc   : > { %v5696_v52 = vpop.f32.mrf.mxu0  ;;  %v5739_v3 = vpop.f32.mrf.mxu1 }
 0x2fd   : > { %v5697_v35 = vadd.f32 %v5696_v52, %v5654_v24  ;;  %v5738_v20 = vadd.f32 %v5737_v49, %v5695_v25 }
 0x2fe   : > { %v5698_v7 = vpop.f32.mrf.mxu0  ;;  %v5741_v9 = vpop.f32.mrf.mxu1 }
 0x2ff   : > { %v5699_v55 = vadd.f32 %v5698_v7, %v5656_v51  ;;  %v5740_v56 = vadd.f32 %v5739_v3, %v5697_v35 }
 0x301   : > { %v5742_v13 = vadd.f32 %v5741_v9, %v5699_v55 }
 0x338   : > { %v5778_v12 = vpop.f32.mrf.mxu0  ;;  %v5821_v14 = vpop.f32.mrf.mxu1 }
 0x339   : > { %v5779_v21 = vadd.f32 %v5778_v12, %v5736_v1 }
 0x33a   : > { %v5780_v60 = vpop.f32.mrf.mxu0  ;;  %v5823_v37 = vpop.f32.mrf.mxu1 }
 0x33b   : > { %v5781_v57 = vadd.f32 %v5780_v60, %v5738_v20  ;;  %v5822_v39 = vadd.f32 %v5821_v14, %v5779_v21 }
 0x33c   : > { %v5782_v30 = vpop.f32.mrf.mxu0  ;;  %v5825_v34 = vpop.f32.mrf.mxu1 }
 0x33d   : > { %v5783_v33 = vadd.f32 %v5782_v30, %v5740_v56  ;;  %v5824_v32 = vadd.f32 %v5823_v37, %v5781_v57 }
 0x33e   : > { %v5784_v43 = vpop.f32.mrf.mxu0  ;;  %v5827_v11 = vpop.f32.mrf.mxu1 }
 0x33f   : > { %v5785_v2 = vadd.f32 %v5784_v43, %v5742_v13  ;;  %v5826_v18 = vadd.f32 %v5825_v34, %v5783_v33 }
 0x341   : > { %v5828_v29 = vadd.f32 %v5827_v11, %v5785_v2 }
 0x378   : > { %v5864_v40 = vpop.f32.mrf.mxu0  ;;  %v5907_v27 = vpop.f32.mrf.mxu1 }
 0x379   : > { %v5865_v48 = vadd.f32 %v5864_v40, %v5822_v39 }
 0x37a   : > { %v5866_v38 = vpop.f32.mrf.mxu0  ;;  %v5909_v17 = vpop.f32.mrf.mxu1 }
 0x37b   : > { %v5908_v42 = vadd.f32 %v5907_v27, %v5865_v48  ;;  %v5867_v28 = vadd.f32 %v5866_v38, %v5824_v32 }
 0x37c   : > { %v5868_v45 = vpop.f32.mrf.mxu0  ;;  %v5911_v23 = vpop.f32.mrf.mxu1 }
 0x37d   : > { %v5940_v26 = vadd.f32 %v5929_v36, %v5908_v42  ;;  %v5910_v4 = vadd.f32 %v5909_v17, %v5867_v28  ;;  %v5869_v44 = vadd.f32 %v5868_v45, %v5826_v18 }
 0x37e   : > { %v5870_v5 = vpop.f32.mrf.mxu0  ;;  %v5913_v0 = vpop.f32.mrf.mxu1 }
 0x37f   : > { %5948 = vst [vmem:[%s10409_s25 + $0x10] sm:$0xff] %v5940_v26  ;;  %v5941_v41 = vadd.f32 %v5933_v46, %v5910_v4  ;;  %v5912_v47 = vadd.f32 %v5911_v23, %v5869_v44  ;;  %v5871_v50 = vadd.f32 %v5870_v5, %v5828_v29 }
 0x381   : > { %5949 = vst [vmem:[%s10409_s25 + $0x18] sm:$0xff] %v5941_v41  ;;  %v5944_v31 = vadd.f32 %v5929_v36, %v5912_v47  ;;  %v5914_v8 = vadd.f32 %v5913_v0, %v5871_v50 }
 0x383   : > { %5952 = vst [vmem:[%s10409_s25 + $0x30] sm:$0xff] %v5944_v31  ;;  %v5945_v62 = vadd.f32 %v5933_v46, %v5914_v8 }
 0x385   : > { %5953 = vst [vmem:[%s10409_s25 + $0x38] sm:$0xff] %v5945_v62 }
 0x386   : > { %7905 = shalt.err (!%p7902_p7)
}
 0x387   : > { %s7906_s25 = scalar_lea.hbm %s10623_s26, 1024  ;;  %s7910_s17 = scalar_lea.hbm %s10678_s9, 2048 }
 0x388   : > { %p7907_p8 = scmp.ne.s32.totalorder %s10623_s26, %s7906_s25  ;;  %p7911_p11 = scmp.lt.s32.totalorder %s10623_s26, %s10678_s9 }
 0x389   : > { %p7912_p12 = scmp.lt.s32.totalorder %s7910_s17, %s7906_s25 }
 0x38a   : > { %p7908_p9 = pnand %p7907_p8, %p8051_p5 }
 0x38b   : > { %p7913_p13 = por %p7912_p12, %p7911_p11 }
 0x38c   : > { %p7909_p10 = pneg %p7908_p9 }
 0x38e   : > { %p7914_p0 = pnand %p7913_p13, %p7909_p10 }
 0x390   : > { %7917 = shalt.err (!%p7914_p0)
}
 0x391   : > { %6812 = dma.vmem_to_hbm [thread:$0]  (%p8051_p5), %s10625_s18, 1024, %s10623_s26, %s5960_s22, %s7960_s27, %s7960_s27, %s7961_s28  }
 0x392 PF: > { %p6822_p1 = scmp.ge.s32.totalorder %s7956_s12, 2  ;;  %s6006_s16 = sand.u32 1, %s7944_s30  }
 0x393   : > { %s6007_s21 = scalar_lea.sflag [#allocation3], %s6006_s16 }
 0x394   : > { %p6816_p2 = pnand %p6822_p1, %p8055_p6 }
 0x396   : > { %p6817_p3 = pneg %p6816_p2 }
 0x398   : > { %7935 = dma.done.wait (%p6817_p3), %s6007_s21, 1024  }
 0x399   : > { %7937 = vsyncadd (%p6817_p3), %s6007_s21, 4294966272  ;;  %s6016_s13 = scalar_lea.sflag [#allocation5], %s6006_s16 }
 0x39a   : > { %7939 = dma.done.wait (%p6817_p3), %s6016_s13, 1024  }
 0x39b   : > { %7941 = vsyncadd (%p6817_p3), %s6016_s13, 4294966272  ;;  %s10687_s19 = sld [smem:[#allocation8_spill]]  ;;  %p23_p5 = scmp.ge.s32.totalorder %s8038_s15, 4  }
 0x39c   : > { %s10688_s30 = smov %s7948_s10  ;;  %s10689_s10 = smov %s7952_s11 }
 0x39d   : > { %s10691_s12 = smov %s8038_s15  ;;  %25 = sbr.rel (!%p23_p5) target bundleno = 5 (0x5), region = 110 }
 0x3a1   : > { %s10690_s11 = smov %s10687_s19 }
 0x3a2   :  { %6021 = vsyncpa [#allocation3], 1 }
 0x3a3   :  { %6023 = vsyncpa [#allocation3 + $0x1], 1 }
 0x3a4   :  { %6024 = vsyncpa [#allocation5], 1 }
 0x3a5   :  { %6026 = vsyncpa [#allocation5 + $0x1], 1 }

</bundles_post_ra>
